<compile_context>
chip_gen: v5e
topology: v5e:2x2
jax: 0.10.0
libtpu: 0.0.40
codegen_flags: <defaults>
</compile_context>

<pallas_src>
import functools
import math

import numpy as np
import jax
import jax.numpy as jnp
from jax.experimental import pallas as pl
from jax.experimental.pallas import tpu as pltpu


def _pad128(n):
    return ((n + 127) // 128) * 128


# ----------------------------------------------------------------------------
# Host-side structure-matrix builders
# ----------------------------------------------------------------------------
def _conv_m_taps(w_oihw, scale, Wo, k, s, q, lin, lout):
    """Per-tap lane-mixing matrices for a regular conv. Returns (k, lin, lout)."""
    w = np.asarray(w_oihw, np.float32)                  # (Cout, Cin, k, k)
    Cout, Cin = w.shape[0], w.shape[1]
    if scale is not None:                               # fold BN scale
        w = w * np.asarray(scale, np.float32)[:, None, None, None]
    wk = np.transpose(w, (2, 3, 1, 0))                  # (kh, kw, Cin, Cout)
    M = np.zeros((k, lin, lout), np.float32)
    for kh in range(k):
        for kw in range(k):
            for wo in range(Wo):
                wi = s * wo + kw - q + 1                # padded lane-block idx
                M[kh, wi * Cin:(wi + 1) * Cin,
                  (wo + 1) * Cout:(wo + 2) * Cout] += wk[kh, kw]
    return M


def _convT_m_taps(w_iohw, scale, Wi, Wo, k, s, q, lin, lout):
    """Per-tap lane-mixing matrices for a ConvTranspose2d (PyTorch layout)."""
    w = np.asarray(w_iohw, np.float32)                  # (Cin, Cout, k, k)
    Cin, Cout = w.shape[0], w.shape[1]
    if scale is not None:
        w = w * np.asarray(scale, np.float32)[None, :, None, None]
    M = np.zeros((k, lin, lout), np.float32)
    for kh in range(k):
        for kw in range(k):
            for wi in range(Wi):
                wo = s * wi + kw - q
                if 0 <= wo < Wo:
                    M[kh, (wi + 1) * Cin:(wi + 2) * Cin,
                      (wo + 1) * Cout:(wo + 2) * Cout] += w[:, :, kh, kw]
    return M


def _conv_r_taps(Bg, Hi, Ho, k, s, q):
    """Per-tap 0/1 row-selection matrices for a strided conv."""
    rows_in, rows_out = Bg * (Hi + 2), Bg * (Ho + 2)
    R = np.zeros((k, rows_out, rows_in), np.float32)
    for kh in range(k):
        for b in range(Bg):
            for ho in range(Ho):
                hi = s * ho + kh - q + 1
                R[kh, b * (Ho + 2) + ho + 1, b * (Hi + 2) + hi] = 1.0
    return R


def _convT_r_taps(Bg, Hi, Ho, k, s, q):
    rows_in, rows_out = Bg * (Hi + 2), Bg * (Ho + 2)
    R = np.zeros((k, rows_out, rows_in), np.float32)
    for kh in range(k):
        for b in range(Bg):
            for hi in range(Hi):
                ho = s * hi + kh - q
                if 0 <= ho < Ho:
                    R[kh, b * (Ho + 2) + ho + 1, b * (Hi + 2) + hi + 1] = 1.0
    return R


def _bias_slab(shift_ch, Bg, Ho, Wo, Cout, lout, extra_col=None):
    """Per-channel shift (BN shift / bias) on content rows, zero borders."""
    S = np.zeros((Bg * (Ho + 2), lout), np.float32)
    row = np.zeros((lout,), np.float32)
    sc = np.asarray(shift_ch, np.float32)
    for wo in range(Wo):
        row[(wo + 1) * Cout:(wo + 2) * Cout] = sc
    if extra_col is not None:                           # constant-1 column (VQ)
        row[extra_col] = 1.0
    for b in range(Bg):
        S[b * (Ho + 2) + 1:b * (Ho + 2) + 1 + Ho, :] = row
    return S


def _kdot_matrix(E, Wz, D, lin):
    """Columns give  -2 z_w . e_m + ||e_m||^2  when multiplied by the z slab
    (the ||e||^2 term rides on the constant-1 column at lane (Wz+2)*D)."""
    E = np.asarray(E, np.float32)
    Mn = E.shape[0]
    cols = _pad128(Wz * Mn)
    K = np.zeros((lin, cols), np.float32)
    e2 = np.sum(E * E, axis=1)
    for w in range(Wz):
        for m in range(Mn):
            K[(w + 1) * D:(w + 2) * D, w * Mn + m] = -2.0 * E[m]
            K[(Wz + 2) * D, w * Mn + m] = e2[m]
    return K


# ----------------------------------------------------------------------------
# The single fused Pallas kernel
# ----------------------------------------------------------------------------
def _vqvae_kernel(x_ref, rall_ref, mall_ref, sall_ref, kdot_ref,
                  out_ref, loss_ref, *, layers, vq):
    f32 = jnp.float32
    bf16 = jnp.bfloat16

    mask_cache = {}

    def row_mask(rows, period):
        key = (rows, period)
        if key not in mask_cache:
            r = jax.lax.broadcasted_iota(jnp.int32, (rows, 1), 0) % period
            mask_cache[key] = ((r != 0) & (r != period - 1)).astype(f32)
        return mask_cache[key]

    a = x_ref[...]                                      # f32 input slab
    saved = None
    z = None

    for L in layers:
        if L["save"]:
            saved = a
        inp = jnp.maximum(a, 0.0) if L["relu_in"] else a
        k, lin, lout = L["k"], L["lin"], L["lout"]
        rows_out = L["rows_out"]
        bias = sall_ref[L["soff"]:L["soff"] + rows_out, 0:lout]

        if L["kind"] == "s1":
            # Stride-1 conv: vertical taps = XLU row rolls, lane-concatenated,
            # one MXU contraction with K = k * lin.
            if k == 1:
                lhs = inp
            else:
                rows = inp.shape[0]
                parts = []
                for sh in L["shifts"]:
                    s = sh % rows
                    parts.append(inp if s == 0
                                 else pltpu.roll(inp, shift=s, axis=0))
                lhs = jnp.concatenate(parts, axis=1)
            m = mall_ref[L["moff"]:L["moff"] + k * lin, 0:lout]
            conv = jnp.dot(lhs.astype(bf16), m, preferred_element_type=f32)
            conv = conv * row_mask(rows_out, L["period"])   # re-zero border rows
        else:
            # Strided conv / conv-transpose: one stacked R matmul, then k
            # full-width tap matmuls (borders handled by R -> no mask needed).
            rows_in = L["rows_in"]
            r = rall_ref[L["roff"]:L["roff"] + k * rows_out, 0:rows_in]
            t = jnp.dot(r, inp.astype(bf16), preferred_element_type=f32)
            conv = None
            for kh in range(k):
                tk = t[kh * rows_out:(kh + 1) * rows_out, :].astype(bf16)
                mk = mall_ref[L["moff"] + kh * lin:
                              L["moff"] + (kh + 1) * lin, 0:lout]
                d = jnp.dot(tk, mk, preferred_element_type=f32)
                conv = d if conv is None else conv + d

        acc = bias + conv
        if L["relu_out"]:
            acc = jnp.maximum(acc, 0.0)
        if L["addres"]:
            acc = acc + saved
        a = acc
        if L["vq_after"]:
            z = a

    out_ref[...] = a

    # ----- VQ commitment loss (f32 distance math; ||z||^2 exact) -------------
    Wz, D, Mn = vq["Wz"], vq["D"], vq["Mn"]
    dp = jnp.dot(z, kdot_ref[...], preferred_element_type=f32)   # -2 z.e + e2
    zz = z * z
    minsum = jnp.zeros((vq["rows"], 1), f32)
    for w in range(Wz):
        zsq = jnp.sum(zz[:, (w + 1) * D:(w + 2) * D], axis=1, keepdims=True)
        dw = zsq + dp[:, w * Mn:(w + 1) * Mn]
        minsum = minsum + jnp.maximum(jnp.min(dw, axis=1, keepdims=True), 0.0)
    loss_val = vq["scale"] * jnp.sum(minsum)
    loss_ref[...] = jnp.zeros(loss_ref.shape, f32) + loss_val


# ----------------------------------------------------------------------------
# Parameter construction (deterministic, synthetic)
# ----------------------------------------------------------------------------
def _bn(key, c, eps=1e-5):
    k1, k2, k3, k4 = jax.random.split(key, 4)
    gamma = 1.0 + 0.1 * jax.random.normal(k1, (c,), jnp.float32)
    beta = 0.1 * jax.random.normal(k2, (c,), jnp.float32)
    mean = 0.1 * jax.random.normal(k3, (c,), jnp.float32)
    var = 1.0 + 0.1 * jax.random.uniform(k4, (c,), jnp.float32)
    s = gamma / jnp.sqrt(var + eps)
    b = beta - mean * s
    return s, b


def _conv_w(key, cout, cin, k):
    fan = cin * k * k
    return jax.random.uniform(key, (cout, cin, k, k), jnp.float32,
                              -1.0, 1.0) / math.sqrt(fan)


def _convt_w(key, cin, cout, k):
    fan = cout * k * k
    return jax.random.uniform(key, (cin, cout, k, k), jnp.float32,
                              -1.0, 1.0) / math.sqrt(fan)


def _res_params(key, c):
    k1, k2, k3, k4 = jax.random.split(key, 4)
    s1, b1 = _bn(k2, c)
    s2, b2 = _bn(k4, c)
    return {"w1": _conv_w(k1, c, c, 3), "bn1_s": s1, "bn1_b": b1,
            "w2": _conv_w(k3, c, c, 1), "bn2_s": s2, "bn2_b": b2}


def init_params(key, channels=8, num_embeddings=16, embedding_dim=8):
    C, M, D = channels, num_embeddings, embedding_dim
    ks = iter(jax.random.split(key, 32))
    p = {}
    # Encoder
    p["e1_w"] = _conv_w(next(ks), C, 3, 4)
    p["e1_s"], p["e1_b"] = _bn(next(ks), C)
    p["e2_w"] = _conv_w(next(ks), C, C, 4)
    p["e2_s"], p["e2_b"] = _bn(next(ks), C)
    p["enc_res1"] = _res_params(next(ks), C)
    p["enc_res2"] = _res_params(next(ks), C)
    p["e3_w"] = _conv_w(next(ks), D, C, 1)              # latent_dim * D == D
    p["e3_bias"] = 0.1 * jax.random.normal(next(ks), (D,), jnp.float32)
    # Codebook (latent_dim = 1)
    p["embedding"] = jax.random.uniform(next(ks), (M, D), jnp.float32,
                                        -1.0 / M, 1.0 / M)
    # Decoder
    p["d1_w"] = _conv_w(next(ks), C, D, 1)
    p["d1_s"], p["d1_b"] = _bn(next(ks), C)
    p["dec_res1"] = _res_params(next(ks), C)
    p["dec_res2"] = _res_params(next(ks), C)
    p["dt1_w"] = _convt_w(next(ks), C, C, 4)
    p["dt1_s"], p["dt1_b"] = _bn(next(ks), C)
    p["dt2_w"] = _convt_w(next(ks), C, C, 4)
    p["dt2_s"], p["dt2_b"] = _bn(next(ks), C)
    p["dout_w"] = _conv_w(next(ks), 3, C, 1)
    p["dout_bias"] = 0.1 * jax.random.normal(next(ks), (3,), jnp.float32)
    return p


# ----------------------------------------------------------------------------
# Build the static layer plan + the 4 packed constant slabs
# ----------------------------------------------------------------------------
def build_plan_and_operands(p, *, batch, img, num_groups=2, commitment=0.25):
    assert batch % num_groups == 0
    Bg = batch // num_groups
    H = W = img
    H2, W2 = H // 2, W // 2
    Hz, Wz = H // 4, W // 4
    C = int(p["e1_w"].shape[0])
    D = int(p["embedding"].shape[1])
    Mn = int(p["embedding"].shape[0])

    lane_img3 = _pad128((W + 2) * 3)        # 128
    lane_h2 = _pad128((W2 + 2) * C)         # 128
    lane_hz = _pad128((Wz + 2) * C)         # 128
    lane_z = _pad128((Wz + 2) * D)          # 128
    lane_full = _pad128((W + 2) * C)        # 256
    lane_out = _pad128((W + 2) * 3)         # 128

    m_blocks, r_blocks, s_blocks = [], [], []
    layers = []
    offs = {"m": 0, "r": 0, "s": 0}

    def _push_m(mk):
        k, lin, lout = mk.shape
        m_blocks.append(mk.reshape(k * lin, lout))
        off = offs["m"]
        offs["m"] += k * lin
        return off

    def _push_r(rk):
        k, ro, ri = rk.shape
        r_blocks.append(rk.reshape(k * ro, ri))
        off = offs["r"]
        offs["r"] += k * ro
        return off

    def _push_s(sb):
        s_blocks.append(sb)
        off = offs["s"]
        offs["s"] += sb.shape[0]
        return off

    def s1_layer(w, scale, shift, Ho, Wo, Cout, k, lin, lout,
                 extra_col=None, **flags):
        q = (k - 1) // 2
        mk = _conv_m_taps(w, scale, Wo, k, 1, q, lin, lout)
        sb = _bias_slab(shift, Bg, Ho, Wo, Cout, lout, extra_col)
        layers.append(dict(
            kind="s1", k=k, lin=lin, lout=lout,
            rows_out=Bg * (Ho + 2), period=Ho + 2,
            shifts=[q - kh for kh in range(k)],
            moff=_push_m(mk), soff=_push_s(sb),
            relu_in=flags.get("relu_in", False),
            relu_out=flags.get("relu_out", False),
            save=flags.get("save", False),
            addres=flags.get("addres", False),
            vq_after=flags.get("vq_after", False)))

    def strided_layer(w, scale, shift, Hi, Wi, Ho, Wo, Cout, lin, lout,
                      transpose=False, relu_out=False):
        k, s, q = 4, 2, 1
        if transpose:
            mk = _convT_m_taps(w, scale, Wi, Wo, k, s, q, lin, lout)
            rk = _convT_r_taps(Bg, Hi, Ho, k, s, q)
        else:
            mk = _conv_m_taps(w, scale, Wo, k, s, q, lin, lout)
            rk = _conv_r_taps(Bg, Hi, Ho, k, s, q)
        sb = _bias_slab(shift, Bg, Ho, Wo, Cout, lout)
        layers.append(dict(
            kind="st", k=k, lin=lin, lout=lout,
            rows_in=Bg * (Hi + 2), rows_out=Bg * (Ho + 2), period=Ho + 2,
            moff=_push_m(mk), roff=_push_r(rk), soff=_push_s(sb),
            relu_in=False, relu_out=relu_out,
            save=False, addres=False, vq_after=False))

    # ---------------- Encoder ----------------
    strided_layer(p["e1_w"], p["e1_s"], p["e1_b"], H, W, H2, W2, C,
                  lane_img3, lane_h2, relu_out=True)
    strided_layer(p["e2_w"], p["e2_s"], p["e2_b"], H2, W2, Hz, Wz, C,
                  lane_h2, lane_hz)
    for rp in (p["enc_res1"], p["enc_res2"]):
        s1_layer(rp["w1"], rp["bn1_s"], rp["bn1_b"], Hz, Wz, C, 3,
                 lane_hz, lane_hz, relu_in=True, relu_out=True, save=True)
        s1_layer(rp["w2"], rp["bn2_s"], rp["bn2_b"], Hz, Wz, C, 1,
                 lane_hz, lane_hz, addres=True)
    s1_layer(p["e3_w"], None, p["e3_bias"], Hz, Wz, D, 1,
             lane_hz, lane_z, extra_col=(Wz + 2) * D, vq_after=True)
    # ---------------- Decoder (consumes z, matching VQVAE.forward) ----------
    s1_layer(p["d1_w"], p["d1_s"], p["d1_b"], Hz, Wz, C, 1, lane_z, lane_hz)
    for rp in (p["dec_res1"], p["dec_res2"]):
        s1_layer(rp["w1"], rp["bn1_s"], rp["bn1_b"], Hz, Wz, C, 3,
                 lane_hz, lane_hz, relu_in=True, relu_out=True, save=True)
        s1_layer(rp["w2"], rp["bn2_s"], rp["bn2_b"], Hz, Wz, C, 1,
                 lane_hz, lane_hz, addres=True)
    strided_layer(p["dt1_w"], p["dt1_s"], p["dt1_b"], Hz, Wz, H2, W2, C,
                  lane_hz, lane_h2, transpose=True, relu_out=True)
    strided_layer(p["dt2_w"], p["dt2_s"], p["dt2_b"], H2, W2, H, W, C,
                  lane_h2, lane_full, transpose=True, relu_out=True)
    s1_layer(p["dout_w"], None, p["dout_bias"], H, W, 3, 1,
             lane_full, lane_out)

    # ---------------- pack constants into aligned slabs ----------------
    m_w = max(b.shape[1] for b in m_blocks)
    mall = np.zeros((offs["m"], m_w), np.float32)
    r0 = 0
    for b in m_blocks:
        mall[r0:r0 + b.shape[0], :b.shape[1]] = b
        r0 += b.shape[0]

    r_w = _pad128(max(b.shape[1] for b in r_blocks))
    rall = np.zeros((offs["r"], r_w), np.float32)
    r0 = 0
    for b in r_blocks:
        rall[r0:r0 + b.shape[0], :b.shape[1]] = b
        r0 += b.shape[0]

    s_w = max(b.shape[1] for b in s_blocks)
    sall = np.zeros((offs["s"], s_w), np.float32)
    r0 = 0
    for b in s_blocks:
        sall[r0:r0 + b.shape[0], :b.shape[1]] = b
        r0 += b.shape[0]

    kdot = _kdot_matrix(p["embedding"], Wz, D, lane_z)

    operands = dict(
        rall=jnp.asarray(rall, jnp.bfloat16),   # 0/1 -> exact in bf16
        mall=jnp.asarray(mall, jnp.bfloat16),
        sall=jnp.asarray(sall, jnp.float32),
        kdot=jnp.asarray(kdot, jnp.float32),
    )
    vq = dict(rows=Bg * (Hz + 2), Wz=Wz, D=D, Mn=Mn,
              scale=float(commitment) / float(batch * Hz * Wz * D))
    meta = dict(batch=batch, groups=num_groups, Bg=Bg, H=H, W=W,
                lane_in=lane_img3, lane_out=lane_out)
    return tuple(layers), operands, vq, meta


# ----------------------------------------------------------------------------
# Full forward pass  ==  VQVAE.forward(x)  ->  (f, KL)
# ----------------------------------------------------------------------------
def vqvae_forward(operands, x_nchw, *, layers, vq, meta):
    B, G, Bg = meta["batch"], meta["groups"], meta["Bg"]
    H, W = meta["H"], meta["W"]
    lane_in, lane_out = meta["lane_in"], meta["lane_out"]
    rows_g = Bg * (H + 2)

    # image -> lane-dense padded slab (x - 0.5 as in VQVAE.encode)
    x = jnp.transpose(x_nchw, (0, 2, 3, 1)).astype(jnp.float32) - 0.5
    xpad = jnp.pad(x, ((0, 0), (1, 1), (1, 1), (0, 0)))
    slab = xpad.reshape(B * (H + 2), (W + 2) * 3)
    slab = jnp.pad(slab, ((0, 0), (0, lane_in - (W + 2) * 3)))

    rall, mall, sall, kdot = (operands["rall"], operands["mall"],
                              operands["sall"], operands["kdot"])
    kernel = functools.partial(_vqvae_kernel, layers=layers, vq=vq)

    out2d, loss2d = pl.pallas_call(
        kernel,
        grid=(G,),
        in_specs=[
            pl.BlockSpec((rows_g, lane_in), lambda g: (g, 0)),   # input slab
            pl.BlockSpec(rall.shape, lambda g: (0, 0)),          # packed R
            pl.BlockSpec(mall.shape, lambda g: (0, 0)),          # packed M
            pl.BlockSpec(sall.shape, lambda g: (0, 0)),          # packed bias
            pl.BlockSpec(kdot.shape, lambda g: (0, 0)),          # VQ codebook
        ],
        out_specs=(
            pl.BlockSpec((rows_g, lane_out), lambda g: (g, 0)),
            pl.BlockSpec((8, 128), lambda g: (g, 0)),
        ),
        out_shape=(
            jax.ShapeDtypeStruct((B * (H + 2), lane_out), jnp.float32),
            jax.ShapeDtypeStruct((G * 8, 128), jnp.float32),
        ),
        compiler_params=pltpu.CompilerParams(
            dimension_semantics=("parallel",),
            vmem_limit_bytes=32 * 1024 * 1024),
    )(slab, rall, mall, sall, kdot)

    f = out2d[:, :(W + 2) * 3].reshape(B, H + 2, W + 2, 3)[:, 1:-1, 1:-1, :]
    f = jnp.transpose(f, (0, 3, 1, 2))                  # back to NCHW
    kl = jnp.sum(loss2d[::8, 0])                        # per-group partial sums
    return f, kl


if __name__ == "__main__":
    key = jax.random.PRNGKey(0)
    k_params, k_input = jax.random.split(key)

    # config: ngf=8, num_components=16, feature_size=8, image_size=16, RGB
    BATCH, IMG = 8, 16
    params = init_params(k_params, channels=8, num_embeddings=16,
                         embedding_dim=8)
    layers, operands, vq, meta = build_plan_and_operands(
        params, batch=BATCH, img=IMG, num_groups=2, commitment=0.25)
    x = jax.random.uniform(k_input, (BATCH, 3, IMG, IMG), jnp.float32)

    fwd = jax.jit(functools.partial(vqvae_forward, layers=layers, vq=vq,
                                    meta=meta))
    f, kl = fwd(operands, x)
    jax.block_until_ready((f, kl))

    assert f.shape == (BATCH, 3, IMG, IMG) and f.dtype == jnp.float32
    assert kl.shape == () and bool(jnp.isfinite(kl))
    assert bool(jnp.all(jnp.isfinite(f)))
    print("KERNEL_OK")
</pallas_src>

<mosaic_0001>
module attributes {stable_mosaic.version = 11 : i64} {
  func.func @_vqvae_kernel(%arg0: i32, %arg1: memref<72x128xf32, #tpu.memory_space<vmem>>, %arg2: memref<704x128xbf16, #tpu.memory_space<vmem>>, %arg3: memref<4608x256xbf16, #tpu.memory_space<vmem>>, %arg4: memref<488x256xf32, #tpu.memory_space<vmem>>, %arg5: memref<128x128xf32, #tpu.memory_space<vmem>>, %arg6: memref<72x128xf32, #tpu.memory_space<vmem>>, %arg7: memref<8x128xf32, #tpu.memory_space<vmem>>) attributes {dimension_semantics = [#tpu.dimension_semantics<parallel>], iteration_bounds = array<i64: 2>, scalar_prefetch = 0 : i64, scratch_operands = 0 : i64, tpu.core_type = #tpu.core_type<tc>, window_params = [{transform_indices = @transform_0, window_bounds = array<i64: 72, 128>}, {pipeline_mode = #tpu.pipeline_mode<synchronous>, transform_indices = @transform_1, window_bounds = array<i64: 704, 128>}, {pipeline_mode = #tpu.pipeline_mode<synchronous>, transform_indices = @transform_2, window_bounds = array<i64: 4608, 256>}, {pipeline_mode = #tpu.pipeline_mode<synchronous>, transform_indices = @transform_3, window_bounds = array<i64: 488, 256>}, {pipeline_mode = #tpu.pipeline_mode<synchronous>, transform_indices = @transform_4, window_bounds = array<i64: 128, 128>}, {transform_indices = @transform_5, window_bounds = array<i64: 72, 128>}, {transform_indices = @transform_6, window_bounds = array<i64: 8, 128>}]} {
    %c0 = arith.constant 0 : index
    %c0_0 = arith.constant 0 : index
    %0 = vector.load %arg1[%c0, %c0_0] : memref<72x128xf32, #tpu.memory_space<vmem>>, vector<72x128xf32>
    %c0_1 = arith.constant 0 : index
    %c0_2 = arith.constant 0 : index
    %1 = vector.load %arg4[%c0_1, %c0_2] : memref<488x256xf32, #tpu.memory_space<vmem>>, vector<40x128xf32>
    %c0_3 = arith.constant 0 : index
    %c0_4 = arith.constant 0 : index
    %2 = vector.load %arg2[%c0_3, %c0_4] : memref<704x128xbf16, #tpu.memory_space<vmem>>, vector<160x72xbf16>
    %3 = arith.truncf %0 : vector<72x128xf32> to vector<72x128xbf16>
    %cst = arith.constant dense<0.000000e+00> : vector<160x128xf32>
    %4 = tpu.matmul %2, %3, %cst {dimension_numbers = #tpu.dot_dimension_numbers<[1], [0], [0], [1], [0, 0, 1, 1], [], []>} : vector<160x72xbf16>, vector<72x128xbf16>, vector<160x128xf32> -> vector<160x128xf32>
    %5 = vector.extract_strided_slice %4 {offsets = [0, 0], sizes = [40, 128], strides = [1, 1]} : vector<160x128xf32> to vector<40x128xf32>
    %6 = arith.truncf %5 : vector<40x128xf32> to vector<40x128xbf16>
    %c0_5 = arith.constant 0 : index
    %c0_6 = arith.constant 0 : index
    %7 = vector.load %arg3[%c0_5, %c0_6] : memref<4608x256xbf16, #tpu.memory_space<vmem>>, vector<128x128xbf16>
    %cst_7 = arith.constant dense<0.000000e+00> : vector<40x128xf32>
    %8 = tpu.matmul %6, %7, %cst_7 {dimension_numbers = #tpu.dot_dimension_numbers<[1], [0], [0], [1], [0, 0, 1, 1], [], []>} : vector<40x128xbf16>, vector<128x128xbf16>, vector<40x128xf32> -> vector<40x128xf32>
    %9 = vector.extract_strided_slice %4 {offsets = [40, 0], sizes = [40, 128], strides = [1, 1]} : vector<160x128xf32> to vector<40x128xf32>
    %10 = arith.truncf %9 : vector<40x128xf32> to vector<40x128xbf16>
    %c128 = arith.constant 128 : index
    %c0_8 = arith.constant 0 : index
    %11 = vector.load %arg3[%c128, %c0_8] : memref<4608x256xbf16, #tpu.memory_space<vmem>>, vector<128x128xbf16>
    %cst_9 = arith.constant dense<0.000000e+00> : vector<40x128xf32>
    %12 = tpu.matmul %10, %11, %cst_9 {dimension_numbers = #tpu.dot_dimension_numbers<[1], [0], [0], [1], [0, 0, 1, 1], [], []>} : vector<40x128xbf16>, vector<128x128xbf16>, vector<40x128xf32> -> vector<40x128xf32>
    %13 = arith.addf %8, %12 : vector<40x128xf32>
    %14 = vector.extract_strided_slice %4 {offsets = [80, 0], sizes = [40, 128], strides = [1, 1]} : vector<160x128xf32> to vector<40x128xf32>
    %15 = arith.truncf %14 : vector<40x128xf32> to vector<40x128xbf16>
    %c256 = arith.constant 256 : index
    %c0_10 = arith.constant 0 : index
    %16 = vector.load %arg3[%c256, %c0_10] : memref<4608x256xbf16, #tpu.memory_space<vmem>>, vector<128x128xbf16>
    %cst_11 = arith.constant dense<0.000000e+00> : vector<40x128xf32>
    %17 = tpu.matmul %15, %16, %cst_11 {dimension_numbers = #tpu.dot_dimension_numbers<[1], [0], [0], [1], [0, 0, 1, 1], [], []>} : vector<40x128xbf16>, vector<128x128xbf16>, vector<40x128xf32> -> vector<40x128xf32>
    %18 = arith.addf %13, %17 : vector<40x128xf32>
    %19 = vector.extract_strided_slice %4 {offsets = [120, 0], sizes = [40, 128], strides = [1, 1]} : vector<160x128xf32> to vector<40x128xf32>
    %20 = arith.truncf %19 : vector<40x128xf32> to vector<40x128xbf16>
    %c384 = arith.constant 384 : index
    %c0_12 = arith.constant 0 : index
    %21 = vector.load %arg3[%c384, %c0_12] : memref<4608x256xbf16, #tpu.memory_space<vmem>>, vector<128x128xbf16>
    %cst_13 = arith.constant dense<0.000000e+00> : vector<40x128xf32>
    %22 = tpu.matmul %20, %21, %cst_13 {dimension_numbers = #tpu.dot_dimension_numbers<[1], [0], [0], [1], [0, 0, 1, 1], [], []>} : vector<40x128xbf16>, vector<128x128xbf16>, vector<40x128xf32> -> vector<40x128xf32>
    %23 = arith.addf %18, %22 : vector<40x128xf32>
    %24 = arith.addf %1, %23 : vector<40x128xf32>
    %cst_14 = arith.constant 0.000000e+00 : f32
    %25 = vector.broadcast %cst_14 : f32 to vector<40x128xf32>
    %26 = arith.maximumf %24, %25 : vector<40x128xf32>
    %c40 = arith.constant 40 : index
    %c0_15 = arith.constant 0 : index
    %27 = vector.load %arg4[%c40, %c0_15] : memref<488x256xf32, #tpu.memory_space<vmem>>, vector<24x128xf32>
    %c160 = arith.constant 160 : index
    %c0_16 = arith.constant 0 : index
    %28 = vector.load %arg2[%c160, %c0_16] : memref<704x128xbf16, #tpu.memory_space<vmem>>, vector<96x40xbf16>
    %29 = arith.truncf %26 : vector<40x128xf32> to vector<40x128xbf16>
    %cst_17 = arith.constant dense<0.000000e+00> : vector<96x128xf32>
    %30 = tpu.matmul %28, %29, %cst_17 {dimension_numbers = #tpu.dot_dimension_numbers<[1], [0], [0], [1], [0, 0, 1, 1], [], []>} : vector<96x40xbf16>, vector<40x128xbf16>, vector<96x128xf32> -> vector<96x128xf32>
    %31 = vector.extract_strided_slice %30 {offsets = [0, 0], sizes = [24, 128], strides = [1, 1]} : vector<96x128xf32> to vector<24x128xf32>
    %32 = arith.truncf %31 : vector<24x128xf32> to vector<24x128xbf16>
    %c512 = arith.constant 512 : index
    %c0_18 = arith.constant 0 : index
    %33 = vector.load %arg3[%c512, %c0_18] : memref<4608x256xbf16, #tpu.memory_space<vmem>>, vector<128x128xbf16>
    %cst_19 = arith.constant dense<0.000000e+00> : vector<24x128xf32>
    %34 = tpu.matmul %32, %33, %cst_19 {dimension_numbers = #tpu.dot_dimension_numbers<[1], [0], [0], [1], [0, 0, 1, 1], [], []>} : vector<24x128xbf16>, vector<128x128xbf16>, vector<24x128xf32> -> vector<24x128xf32>
    %35 = vector.extract_strided_slice %30 {offsets = [24, 0], sizes = [24, 128], strides = [1, 1]} : vector<96x128xf32> to vector<24x128xf32>
    %36 = arith.truncf %35 : vector<24x128xf32> to vector<24x128xbf16>
    %c640 = arith.constant 640 : index
    %c0_20 = arith.constant 0 : index
    %37 = vector.load %arg3[%c640, %c0_20] : memref<4608x256xbf16, #tpu.memory_space<vmem>>, vector<128x128xbf16>
    %cst_21 = arith.constant dense<0.000000e+00> : vector<24x128xf32>
    %38 = tpu.matmul %36, %37, %cst_21 {dimension_numbers = #tpu.dot_dimension_numbers<[1], [0], [0], [1], [0, 0, 1, 1], [], []>} : vector<24x128xbf16>, vector<128x128xbf16>, vector<24x128xf32> -> vector<24x128xf32>
    %39 = arith.addf %34, %38 : vector<24x128xf32>
    %40 = vector.extract_strided_slice %30 {offsets = [48, 0], sizes = [24, 128], strides = [1, 1]} : vector<96x128xf32> to vector<24x128xf32>
    %41 = arith.truncf %40 : vector<24x128xf32> to vector<24x128xbf16>
    %c768 = arith.constant 768 : index
    %c0_22 = arith.constant 0 : index
    %42 = vector.load %arg3[%c768, %c0_22] : memref<4608x256xbf16, #tpu.memory_space<vmem>>, vector<128x128xbf16>
    %cst_23 = arith.constant dense<0.000000e+00> : vector<24x128xf32>
    %43 = tpu.matmul %41, %42, %cst_23 {dimension_numbers = #tpu.dot_dimension_numbers<[1], [0], [0], [1], [0, 0, 1, 1], [], []>} : vector<24x128xbf16>, vector<128x128xbf16>, vector<24x128xf32> -> vector<24x128xf32>
    %44 = arith.addf %39, %43 : vector<24x128xf32>
    %45 = vector.extract_strided_slice %30 {offsets = [72, 0], sizes = [24, 128], strides = [1, 1]} : vector<96x128xf32> to vector<24x128xf32>
    %46 = arith.truncf %45 : vector<24x128xf32> to vector<24x128xbf16>
    %c896 = arith.constant 896 : index
    %c0_24 = arith.constant 0 : index
    %47 = vector.load %arg3[%c896, %c0_24] : memref<4608x256xbf16, #tpu.memory_space<vmem>>, vector<128x128xbf16>
    %cst_25 = arith.constant dense<0.000000e+00> : vector<24x128xf32>
    %48 = tpu.matmul %46, %47, %cst_25 {dimension_numbers = #tpu.dot_dimension_numbers<[1], [0], [0], [1], [0, 0, 1, 1], [], []>} : vector<24x128xbf16>, vector<128x128xbf16>, vector<24x128xf32> -> vector<24x128xf32>
    %49 = arith.addf %44, %48 : vector<24x128xf32>
    %50 = arith.addf %27, %49 : vector<24x128xf32>
    %cst_26 = arith.constant 0.000000e+00 : f32
    %51 = vector.broadcast %cst_26 : f32 to vector<24x128xf32>
    %52 = arith.maximumf %50, %51 : vector<24x128xf32>
    %c64 = arith.constant 64 : index
    %c0_27 = arith.constant 0 : index
    %53 = vector.load %arg4[%c64, %c0_27] : memref<488x256xf32, #tpu.memory_space<vmem>>, vector<24x128xf32>
    %c1_i32 = arith.constant 1 : i32
    %54 = tpu.dynamic_rotate %52 by %c1_i32 dim 0 : vector<24x128xf32>, i32 -> vector<24x128xf32>
    %c23_i32 = arith.constant 23 : i32
    %55 = tpu.dynamic_rotate %52 by %c23_i32 dim 0 : vector<24x128xf32>, i32 -> vector<24x128xf32>
    %56 = tpu.concatenate %54, %52, %55 in 1 : vector<24x128xf32>, vector<24x128xf32>, vector<24x128xf32> -> vector<24x384xf32>
    %c1024 = arith.constant 1024 : index
    %c0_28 = arith.constant 0 : index
    %57 = vector.load %arg3[%c1024, %c0_28] : memref<4608x256xbf16, #tpu.memory_space<vmem>>, vector<384x128xbf16>
    %58 = arith.truncf %56 : vector<24x384xf32> to vector<24x384xbf16>
    %cst_29 = arith.constant dense<0.000000e+00> : vector<24x128xf32>
    %59 = tpu.matmul %58, %57, %cst_29 {dimension_numbers = #tpu.dot_dimension_numbers<[1], [0], [0], [1], [0, 0, 1, 1], [], []>} : vector<24x384xbf16>, vector<384x128xbf16>, vector<24x128xf32> -> vector<24x128xf32>
    %60 = tpu.iota {dimensions = array<i32: 0>} : vector<24x1xi32>
    %c6_i32 = arith.constant 6 : i32
    %c0_i32 = arith.constant 0 : i32
    %61 = arith.cmpi eq, %c6_i32, %c0_i32 : i32
    %c1_i32_30 = arith.constant 1 : i32
    %62 = arith.select %61, %c1_i32_30, %c6_i32 : i32
    %63 = vector.broadcast %62 : i32 to vector<24x1xi32>
    %64 = arith.remsi %60, %63 : vector<24x1xi32>
    %c0_i32_31 = arith.constant 0 : i32
    %65 = vector.broadcast %c0_i32_31 : i32 to vector<24x1xi32>
    %66 = arith.cmpi ne, %64, %65 : vector<24x1xi32>
    %c0_i32_32 = arith.constant 0 : i32
    %67 = vector.broadcast %c0_i32_32 : i32 to vector<24x1xi32>
    %68 = arith.cmpi slt, %64, %67 : vector<24x1xi32>
    %c0_i32_33 = arith.constant 0 : i32
    %69 = arith.cmpi slt, %62, %c0_i32_33 : i32
    %70 = vector.broadcast %69 : i1 to vector<24x1xi1>
    %71 = vector.broadcast %70 : vector<24x1xi1> to vector<24x1xi1>
    %72 = arith.xori %68, %71 : vector<24x1xi1>
    %73 = arith.andi %72, %66 : vector<24x1xi1>
    %74 = vector.broadcast %62 : i32 to vector<24x1xi32>
    %75 = arith.addi %64, %74 : vector<24x1xi32>
    %76 = arith.select %73, %75, %64 : vector<24x1xi1>, vector<24x1xi32>
    %c0_i32_34 = arith.constant 0 : i32
    %77 = vector.broadcast %c0_i32_34 : i32 to vector<24x1xi32>
    %78 = arith.cmpi ne, %76, %77 : vector<24x1xi32>
    %c5_i32 = arith.constant 5 : i32
    %79 = vector.broadcast %c5_i32 : i32 to vector<24x1xi32>
    %80 = arith.cmpi ne, %76, %79 : vector<24x1xi32>
    %81 = arith.andi %78, %80 : vector<24x1xi1>
    %82 = arith.extui %81 : vector<24x1xi1> to vector<24x1xi32>
    %83 = arith.sitofp %82 : vector<24x1xi32> to vector<24x1xf32>
    %84 = vector.broadcast %83 : vector<24x1xf32> to vector<24x128xf32>
    %85 = arith.mulf %59, %84 : vector<24x128xf32>
    %86 = arith.addf %53, %85 : vector<24x128xf32>
    %cst_35 = arith.constant 0.000000e+00 : f32
    %87 = vector.broadcast %cst_35 : f32 to vector<24x128xf32>
    %88 = arith.maximumf %86, %87 : vector<24x128xf32>
    %c88 = arith.constant 88 : index
    %c0_36 = arith.constant 0 : index
    %89 = vector.load %arg4[%c88, %c0_36] : memref<488x256xf32, #tpu.memory_space<vmem>>, vector<24x128xf32>
    %c1408 = arith.constant 1408 : index
    %c0_37 = arith.constant 0 : index
    %90 = vector.load %arg3[%c1408, %c0_37] : memref<4608x256xbf16, #tpu.memory_space<vmem>>, vector<128x128xbf16>
    %91 = arith.truncf %88 : vector<24x128xf32> to vector<24x128xbf16>
    %cst_38 = arith.constant dense<0.000000e+00> : vector<24x128xf32>
    %92 = tpu.matmul %91, %90, %cst_38 {dimension_numbers = #tpu.dot_dimension_numbers<[1], [0], [0], [1], [0, 0, 1, 1], [], []>} : vector<24x128xbf16>, vector<128x128xbf16>, vector<24x128xf32> -> vector<24x128xf32>
    %93 = vector.broadcast %83 : vector<24x1xf32> to vector<24x128xf32>
    %94 = arith.mulf %92, %93 : vector<24x128xf32>
    %95 = arith.addf %89, %94 : vector<24x128xf32>
    %96 = arith.addf %95, %50 : vector<24x128xf32>
    %cst_39 = arith.constant 0.000000e+00 : f32
    %97 = vector.broadcast %cst_39 : f32 to vector<24x128xf32>
    %98 = arith.maximumf %96, %97 : vector<24x128xf32>
    %c112 = arith.constant 112 : index
    %c0_40 = arith.constant 0 : index
    %99 = vector.load %arg4[%c112, %c0_40] : memref<488x256xf32, #tpu.memory_space<vmem>>, vector<24x128xf32>
    %c1_i32_41 = arith.constant 1 : i32
    %100 = tpu.dynamic_rotate %98 by %c1_i32_41 dim 0 : vector<24x128xf32>, i32 -> vector<24x128xf32>
    %c23_i32_42 = arith.constant 23 : i32
    %101 = tpu.dynamic_rotate %98 by %c23_i32_42 dim 0 : vector<24x128xf32>, i32 -> vector<24x128xf32>
    %102 = tpu.concatenate %100, %98, %101 in 1 : vector<24x128xf32>, vector<24x128xf32>, vector<24x128xf32> -> vector<24x384xf32>
    %c1536 = arith.constant 1536 : index
    %c0_43 = arith.constant 0 : index
    %103 = vector.load %arg3[%c1536, %c0_43] : memref<4608x256xbf16, #tpu.memory_space<vmem>>, vector<384x128xbf16>
    %104 = arith.truncf %102 : vector<24x384xf32> to vector<24x384xbf16>
    %cst_44 = arith.constant dense<0.000000e+00> : vector<24x128xf32>
    %105 = tpu.matmul %104, %103, %cst_44 {dimension_numbers = #tpu.dot_dimension_numbers<[1], [0], [0], [1], [0, 0, 1, 1], [], []>} : vector<24x384xbf16>, vector<384x128xbf16>, vector<24x128xf32> -> vector<24x128xf32>
    %106 = vector.broadcast %83 : vector<24x1xf32> to vector<24x128xf32>
    %107 = arith.mulf %105, %106 : vector<24x128xf32>
    %108 = arith.addf %99, %107 : vector<24x128xf32>
    %cst_45 = arith.constant 0.000000e+00 : f32
    %109 = vector.broadcast %cst_45 : f32 to vector<24x128xf32>
    %110 = arith.maximumf %108, %109 : vector<24x128xf32>
    %c136 = arith.constant 136 : index
    %c0_46 = arith.constant 0 : index
    %111 = vector.load %arg4[%c136, %c0_46] : memref<488x256xf32, #tpu.memory_space<vmem>>, vector<24x128xf32>
    %c1920 = arith.constant 1920 : index
    %c0_47 = arith.constant 0 : index
    %112 = vector.load %arg3[%c1920, %c0_47] : memref<4608x256xbf16, #tpu.memory_space<vmem>>, vector<128x128xbf16>
    %113 = arith.truncf %110 : vector<24x128xf32> to vector<24x128xbf16>
    %cst_48 = arith.constant dense<0.000000e+00> : vector<24x128xf32>
    %114 = tpu.matmul %113, %112, %cst_48 {dimension_numbers = #tpu.dot_dimension_numbers<[1], [0], [0], [1], [0, 0, 1, 1], [], []>} : vector<24x128xbf16>, vector<128x128xbf16>, vector<24x128xf32> -> vector<24x128xf32>
    %115 = vector.broadcast %83 : vector<24x1xf32> to vector<24x128xf32>
    %116 = arith.mulf %114, %115 : vector<24x128xf32>
    %117 = arith.addf %111, %116 : vector<24x128xf32>
    %118 = arith.addf %117, %96 : vector<24x128xf32>
    %c160_49 = arith.constant 160 : index
    %c0_50 = arith.constant 0 : index
    %119 = vector.load %arg4[%c160_49, %c0_50] : memref<488x256xf32, #tpu.memory_space<vmem>>, vector<24x128xf32>
    %c2048 = arith.constant 2048 : index
    %c0_51 = arith.constant 0 : index
    %120 = vector.load %arg3[%c2048, %c0_51] : memref<4608x256xbf16, #tpu.memory_space<vmem>>, vector<128x128xbf16>
    %121 = arith.truncf %118 : vector<24x128xf32> to vector<24x128xbf16>
    %cst_52 = arith.constant dense<0.000000e+00> : vector<24x128xf32>
    %122 = tpu.matmul %121, %120, %cst_52 {dimension_numbers = #tpu.dot_dimension_numbers<[1], [0], [0], [1], [0, 0, 1, 1], [], []>} : vector<24x128xbf16>, vector<128x128xbf16>, vector<24x128xf32> -> vector<24x128xf32>
    %123 = vector.broadcast %83 : vector<24x1xf32> to vector<24x128xf32>
    %124 = arith.mulf %122, %123 : vector<24x128xf32>
    %125 = arith.addf %119, %124 : vector<24x128xf32>
    %c184 = arith.constant 184 : index
    %c0_53 = arith.constant 0 : index
    %126 = vector.load %arg4[%c184, %c0_53] : memref<488x256xf32, #tpu.memory_space<vmem>>, vector<24x128xf32>
    %c2176 = arith.constant 2176 : index
    %c0_54 = arith.constant 0 : index
    %127 = vector.load %arg3[%c2176, %c0_54] : memref<4608x256xbf16, #tpu.memory_space<vmem>>, vector<128x128xbf16>
    %128 = arith.truncf %125 : vector<24x128xf32> to vector<24x128xbf16>
    %cst_55 = arith.constant dense<0.000000e+00> : vector<24x128xf32>
    %129 = tpu.matmul %128, %127, %cst_55 {dimension_numbers = #tpu.dot_dimension_numbers<[1], [0], [0], [1], [0, 0, 1, 1], [], []>} : vector<24x128xbf16>, vector<128x128xbf16>, vector<24x128xf32> -> vector<24x128xf32>
    %130 = vector.broadcast %83 : vector<24x1xf32> to vector<24x128xf32>
    %131 = arith.mulf %129, %130 : vector<24x128xf32>
    %132 = arith.addf %126, %131 : vector<24x128xf32>
    %cst_56 = arith.constant 0.000000e+00 : f32
    %133 = vector.broadcast %cst_56 : f32 to vector<24x128xf32>
    %134 = arith.maximumf %132, %133 : vector<24x128xf32>
    %c208 = arith.constant 208 : index
    %c0_57 = arith.constant 0 : index
    %135 = vector.load %arg4[%c208, %c0_57] : memref<488x256xf32, #tpu.memory_space<vmem>>, vector<24x128xf32>
    %c1_i32_58 = arith.constant 1 : i32
    %136 = tpu.dynamic_rotate %134 by %c1_i32_58 dim 0 : vector<24x128xf32>, i32 -> vector<24x128xf32>
    %c23_i32_59 = arith.constant 23 : i32
    %137 = tpu.dynamic_rotate %134 by %c23_i32_59 dim 0 : vector<24x128xf32>, i32 -> vector<24x128xf32>
    %138 = tpu.concatenate %136, %134, %137 in 1 : vector<24x128xf32>, vector<24x128xf32>, vector<24x128xf32> -> vector<24x384xf32>
    %c2304 = arith.constant 2304 : index
    %c0_60 = arith.constant 0 : index
    %139 = vector.load %arg3[%c2304, %c0_60] : memref<4608x256xbf16, #tpu.memory_space<vmem>>, vector<384x128xbf16>
    %140 = arith.truncf %138 : vector<24x384xf32> to vector<24x384xbf16>
    %cst_61 = arith.constant dense<0.000000e+00> : vector<24x128xf32>
    %141 = tpu.matmul %140, %139, %cst_61 {dimension_numbers = #tpu.dot_dimension_numbers<[1], [0], [0], [1], [0, 0, 1, 1], [], []>} : vector<24x384xbf16>, vector<384x128xbf16>, vector<24x128xf32> -> vector<24x128xf32>
    %142 = vector.broadcast %83 : vector<24x1xf32> to vector<24x128xf32>
    %143 = arith.mulf %141, %142 : vector<24x128xf32>
    %144 = arith.addf %135, %143 : vector<24x128xf32>
    %cst_62 = arith.constant 0.000000e+00 : f32
    %145 = vector.broadcast %cst_62 : f32 to vector<24x128xf32>
    %146 = arith.maximumf %144, %145 : vector<24x128xf32>
    %c232 = arith.constant 232 : index
    %c0_63 = arith.constant 0 : index
    %147 = vector.load %arg4[%c232, %c0_63] : memref<488x256xf32, #tpu.memory_space<vmem>>, vector<24x128xf32>
    %c2688 = arith.constant 2688 : index
    %c0_64 = arith.constant 0 : index
    %148 = vector.load %arg3[%c2688, %c0_64] : memref<4608x256xbf16, #tpu.memory_space<vmem>>, vector<128x128xbf16>
    %149 = arith.truncf %146 : vector<24x128xf32> to vector<24x128xbf16>
    %cst_65 = arith.constant dense<0.000000e+00> : vector<24x128xf32>
    %150 = tpu.matmul %149, %148, %cst_65 {dimension_numbers = #tpu.dot_dimension_numbers<[1], [0], [0], [1], [0, 0, 1, 1], [], []>} : vector<24x128xbf16>, vector<128x128xbf16>, vector<24x128xf32> -> vector<24x128xf32>
    %151 = vector.broadcast %83 : vector<24x1xf32> to vector<24x128xf32>
    %152 = arith.mulf %150, %151 : vector<24x128xf32>
    %153 = arith.addf %147, %152 : vector<24x128xf32>
    %154 = arith.addf %153, %132 : vector<24x128xf32>
    %cst_66 = arith.constant 0.000000e+00 : f32
    %155 = vector.broadcast %cst_66 : f32 to vector<24x128xf32>
    %156 = arith.maximumf %154, %155 : vector<24x128xf32>
    %c256_67 = arith.constant 256 : index
    %c0_68 = arith.constant 0 : index
    %157 = vector.load %arg4[%c256_67, %c0_68] : memref<488x256xf32, #tpu.memory_space<vmem>>, vector<24x128xf32>
    %c1_i32_69 = arith.constant 1 : i32
    %158 = tpu.dynamic_rotate %156 by %c1_i32_69 dim 0 : vector<24x128xf32>, i32 -> vector<24x128xf32>
    %c23_i32_70 = arith.constant 23 : i32
    %159 = tpu.dynamic_rotate %156 by %c23_i32_70 dim 0 : vector<24x128xf32>, i32 -> vector<24x128xf32>
    %160 = tpu.concatenate %158, %156, %159 in 1 : vector<24x128xf32>, vector<24x128xf32>, vector<24x128xf32> -> vector<24x384xf32>
    %c2816 = arith.constant 2816 : index
    %c0_71 = arith.constant 0 : index
    %161 = vector.load %arg3[%c2816, %c0_71] : memref<4608x256xbf16, #tpu.memory_space<vmem>>, vector<384x128xbf16>
    %162 = arith.truncf %160 : vector<24x384xf32> to vector<24x384xbf16>
    %cst_72 = arith.constant dense<0.000000e+00> : vector<24x128xf32>
    %163 = tpu.matmul %162, %161, %cst_72 {dimension_numbers = #tpu.dot_dimension_numbers<[1], [0], [0], [1], [0, 0, 1, 1], [], []>} : vector<24x384xbf16>, vector<384x128xbf16>, vector<24x128xf32> -> vector<24x128xf32>
    %164 = vector.broadcast %83 : vector<24x1xf32> to vector<24x128xf32>
    %165 = arith.mulf %163, %164 : vector<24x128xf32>
    %166 = arith.addf %157, %165 : vector<24x128xf32>
    %cst_73 = arith.constant 0.000000e+00 : f32
    %167 = vector.broadcast %cst_73 : f32 to vector<24x128xf32>
    %168 = arith.maximumf %166, %167 : vector<24x128xf32>
    %c280 = arith.constant 280 : index
    %c0_74 = arith.constant 0 : index
    %169 = vector.load %arg4[%c280, %c0_74] : memref<488x256xf32, #tpu.memory_space<vmem>>, vector<24x128xf32>
    %c3200 = arith.constant 3200 : index
    %c0_75 = arith.constant 0 : index
    %170 = vector.load %arg3[%c3200, %c0_75] : memref<4608x256xbf16, #tpu.memory_space<vmem>>, vector<128x128xbf16>
    %171 = arith.truncf %168 : vector<24x128xf32> to vector<24x128xbf16>
    %cst_76 = arith.constant dense<0.000000e+00> : vector<24x128xf32>
    %172 = tpu.matmul %171, %170, %cst_76 {dimension_numbers = #tpu.dot_dimension_numbers<[1], [0], [0], [1], [0, 0, 1, 1], [], []>} : vector<24x128xbf16>, vector<128x128xbf16>, vector<24x128xf32> -> vector<24x128xf32>
    %173 = vector.broadcast %83 : vector<24x1xf32> to vector<24x128xf32>
    %174 = arith.mulf %172, %173 : vector<24x128xf32>
    %175 = arith.addf %169, %174 : vector<24x128xf32>
    %176 = arith.addf %175, %154 : vector<24x128xf32>
    %c304 = arith.constant 304 : index
    %c0_77 = arith.constant 0 : index
    %177 = vector.load %arg4[%c304, %c0_77] : memref<488x256xf32, #tpu.memory_space<vmem>>, vector<40x128xf32>
    %c256_78 = arith.constant 256 : index
    %c0_79 = arith.constant 0 : index
    %178 = vector.load %arg2[%c256_78, %c0_79] : memref<704x128xbf16, #tpu.memory_space<vmem>>, vector<160x24xbf16>
    %179 = arith.truncf %176 : vector<24x128xf32> to vector<24x128xbf16>
    %cst_80 = arith.constant dense<0.000000e+00> : vector<160x128xf32>
    %180 = tpu.matmul %178, %179, %cst_80 {dimension_numbers = #tpu.dot_dimension_numbers<[1], [0], [0], [1], [0, 0, 1, 1], [], []>} : vector<160x24xbf16>, vector<24x128xbf16>, vector<160x128xf32> -> vector<160x128xf32>
    %181 = vector.extract_strided_slice %180 {offsets = [0, 0], sizes = [40, 128], strides = [1, 1]} : vector<160x128xf32> to vector<40x128xf32>
    %182 = arith.truncf %181 : vector<40x128xf32> to vector<40x128xbf16>
    %c3328 = arith.constant 3328 : index
    %c0_81 = arith.constant 0 : index
    %183 = vector.load %arg3[%c3328, %c0_81] : memref<4608x256xbf16, #tpu.memory_space<vmem>>, vector<128x128xbf16>
    %cst_82 = arith.constant dense<0.000000e+00> : vector<40x128xf32>
    %184 = tpu.matmul %182, %183, %cst_82 {dimension_numbers = #tpu.dot_dimension_numbers<[1], [0], [0], [1], [0, 0, 1, 1], [], []>} : vector<40x128xbf16>, vector<128x128xbf16>, vector<40x128xf32> -> vector<40x128xf32>
    %185 = vector.extract_strided_slice %180 {offsets = [40, 0], sizes = [40, 128], strides = [1, 1]} : vector<160x128xf32> to vector<40x128xf32>
    %186 = arith.truncf %185 : vector<40x128xf32> to vector<40x128xbf16>
    %c3456 = arith.constant 3456 : index
    %c0_83 = arith.constant 0 : index
    %187 = vector.load %arg3[%c3456, %c0_83] : memref<4608x256xbf16, #tpu.memory_space<vmem>>, vector<128x128xbf16>
    %cst_84 = arith.constant dense<0.000000e+00> : vector<40x128xf32>
    %188 = tpu.matmul %186, %187, %cst_84 {dimension_numbers = #tpu.dot_dimension_numbers<[1], [0], [0], [1], [0, 0, 1, 1], [], []>} : vector<40x128xbf16>, vector<128x128xbf16>, vector<40x128xf32> -> vector<40x128xf32>
    %189 = arith.addf %184, %188 : vector<40x128xf32>
    %190 = vector.extract_strided_slice %180 {offsets = [80, 0], sizes = [40, 128], strides = [1, 1]} : vector<160x128xf32> to vector<40x128xf32>
    %191 = arith.truncf %190 : vector<40x128xf32> to vector<40x128xbf16>
    %c3584 = arith.constant 3584 : index
    %c0_85 = arith.constant 0 : index
    %192 = vector.load %arg3[%c3584, %c0_85] : memref<4608x256xbf16, #tpu.memory_space<vmem>>, vector<128x128xbf16>
    %cst_86 = arith.constant dense<0.000000e+00> : vector<40x128xf32>
    %193 = tpu.matmul %191, %192, %cst_86 {dimension_numbers = #tpu.dot_dimension_numbers<[1], [0], [0], [1], [0, 0, 1, 1], [], []>} : vector<40x128xbf16>, vector<128x128xbf16>, vector<40x128xf32> -> vector<40x128xf32>
    %194 = arith.addf %189, %193 : vector<40x128xf32>
    %195 = vector.extract_strided_slice %180 {offsets = [120, 0], sizes = [40, 128], strides = [1, 1]} : vector<160x128xf32> to vector<40x128xf32>
    %196 = arith.truncf %195 : vector<40x128xf32> to vector<40x128xbf16>
    %c3712 = arith.constant 3712 : index
    %c0_87 = arith.constant 0 : index
    %197 = vector.load %arg3[%c3712, %c0_87] : memref<4608x256xbf16, #tpu.memory_space<vmem>>, vector<128x128xbf16>
    %cst_88 = arith.constant dense<0.000000e+00> : vector<40x128xf32>
    %198 = tpu.matmul %196, %197, %cst_88 {dimension_numbers = #tpu.dot_dimension_numbers<[1], [0], [0], [1], [0, 0, 1, 1], [], []>} : vector<40x128xbf16>, vector<128x128xbf16>, vector<40x128xf32> -> vector<40x128xf32>
    %199 = arith.addf %194, %198 : vector<40x128xf32>
    %200 = arith.addf %177, %199 : vector<40x128xf32>
    %cst_89 = arith.constant 0.000000e+00 : f32
    %201 = vector.broadcast %cst_89 : f32 to vector<40x128xf32>
    %202 = arith.maximumf %200, %201 : vector<40x128xf32>
    %c344 = arith.constant 344 : index
    %c0_90 = arith.constant 0 : index
    %203 = vector.load %arg4[%c344, %c0_90] : memref<488x256xf32, #tpu.memory_space<vmem>>, vector<72x256xf32>
    %c416 = arith.constant 416 : index
    %c0_91 = arith.constant 0 : index
    %204 = vector.load %arg2[%c416, %c0_91] : memref<704x128xbf16, #tpu.memory_space<vmem>>, vector<288x40xbf16>
    %205 = arith.truncf %202 : vector<40x128xf32> to vector<40x128xbf16>
    %cst_92 = arith.constant dense<0.000000e+00> : vector<288x128xf32>
    %206 = tpu.matmul %204, %205, %cst_92 {dimension_numbers = #tpu.dot_dimension_numbers<[1], [0], [0], [1], [0, 0, 1, 1], [], []>} : vector<288x40xbf16>, vector<40x128xbf16>, vector<288x128xf32> -> vector<288x128xf32>
    %207 = vector.extract_strided_slice %206 {offsets = [0, 0], sizes = [72, 128], strides = [1, 1]} : vector<288x128xf32> to vector<72x128xf32>
    %208 = arith.truncf %207 : vector<72x128xf32> to vector<72x128xbf16>
    %c3840 = arith.constant 3840 : index
    %c0_93 = arith.constant 0 : index
    %209 = vector.load %arg3[%c3840, %c0_93] : memref<4608x256xbf16, #tpu.memory_space<vmem>>, vector<128x256xbf16>
    %cst_94 = arith.constant dense<0.000000e+00> : vector<72x256xf32>
    %210 = tpu.matmul %208, %209, %cst_94 {dimension_numbers = #tpu.dot_dimension_numbers<[1], [0], [0], [1], [0, 0, 1, 1], [], []>} : vector<72x128xbf16>, vector<128x256xbf16>, vector<72x256xf32> -> vector<72x256xf32>
    %211 = vector.extract_strided_slice %206 {offsets = [72, 0], sizes = [72, 128], strides = [1, 1]} : vector<288x128xf32> to vector<72x128xf32>
    %212 = arith.truncf %211 : vector<72x128xf32> to vector<72x128xbf16>
    %c3968 = arith.constant 3968 : index
    %c0_95 = arith.constant 0 : index
    %213 = vector.load %arg3[%c3968, %c0_95] : memref<4608x256xbf16, #tpu.memory_space<vmem>>, vector<128x256xbf16>
    %cst_96 = arith.constant dense<0.000000e+00> : vector<72x256xf32>
    %214 = tpu.matmul %212, %213, %cst_96 {dimension_numbers = #tpu.dot_dimension_numbers<[1], [0], [0], [1], [0, 0, 1, 1], [], []>} : vector<72x128xbf16>, vector<128x256xbf16>, vector<72x256xf32> -> vector<72x256xf32>
    %215 = arith.addf %210, %214 : vector<72x256xf32>
    %216 = vector.extract_strided_slice %206 {offsets = [144, 0], sizes = [72, 128], strides = [1, 1]} : vector<288x128xf32> to vector<72x128xf32>
    %217 = arith.truncf %216 : vector<72x128xf32> to vector<72x128xbf16>
    %c4096 = arith.constant 4096 : index
    %c0_97 = arith.constant 0 : index
    %218 = vector.load %arg3[%c4096, %c0_97] : memref<4608x256xbf16, #tpu.memory_space<vmem>>, vector<128x256xbf16>
    %cst_98 = arith.constant dense<0.000000e+00> : vector<72x256xf32>
    %219 = tpu.matmul %217, %218, %cst_98 {dimension_numbers = #tpu.dot_dimension_numbers<[1], [0], [0], [1], [0, 0, 1, 1], [], []>} : vector<72x128xbf16>, vector<128x256xbf16>, vector<72x256xf32> -> vector<72x256xf32>
    %220 = arith.addf %215, %219 : vector<72x256xf32>
    %221 = vector.extract_strided_slice %206 {offsets = [216, 0], sizes = [72, 128], strides = [1, 1]} : vector<288x128xf32> to vector<72x128xf32>
    %222 = arith.truncf %221 : vector<72x128xf32> to vector<72x128xbf16>
    %c4224 = arith.constant 4224 : index
    %c0_99 = arith.constant 0 : index
    %223 = vector.load %arg3[%c4224, %c0_99] : memref<4608x256xbf16, #tpu.memory_space<vmem>>, vector<128x256xbf16>
    %cst_100 = arith.constant dense<0.000000e+00> : vector<72x256xf32>
    %224 = tpu.matmul %222, %223, %cst_100 {dimension_numbers = #tpu.dot_dimension_numbers<[1], [0], [0], [1], [0, 0, 1, 1], [], []>} : vector<72x128xbf16>, vector<128x256xbf16>, vector<72x256xf32> -> vector<72x256xf32>
    %225 = arith.addf %220, %224 : vector<72x256xf32>
    %226 = arith.addf %203, %225 : vector<72x256xf32>
    %cst_101 = arith.constant 0.000000e+00 : f32
    %227 = vector.broadcast %cst_101 : f32 to vector<72x256xf32>
    %228 = arith.maximumf %226, %227 : vector<72x256xf32>
    %c416_102 = arith.constant 416 : index
    %c0_103 = arith.constant 0 : index
    %229 = vector.load %arg4[%c416_102, %c0_103] : memref<488x256xf32, #tpu.memory_space<vmem>>, vector<72x128xf32>
    %c4352 = arith.constant 4352 : index
    %c0_104 = arith.constant 0 : index
    %230 = vector.load %arg3[%c4352, %c0_104] : memref<4608x256xbf16, #tpu.memory_space<vmem>>, vector<256x128xbf16>
    %231 = arith.truncf %228 : vector<72x256xf32> to vector<72x256xbf16>
    %cst_105 = arith.constant dense<0.000000e+00> : vector<72x128xf32>
    %232 = tpu.matmul %231, %230, %cst_105 {dimension_numbers = #tpu.dot_dimension_numbers<[1], [0], [0], [1], [0, 0, 1, 1], [], []>} : vector<72x256xbf16>, vector<256x128xbf16>, vector<72x128xf32> -> vector<72x128xf32>
    %233 = tpu.iota {dimensions = array<i32: 0>} : vector<72x1xi32>
    %c18_i32 = arith.constant 18 : i32
    %c0_i32_106 = arith.constant 0 : i32
    %234 = arith.cmpi eq, %c18_i32, %c0_i32_106 : i32
    %c1_i32_107 = arith.constant 1 : i32
    %235 = arith.select %234, %c1_i32_107, %c18_i32 : i32
    %236 = vector.broadcast %235 : i32 to vector<72x1xi32>
    %237 = arith.remsi %233, %236 : vector<72x1xi32>
    %c0_i32_108 = arith.constant 0 : i32
    %238 = vector.broadcast %c0_i32_108 : i32 to vector<72x1xi32>
    %239 = arith.cmpi ne, %237, %238 : vector<72x1xi32>
    %c0_i32_109 = arith.constant 0 : i32
    %240 = vector.broadcast %c0_i32_109 : i32 to vector<72x1xi32>
    %241 = arith.cmpi slt, %237, %240 : vector<72x1xi32>
    %c0_i32_110 = arith.constant 0 : i32
    %242 = arith.cmpi slt, %235, %c0_i32_110 : i32
    %243 = vector.broadcast %242 : i1 to vector<72x1xi1>
    %244 = vector.broadcast %243 : vector<72x1xi1> to vector<72x1xi1>
    %245 = arith.xori %241, %244 : vector<72x1xi1>
    %246 = arith.andi %245, %239 : vector<72x1xi1>
    %247 = vector.broadcast %235 : i32 to vector<72x1xi32>
    %248 = arith.addi %237, %247 : vector<72x1xi32>
    %249 = arith.select %246, %248, %237 : vector<72x1xi1>, vector<72x1xi32>
    %c0_i32_111 = arith.constant 0 : i32
    %250 = vector.broadcast %c0_i32_111 : i32 to vector<72x1xi32>
    %251 = arith.cmpi ne, %249, %250 : vector<72x1xi32>
    %c17_i32 = arith.constant 17 : i32
    %252 = vector.broadcast %c17_i32 : i32 to vector<72x1xi32>
    %253 = arith.cmpi ne, %249, %252 : vector<72x1xi32>
    %254 = arith.andi %251, %253 : vector<72x1xi1>
    %255 = arith.extui %254 : vector<72x1xi1> to vector<72x1xi32>
    %256 = arith.sitofp %255 : vector<72x1xi32> to vector<72x1xf32>
    %257 = vector.broadcast %256 : vector<72x1xf32> to vector<72x128xf32>
    %258 = arith.mulf %232, %257 : vector<72x128xf32>
    %259 = arith.addf %229, %258 : vector<72x128xf32>
    %c0_112 = arith.constant 0 : index
    %c0_113 = arith.constant 0 : index
    %260 = vector.load %arg6[%c0_112, %c0_113] : memref<72x128xf32, #tpu.memory_space<vmem>>, vector<72x128xf32>
    tpu.vector_store %arg6[%c0_112, %c0_113], %259 {strides = array<i32>} : memref<72x128xf32, #tpu.memory_space<vmem>>, vector<72x128xf32>,
    %c0_114 = arith.constant 0 : index
    %c0_115 = arith.constant 0 : index
    %261 = vector.load %arg5[%c0_114, %c0_115] : memref<128x128xf32, #tpu.memory_space<vmem>>, vector<128x128xf32>
    %cst_116 = arith.constant dense<0.000000e+00> : vector<24x128xf32>
    %262 = tpu.matmul %125, %261, %cst_116 {dimension_numbers = #tpu.dot_dimension_numbers<[1], [0], [0], [1], [0, 0, 1, 1], [], []>} : vector<24x128xf32>, vector<128x128xf32>, vector<24x128xf32> -> vector<24x128xf32>
    %263 = arith.mulf %125, %125 : vector<24x128xf32>
    %cst_117 = arith.constant 0.000000e+00 : f32
    %264 = vector.broadcast %cst_117 : f32 to vector<24x1xf32>
    %265 = vector.extract_strided_slice %263 {offsets = [0, 8], sizes = [24, 8], strides = [1, 1]} : vector<24x128xf32> to vector<24x8xf32>
    %cst_118 = arith.constant dense<0.000000e+00> : vector<24xf32>
    %266 = vector.multi_reduction <add>, %265, %cst_118 [1] : vector<24x8xf32> to vector<24xf32>
    %267 = vector.shape_cast %266 : vector<24xf32> to vector<24x1xf32>
    %268 = vector.extract_strided_slice %262 {offsets = [0, 0], sizes = [24, 16], strides = [1, 1]} : vector<24x128xf32> to vector<24x16xf32>
    %269 = vector.broadcast %267 : vector<24x1xf32> to vector<24x16xf32>
    %270 = arith.addf %269, %268 : vector<24x16xf32>
    %cst_119 = arith.constant dense<0x7F800000> : vector<24xf32>
    %271 = vector.multi_reduction <minimumf>, %270, %cst_119 [1] : vector<24x16xf32> to vector<24xf32>
    %272 = vector.shape_cast %271 : vector<24xf32> to vector<24x1xf32>
    %cst_120 = arith.constant 0.000000e+00 : f32
    %273 = vector.broadcast %cst_120 : f32 to vector<24x1xf32>
    %274 = arith.maximumf %272, %273 : vector<24x1xf32>
    %275 = arith.addf %264, %274 : vector<24x1xf32>
    %276 = vector.extract_strided_slice %263 {offsets = [0, 16], sizes = [24, 8], strides = [1, 1]} : vector<24x128xf32> to vector<24x8xf32>
    %cst_121 = arith.constant dense<0.000000e+00> : vector<24xf32>
    %277 = vector.multi_reduction <add>, %276, %cst_121 [1] : vector<24x8xf32> to vector<24xf32>
    %278 = vector.shape_cast %277 : vector<24xf32> to vector<24x1xf32>
    %279 = vector.extract_strided_slice %262 {offsets = [0, 16], sizes = [24, 16], strides = [1, 1]} : vector<24x128xf32> to vector<24x16xf32>
    %280 = vector.broadcast %278 : vector<24x1xf32> to vector<24x16xf32>
    %281 = arith.addf %280, %279 : vector<24x16xf32>
    %cst_122 = arith.constant dense<0x7F800000> : vector<24xf32>
    %282 = vector.multi_reduction <minimumf>, %281, %cst_122 [1] : vector<24x16xf32> to vector<24xf32>
    %283 = vector.shape_cast %282 : vector<24xf32> to vector<24x1xf32>
    %cst_123 = arith.constant 0.000000e+00 : f32
    %284 = vector.broadcast %cst_123 : f32 to vector<24x1xf32>
    %285 = arith.maximumf %283, %284 : vector<24x1xf32>
    %286 = arith.addf %275, %285 : vector<24x1xf32>
    %287 = vector.extract_strided_slice %263 {offsets = [0, 24], sizes = [24, 8], strides = [1, 1]} : vector<24x128xf32> to vector<24x8xf32>
    %cst_124 = arith.constant dense<0.000000e+00> : vector<24xf32>
    %288 = vector.multi_reduction <add>, %287, %cst_124 [1] : vector<24x8xf32> to vector<24xf32>
    %289 = vector.shape_cast %288 : vector<24xf32> to vector<24x1xf32>
    %290 = vector.extract_strided_slice %262 {offsets = [0, 32], sizes = [24, 16], strides = [1, 1]} : vector<24x128xf32> to vector<24x16xf32>
    %291 = vector.broadcast %289 : vector<24x1xf32> to vector<24x16xf32>
    %292 = arith.addf %291, %290 : vector<24x16xf32>
    %cst_125 = arith.constant dense<0x7F800000> : vector<24xf32>
    %293 = vector.multi_reduction <minimumf>, %292, %cst_125 [1] : vector<24x16xf32> to vector<24xf32>
    %294 = vector.shape_cast %293 : vector<24xf32> to vector<24x1xf32>
    %cst_126 = arith.constant 0.000000e+00 : f32
    %295 = vector.broadcast %cst_126 : f32 to vector<24x1xf32>
    %296 = arith.maximumf %294, %295 : vector<24x1xf32>
    %297 = arith.addf %286, %296 : vector<24x1xf32>
    %298 = vector.extract_strided_slice %263 {offsets = [0, 32], sizes = [24, 8], strides = [1, 1]} : vector<24x128xf32> to vector<24x8xf32>
    %cst_127 = arith.constant dense<0.000000e+00> : vector<24xf32>
    %299 = vector.multi_reduction <add>, %298, %cst_127 [1] : vector<24x8xf32> to vector<24xf32>
    %300 = vector.shape_cast %299 : vector<24xf32> to vector<24x1xf32>
    %301 = vector.extract_strided_slice %262 {offsets = [0, 48], sizes = [24, 16], strides = [1, 1]} : vector<24x128xf32> to vector<24x16xf32>
    %302 = vector.broadcast %300 : vector<24x1xf32> to vector<24x16xf32>
    %303 = arith.addf %302, %301 : vector<24x16xf32>
    %cst_128 = arith.constant dense<0x7F800000> : vector<24xf32>
    %304 = vector.multi_reduction <minimumf>, %303, %cst_128 [1] : vector<24x16xf32> to vector<24xf32>
    %305 = vector.shape_cast %304 : vector<24xf32> to vector<24x1xf32>
    %cst_129 = arith.constant 0.000000e+00 : f32
    %306 = vector.broadcast %cst_129 : f32 to vector<24x1xf32>
    %307 = arith.maximumf %305, %306 : vector<24x1xf32>
    %308 = arith.addf %297, %307 : vector<24x1xf32>
    %309 = vector.shape_cast %308 : vector<24x1xf32> to vector<1x24x1xf32>
    %cst_130 = arith.constant dense<0.000000e+00> : vector<1xf32>
    %310 = vector.multi_reduction <add>, %309, %cst_130 [1, 2] : vector<1x24x1xf32> to vector<1xf32>
    %311 = vector.shape_cast %310 : vector<1xf32> to vector<1x1x1xf32>
    %312 = vector.extract %311[0, 0, 0] : f32 from vector<1x1x1xf32>
    %cst_131 = arith.constant 2.44140625E-4 : f32
    %313 = arith.mulf %cst_131, %312 : f32
    %cst_132 = arith.constant 0.000000e+00 : f32
    %314 = vector.broadcast %cst_132 : f32 to vector<8x128xf32>
    %315 = vector.broadcast %313 : f32 to vector<8x128xf32>
    %316 = arith.addf %314, %315 : vector<8x128xf32>
    %c0_133 = arith.constant 0 : index
    %c0_134 = arith.constant 0 : index
    %317 = vector.load %arg7[%c0_133, %c0_134] : memref<8x128xf32, #tpu.memory_space<vmem>>, vector<8x128xf32>
    tpu.vector_store %arg7[%c0_133, %c0_134], %316 {strides = array<i32>} : memref<8x128xf32, #tpu.memory_space<vmem>>, vector<8x128xf32>,
    return
  }
  func.func @transform_0(%arg0: i32) -> (i32, i32) {
    %c0_i32 = arith.constant 0 : i32
    %c0_i32_0 = arith.constant 0 : i32
    return %arg0, %c0_i32 : i32, i32
  }
  func.func @transform_1(%arg0: i32) -> (i32, i32) {
    %c0_i32 = arith.constant 0 : i32
    %c0_i32_0 = arith.constant 0 : i32
    %c0_i32_1 = arith.constant 0 : i32
    return %c0_i32, %c0_i32_0 : i32, i32
  }
  func.func @transform_2(%arg0: i32) -> (i32, i32) {
    %c0_i32 = arith.constant 0 : i32
    %c0_i32_0 = arith.constant 0 : i32
    %c0_i32_1 = arith.constant 0 : i32
    return %c0_i32, %c0_i32_0 : i32, i32
  }
  func.func @transform_3(%arg0: i32) -> (i32, i32) {
    %c0_i32 = arith.constant 0 : i32
    %c0_i32_0 = arith.constant 0 : i32
    %c0_i32_1 = arith.constant 0 : i32
    return %c0_i32, %c0_i32_0 : i32, i32
  }
  func.func @transform_4(%arg0: i32) -> (i32, i32) {
    %c0_i32 = arith.constant 0 : i32
    %c0_i32_0 = arith.constant 0 : i32
    %c0_i32_1 = arith.constant 0 : i32
    return %c0_i32, %c0_i32_0 : i32, i32
  }
  func.func @transform_5(%arg0: i32) -> (i32, i32) {
    %c0_i32 = arith.constant 0 : i32
    %c0_i32_0 = arith.constant 0 : i32
    return %arg0, %c0_i32 : i32, i32
  }
  func.func @transform_6(%arg0: i32) -> (i32, i32) {
    %c0_i32 = arith.constant 0 : i32
    %c0_i32_0 = arith.constant 0 : i32
    return %arg0, %c0_i32 : i32, i32
  }
}

</mosaic_0001>

<bundles_post_ra>
// kernel: vqvae_forward.1
= control target key start
LH: loop header
LB: loop body
LE: loop exit
PB: predicated region body
PF: predicated region fallthrough
CT: control target
= control target key end

     0   :  { %12 = vsyncpa [#allocation3], 0  ;;  %s8690_s0 = inlined_call_operand.vmem [shape: f32[144,128], index: 0, kind: input, shape index: {}]   ;;  %s8691_s1 = inlined_call_operand.hbm [shape: bf16[704,128], index: 1, kind: input, shape index: {}]   ;;  %s8692_s2 = inlined_call_operand.hbm [shape: bf16[4608,256], index: 2, kind: input, shape index: {}]   ;;  %s8693_s3 = inlined_call_operand.hbm [shape: f32[488,256], index: 3, kind: input, shape index: {}]   ;;  %s8694_s4 = inlined_call_operand.hbm [shape: f32[128,128], index: 4, kind: input, shape index: {}]   ;;  %s8695_s5 = inlined_call_operand.vmem [shape: f32[144,128], index: 5, kind: output, shape index: {0}]   ;;  %s8696_s6 = inlined_call_operand.vmem [shape: f32[16,128], index: 6, kind: output, shape index: {1}]  }
   0x1   :  { %13 = vsyncpa [#allocation5], 0 }
   0x2   :  { %14 = vsyncpa [#allocation8], 0  ;;  %s7874_s21 = smov 0  }
   0x3 LB: > { %s212_s24 = sshll.u32 %s8692_s2, 4  ;;  %s7883_s25 = sadd.s32 4294967295, %s7821_s21   ;;  %s7821_s21 = sphi %s7874_s21, %s20_s21   ;;  %s213_s24 = int_to_ptr.hbm [resolvable:$true] %s212_s24 }
   0x4   : > { %p5696_p0 = scmp.ge.s32.totalorder %s7821_s21, 1  ;;  %p187_p1 = scmp.lt.s32.totalorder %s7821_s21, 3 }
   0x5   : > { %p7651_p2 = scmp.eq.s32.totalorder %s7883_s25, 0  ;;  %s7823_s27 = smov [#allocation4]  }
   0x6   : > { %p7888_p3 = pnand %p5696_p0, %p187_p1  ;;  %s214_s28 = sshll.u32 %s7823_s27, 4  ;;  %s215_s28 = int_to_ptr.vmem [resolvable:$true] %s214_s28 }
   0x7   : > { %s198_s7 = sshll.u32 %s8691_s1, 4  ;;  %s7824_s9 = smov [#allocation2]   ;;  %s199_s7 = int_to_ptr.hbm [resolvable:$true] %s198_s7 }
   0x8   : > { %p7638_p4 = pneg %p7888_p3  ;;  %s200_s10 = sshll.u32 %s7824_s9, 4  ;;  %s201_s10 = int_to_ptr.vmem [resolvable:$true] %s200_s10 }
   0x9   : > { %s7825_s11 = smov 128   ;;  %s7826_s12 = smov 8  }
   0xa   : > { %p7899_p5 = pnand %p7651_p2, %p7638_p4  ;;  %s226_s15 = sshll.u32 %s8693_s3, 4  ;;  %s227_s15 = int_to_ptr.hbm [resolvable:$true] %s226_s15 }
   0xb   : > { %s7827_s16 = smov 64   ;;  %s7828_s17 = smov 4  }
   0xc   : > { %7644 = dma.hbm_to_vmem [thread:$0]  (!%p7899_p5), %s213_s24, 73728, %s215_s28, [#allocation5], %s7825_s11, %s7825_s11, %s7826_s12  }
   0xd   : > { %7641 = dma.hbm_to_vmem [thread:$0]  (!%p7899_p5), %s199_s7, 5632, %s201_s10, [#allocation3], %s7827_s16, %s7827_s16, %s7828_s17  }
   0xe   : > { %s7829_s18 = smov [#allocation6]   ;;  %s7830_s20 = smov 256  }
   0xf   : > { %s228_s19 = sshll.u32 %s7829_s18, 4  ;;  %s7831_s22 = smov 16   ;;  %s229_s19 = int_to_ptr.vmem [resolvable:$true] %s228_s19 }
  0x10   : > { %7647 = dma.hbm_to_vmem [thread:$0]  (!%p7899_p5), %s227_s15, 15616, %s229_s19, [#allocation5], %s7830_s20, %s7830_s20, %s7831_s22  }
  0x11   : > { %s240_s24 = sshll.u32 %s8694_s4, 4  ;;  %s7832_s28 = smov [#allocation7]   ;;  %s241_s24 = int_to_ptr.hbm [resolvable:$true] %s240_s24 }
  0x12   : > { %s242_s29 = sshll.u32 %s7832_s28, 4  ;;  %267 = sbr.rel (%p7888_p3) target bundleno = 3893 (0xf35), region = 40  ;;  %s243_s29 = int_to_ptr.vmem [resolvable:$true] %s242_s29 }
  0x13   : > { %7650 = dma.hbm_to_vmem [thread:$0]  (!%p7899_p5), %s241_s24, 2048, %s243_s29, [#allocation8], %s7825_s11, %s7825_s11, %s7826_s12  }
  0x17   : > { %7808 = dma.done.wait (%p7651_p2), [#allocation3], 5632  }
  0x18   : > { %7810 = vsyncadd (%p7651_p2), [#allocation3], 4294961664 }
  0x19   : > { %7812 = dma.done.wait (%p7651_p2), [#allocation5], 89344  }
  0x1a   : > { %7814 = vsyncadd (%p7651_p2), [#allocation5], 4294877952 }
  0x1b   : > { %7816 = dma.done.wait (%p7651_p2), [#allocation8], 2048  }
  0x1c   : > { %7818 = vsyncadd (%p7651_p2), [#allocation8], 4294965248  ;;  %s317_s26 = smul.u32 9, %s7883_s25  ;;  %vm454_vm0 = vcmask 1043456   ;;  %v7224_v15 = vld [vmem:[#allocation2] sm:$0xff]  ;;  %vm423_vm1 = vcmask 588800  }
  0x1d   : > { %v7225_v16 = vld [vmem:[#allocation2 + $0x8] sm:$0xff]  ;;  %v7226_v17 = vld [vmem:[#allocation2 + $0x10] sm:$0xff]  ;;  %v7227_v18 = vld [vmem:[#allocation2 + $0x18] sm:$0xff]  ;;  %vm945_vm2 = vcmask 326656   ;;  %s7835_s10 = smov 112   ;;  %s7836_s11 = smov 120  }
  0x1e   : > { %p318_p6 = scmp.lt.s32.totalorder %s317_s26, 17  ;;  %v7228_v19 = vld [vmem:[#allocation2 + $0x20] sm:$0xff]  ;;  %v7229_v20 = vld [vmem:[#allocation2 + $0x28] sm:$0xff]  ;;  %v7230_v21 = vld [vmem:[#allocation2 + $0x30] sm:$0xff]  ;;  %s7837_s12 = smov 104  }
  0x1f   : > { %v5822_v22 = vld [vmem:[#allocation4 + $0x70] sm:$0xf]  ;;  %v7241_v23 = vld [vmem:[#allocation4 + $0x74] sm:$0xf0]  ;;  %v5818_v25 = vld [vmem:[#allocation4 + $0x60] sm:$0xf] }
  0x20   : > { %s8740_s26 = smov (!%p318_p6, %s317_s26), 17  ;;  %v7947_v24 = vor.u32 %v7241_v23, %v5822_v22  ;;  %v7240_v26 = vld [vmem:[#allocation4 + $0x64] sm:$0xf0]  ;;  %v5814_v28 = vld [vmem:[#allocation4 + $0x50] sm:$0xf]  ;;  %v7231_v34 = vld [vmem:[#allocation2 + $0x38] sm:$0xff] }
  0x21   : > { %s5707_s30 = sshll.u32 %s8740_s26, 3  ;;  %v7951_v27 = vor.u32 %v7240_v26, %v5818_v25  ;;  %v7239_v29 = vld [vmem:[#allocation4 + $0x54] sm:$0xf0]  ;;  %v5810_v31 = vld [vmem:[#allocation4 + $0x40] sm:$0xf]  ;;  %s7838_s13 = smov 96  }
  0x22   : > { %s321_s9 = scalar_lea.vmem %s8690_s0, %s5707_s30  ;;  %7588 = vmatpush.bf16.msra.mxu2 %v7947_v24  ;;  %v7954_v30 = vor.u32 %v7239_v29, %v5814_v28  ;;  %v7238_v32 = vld [vmem:[#allocation4 + $0x44] sm:$0xf0]  ;;  %v5790_v35 = vld [vmem:[#allocation4 + $0xf0] sm:$0xf]  ;;  %v7249_v36 = vld [vmem:[#allocation4 + $0xf4] sm:$0xf0]  ;;  %s8603_s16 = scalar_lea.vmem %s8695_s5, %s5707_s30 }
  0x23   : > { %v342_v0 = vld [vmem:[%s321_s9 + $0x40] sm:$0xff]  ;;  %v340_v2 = vld [vmem:[%s321_s9 + $0x30] sm:$0xff]  ;;  %v341_v3 = vld [vmem:[%s321_s9 + $0x38] sm:$0xff]  ;;  %v7957_v33 = vor.u32 %v7238_v32, %v5810_v31  ;;  %v5791_v38 = vor.u32 %v7249_v36, %v5790_v35  ;;  %p329_p7 = scmp.lt.s32.totalorder %s7883_s25, 1 }
  0x24   : > { %v372_v1 = vpack.c.bf16 %v342_v0, %v342_v0  ;;  %v371_v5 = vpack.c.bf16 %v341_v3, %v340_v2  ;;  %v338_v6 = vld [vmem:[%s321_s9 + $0x20] sm:$0xff]  ;;  %v339_v7 = vld [vmem:[%s321_s9 + $0x28] sm:$0xff]  ;;  %v336_v9 = vld [vmem:[%s321_s9 + $0x10] sm:$0xff] }
  0x25   : > { %v370_v8 = vpack.c.bf16 %v339_v7, %v338_v6  ;;  %v337_v10 = vld [vmem:[%s321_s9 + $0x18] sm:$0xff]  ;;  %v334_v12 = vld [vmem:[%s321_s9] sm:$0xff]  ;;  %v335_v13 = vld [vmem:[%s321_s9 + $0x8] sm:$0xff]  ;;  %603 = vmatpush.bf16.msra.mxu1 %v5791_v38  ;;  %s8742_s25 = smov (!%p329_p7, %s7883_s25), 1 }
  0x26   : > { %v456_v4 = vsel %vm454_vm0, %v372_v1, 0  ;;  %v369_v11 = vpack.c.bf16 %v337_v10, %v336_v9  ;;  %v368_v14 = vpack.c.bf16 %v335_v13, %v334_v12  ;;  %7589 = vmatpush.bf16.msra.mxu2 %v7951_v27  ;;  %v5806_v37 = vld [vmem:[#allocation4 + $0x30] sm:$0xf]  ;;  %v7237_v39 = vld [vmem:[#allocation4 + $0x34] sm:$0xf0]  ;;  %v7232_v58 = vld [vmem:[#allocation2 + $0x40] sm:$0xff] }
  0x27   : > { %461 = vmatpush.bf16.msra.mxu0 %v456_v4  ;;  %v7961_v40 = vor.u32 %v7237_v39, %v5806_v37  ;;  %v5786_v41 = vld [vmem:[#allocation4 + $0xe0] sm:$0xf]  ;;  %v7248_v42 = vld [vmem:[#allocation4 + $0xe4] sm:$0xf0]  ;;  %v5782_v47 = vld [vmem:[#allocation4 + $0xd0] sm:$0xf] }
  0x28   : > { %v5802_v43 = vld [vmem:[#allocation4 + $0x20] sm:$0xf]  ;;  %v5787_v44 = vor.u32 %v7248_v42, %v5786_v41  ;;  %v7236_v45 = vld [vmem:[#allocation4 + $0x24] sm:$0xf0]  ;;  %v7247_v48 = vld [vmem:[#allocation4 + $0xd4] sm:$0xf0] }
  0x29   : > { %v7964_v46 = vor.u32 %v7236_v45, %v5802_v43  ;;  %v5798_v49 = vld [vmem:[#allocation4 + $0x10] sm:$0xf]  ;;  %v5783_v50 = vor.u32 %v7247_v48, %v5782_v47  ;;  %v7235_v51 = vld [vmem:[#allocation4 + $0x14] sm:$0xf0]  ;;  %v5778_v53 = vld [vmem:[#allocation4 + $0xc0] sm:$0xf] }
  0x2a   : > { %7590 = vmatpush.bf16.msra.mxu2 %v7954_v30  ;;  %604 = vmatpush.bf16.msra.mxu1 %v5787_v44  ;;  %v7967_v52 = vor.u32 %v7235_v51, %v5798_v49  ;;  %v7246_v54 = vld [vmem:[#allocation4 + $0xc4] sm:$0xf0]  ;;  %v5794_v55 = vld [vmem:[#allocation4] sm:$0xf]  ;;  %v5774_v61 = vld [vmem:[#allocation4 + $0xb0] sm:$0xf] }
  0x2b   : > { %462 = vmatpush.bf16.msra.mxu0 %v371_v5  ;;  %v5779_v56 = vor.u32 %v7246_v54, %v5778_v53  ;;  %v7234_v57 = vld [vmem:[#allocation4 + $0x4] sm:$0xf0]  ;;  %v7245_v62 = vld [vmem:[#allocation4 + $0xb4] sm:$0xf0]  ;;  %v5854_v0 = vld [vmem:[#allocation4 + $0x170] sm:$0xf] }
  0x2c   : > { %v7970_v59 = vor.u32 %v7234_v57, %v5794_v55  ;;  %v5775_v63 = vor.u32 %v7245_v62, %v5774_v61  ;;  %v7257_v1 = vld [vmem:[#allocation4 + $0x174] sm:$0xf0]  ;;  %v5770_v3 = vld [vmem:[#allocation4 + $0xa0] sm:$0xf]  ;;  %v7244_v4 = vld [vmem:[#allocation4 + $0xa4] sm:$0xf0] }
  0x2d   : > { %v5855_v2 = vor.u32 %v7257_v1, %v5854_v0  ;;  %v5771_v5 = vor.u32 %v7244_v4, %v5770_v3  ;;  %v5766_v7 = vld [vmem:[#allocation4 + $0x90] sm:$0xf]  ;;  %v5762_v10 = vld [vmem:[#allocation4 + $0x80] sm:$0xf]  ;;  %v7233_v13 = vld [vmem:[#allocation2 + $0x48] sm:$0xff]  ;;  %s5709_s17 = sshll.u32 %s8742_s25, 3 }
  0x2e   : > { %7591 = vmatpush.bf16.msra.mxu2 %v7957_v33  ;;  %605 = vmatpush.bf16.msra.mxu1 %v5783_v50  ;;  %v7255_v22 = vld [vmem:[#allocation4 + $0x154] sm:$0xf0]  ;;  %v7254_v25 = vld [vmem:[#allocation4 + $0x144] sm:$0xf0]  ;;  %v5838_v28 = vld [vmem:[#allocation4 + $0x130] sm:$0xf]  ;;  %s332_s22 = scalar_lea.vmem %s8696_s6, %s5709_s17 }
  0x2f   : > { %463 = vmatpush.bf16.msra.mxu0 %v370_v8  ;;  %7596 = vmatpush.bf16.msra.mxu3 %v5855_v2  ;;  %v7243_v8 = vld [vmem:[#allocation4 + $0x94] sm:$0xf0]  ;;  %v5834_v31 = vld [vmem:[#allocation4 + $0x120] sm:$0xf]  ;;  %v7252_v32 = vld [vmem:[#allocation4 + $0x124] sm:$0xf0] }
  0x30   : > { %v5767_v9 = vor.u32 %v7243_v8, %v5766_v7  ;;  %v7253_v29 = vld [vmem:[#allocation4 + $0x134] sm:$0xf0]  ;;  %v5830_v36 = vld [vmem:[#allocation4 + $0x110] sm:$0xf]  ;;  %v5826_v39 = vld [vmem:[#allocation4 + $0x100] sm:$0xf] }
  0x31   : > { %v7251_v37 = vld [vmem:[#allocation4 + $0x114] sm:$0xf0]  ;;  %v5886_v45 = vld [vmem:[#allocation4 + $0x1f0] sm:$0xf]  ;;  %v5882_v48 = vld [vmem:[#allocation4 + $0x1e0] sm:$0xf] }
  0x32   : > { %7592 = vmatpush.bf16.msra.mxu2 %v7961_v40  ;;  %606 = vmatpush.bf16.msra.mxu1 %v5779_v56  ;;  %v5831_v38 = vor.u32 %v7251_v37, %v5830_v36  ;;  %v7264_v49 = vld [vmem:[#allocation4 + $0x1e4] sm:$0xf0]  ;;  %v7263_v53 = vld [vmem:[#allocation4 + $0x1d4] sm:$0xf0]  ;;  %v5874_v55 = vld [vmem:[#allocation4 + $0x1c0] sm:$0xf] }
  0x33   : > { %464 = vmatpush.bf16.msra.mxu0 %v369_v11  ;;  %v7242_v11 = vld [vmem:[#allocation4 + $0x84] sm:$0xf0]  ;;  %v5883_v50 = vor.u32 %v7264_v49, %v5882_v48  ;;  %v5870_v61 = vld [vmem:[#allocation4 + $0x1b0] sm:$0xf]  ;;  %v7261_v62 = vld [vmem:[#allocation4 + $0x1b4] sm:$0xf0] }
  0x34   : > { %v5763_v12 = vor.u32 %v7242_v11, %v5762_v10  ;;  %v7262_v56 = vld [vmem:[#allocation4 + $0x1c4] sm:$0xf0]  ;;  %v5866_v0 = vld [vmem:[#allocation4 + $0x1a0] sm:$0xf]  ;;  %v7259_v7 = vld [vmem:[#allocation4 + $0x194] sm:$0xf0] }
  0x35   : > { %v5875_v57 = vor.u32 %v7262_v56, %v5874_v55  ;;  %v7260_v1 = vld [vmem:[#allocation4 + $0x1a4] sm:$0xf0]  ;;  %v347_v55 = vld [vmem:[#allocation6 + $0x40] sm:$0xff] }
  0x36   : > { %7593 = vmatpush.bf16.msra.mxu2 %v7964_v46  ;;  %607 = vmatpush.bf16.msra.mxu1 %v5775_v63  ;;  %v5871_v63 = vor.u32 %v7261_v62, %v5870_v61  ;;  %v7258_v10 = vld [vmem:[#allocation4 + $0x184] sm:$0xf0] }
  0x37   : > { %465 = vmatpush.bf16.msra.mxu0 %v368_v14 }
  0x3a   : > { %5750 = vmatmul.msk.bf16.vlgmr.msra.gmra.mxu0 %vm423_vm1, %v7224_v15  ;;  %7594 = vmatpush.bf16.msra.mxu2 %v7967_v52 }
  0x3b   : > { %764 = vmatpush.bf16.msrb.mxu0 %v5855_v2  ;;  %608 = vmatpush.bf16.msra.mxu1 %v5771_v5  ;;  %v5867_v2 = vor.u32 %v7260_v1, %v5866_v0  ;;  %v5862_v5 = vld [vmem:[#allocation4 + $0x190] sm:$0xf] }
  0x3c   : > { %v5863_v8 = vor.u32 %v7259_v7, %v5862_v5 }
  0x3e   : > { %7595 = vmatpush.bf16.msra.mxu2 %v7970_v59 }
  0x3f   : > { %609 = vmatpush.bf16.msra.mxu1 %v5767_v9  ;;  %v5858_v9 = vld [vmem:[#allocation4 + $0x180] sm:$0xf] }
  0x40   : > { %v5859_v11 = vor.u32 %v7258_v10, %v5858_v9  ;;  %v343_v9 = vld [vmem:[#allocation6] sm:$0xff] }
  0x43   : > { %610 = vmatpush.bf16.msra.mxu1 %v5763_v12 }
  0x47   : > { %674 = vmatpush.bf16.msrb.mxu1 %v7947_v24  ;;  %v5842_v24 = vld [vmem:[#allocation4 + $0x140] sm:$0xf] }
  0x48   : > { %v5843_v26 = vor.u32 %v7254_v25, %v5842_v24 }
  0x4a   : > { %5751 = vmatmul.msk.bf16.gmra.mxu0 %vm423_vm1, %v7225_v16  ;;  %v5850_v16 = vld [vmem:[#allocation4 + $0x160] sm:$0xf] }
  0x4b   : > { %675 = vmatpush.bf16.msrb.mxu1 %v7951_v27 }
  0x4f   : > { %676 = vmatpush.bf16.msrb.mxu1 %v7954_v30  ;;  %v5839_v30 = vor.u32 %v7253_v29, %v5838_v28 }
  0x53   : > { %677 = vmatpush.bf16.msrb.mxu1 %v7957_v33  ;;  %v5835_v33 = vor.u32 %v7252_v32, %v5834_v31 }
  0x57   : > { %678 = vmatpush.bf16.msrb.mxu1 %v7961_v40  ;;  %v7250_v40 = vld [vmem:[#allocation4 + $0x104] sm:$0xf0] }
  0x58   : > { %v5827_v41 = vor.u32 %v7250_v40, %v5826_v39 }
  0x5a   : > { %5752 = vmatmul.msk.bf16.gmra.mxu0 %vm423_vm1, %v7226_v17  ;;  %v7256_v17 = vld [vmem:[#allocation4 + $0x164] sm:$0xf0] }
  0x5b   : > { %679 = vmatpush.bf16.msrb.mxu1 %v7964_v46  ;;  %v7265_v46 = vld [vmem:[#allocation4 + $0x1f4] sm:$0xf0] }
  0x5c   : > { %v5887_v47 = vor.u32 %v7265_v46, %v5886_v45 }
  0x5f   : > { %680 = vmatpush.bf16.msrb.mxu1 %v7967_v52  ;;  %v5878_v52 = vld [vmem:[#allocation4 + $0x1d0] sm:$0xf] }
  0x60   : > { %v5879_v54 = vor.u32 %v7263_v53, %v5878_v52 }
  0x63   : > { %681 = vmatpush.bf16.msrb.mxu1 %v7970_v59 }
  0x6a   : > { %5753 = vmatmul.msk.bf16.gmra.mxu0 %vm423_vm1, %v7227_v18  ;;  %v5851_v18 = vor.u32 %v7256_v17, %v5850_v16 }
  0x6c   : > { %765 = vmatpush.bf16.msrb.mxu0 %v5851_v18  ;;  %7597 = vmatpush.bf16.msra.mxu3 %v5851_v18 }
  0x7a   : > { %5754 = vmatmul.msk.bf16.gmra.mxu0 %vm423_vm1, %v7228_v19 }
  0x8a   : > { %5755 = vmatmul.msk.bf16.gmra.mxu0 %vm423_vm1, %v7229_v20 }
  0x9a   : > { %5756 = vmatmul.msk.bf16.gmra.mxu0 %vm423_vm1, %v7230_v21  ;;  %v5846_v21 = vld [vmem:[#allocation4 + $0x150] sm:$0xf] }
  0x9b   : > { %v5847_v23 = vor.u32 %v7255_v22, %v5846_v21 }
  0x9d   : > { %766 = vmatpush.bf16.msrb.mxu0 %v5847_v23  ;;  %7598 = vmatpush.bf16.msra.mxu3 %v5847_v23 }
  0xa1   : > { %767 = vmatpush.bf16.msrb.mxu0 %v5843_v26  ;;  %7599 = vmatpush.bf16.msra.mxu3 %v5843_v26 }
  0xa5   : > { %768 = vmatpush.bf16.msrb.mxu0 %v5839_v30  ;;  %7600 = vmatpush.bf16.msra.mxu3 %v5839_v30 }
  0xa9   : > { %769 = vmatpush.bf16.msrb.mxu0 %v5835_v33  ;;  %7601 = vmatpush.bf16.msra.mxu3 %v5835_v33 }
  0xaa   : > { %5757 = vmatmul.msk.bf16.gmra.mxu0 %vm423_vm1, %v7231_v34 }
  0xad   : > { %770 = vmatpush.bf16.msrb.mxu0 %v5831_v38  ;;  %7602 = vmatpush.bf16.msra.mxu3 %v5831_v38 }
  0xb1   : > { %771 = vmatpush.bf16.msrb.mxu0 %v5827_v41  ;;  %7603 = vmatpush.bf16.msra.mxu3 %v5827_v41 }
  0xb7   : > { %v7972_v60 = vpop.f32.mrf.mxu0 }
  0xba   : > { %5758 = vmatmul.msk.bf16.gmra.mxu0 %vm423_vm1, %v7232_v58 }
  0xbf   : > { %v7976_v6 = vpop.f32.mrf.mxu0 }
  0xc7   : > { %v7978_v14 = vpop.f32.mrf.mxu0 }
  0xca   : > { %5759 = vmatmul.msk.bf16.gmra.mxu0 %vm423_vm1, %v7233_v13  ;;  %v517_v13 = vpack.c.bf16 %v7976_v6, %v7972_v60 }
  0xcf   : > { %v7983_v15 = vpop.f32.mrf.mxu0 }
  0xd7   : > { %v477_v19 = vpop.f32.mrf.mxu0 }
  0xd8   : > { %v519_v20 = vpack.c.bf16 %v477_v19, %v477_v19  ;;  %v518_v19 = vpack.c.bf16 %v7983_v15, %v7978_v14 }
  0xda   : > { %692 = vmatmul.bf16.vlgmr.msra.gmra.mxu2 %v519_v20 }
  0xdf   : > { %v479_v27 = vpop.f32.mrf.mxu0 }
  0xe7   : > { %v482_v34 = vpop.f32.mrf.mxu0 }
  0xe8   : > { %v536_v35 = vpack.c.bf16 %v482_v34, %v479_v27 }
  0xea   : > { %611 = vmatmul.bf16.vlgmr.msra.gmra.mxu1 %v536_v35 }
  0xeb   : > { %859 = vmatpush.bf16.msra.mxu1 %v5887_v47 }
  0xef   : > { %v484_v42 = vpop.f32.mrf.mxu0  ;;  %860 = vmatpush.bf16.msra.mxu1 %v5883_v50 }
  0xf3   : > { %861 = vmatpush.bf16.msra.mxu1 %v5879_v54 }
  0xf7   : > { %v487_v43 = vpop.f32.mrf.mxu0  ;;  %862 = vmatpush.bf16.msra.mxu1 %v5875_v57 }
  0xf8   : > { %v537_v44 = vpack.c.bf16 %v487_v43, %v484_v42 }
  0xfa   : > { %616 = vmatmul.bf16.gmra.mxu1 %v537_v44 }
  0xfb   : > { %863 = vmatpush.bf16.msra.mxu1 %v5871_v63  ;;  %v345_v63 = vld [vmem:[#allocation6 + $0x20] sm:$0xff] }
  0xff   : > { %v489_v51 = vpop.f32.mrf.mxu0  ;;  %864 = vmatpush.bf16.msra.mxu1 %v5867_v2 }
 0x100   : > { %v538_v59 = vpack.c.bf16 %v489_v51, %v489_v51 }
 0x103   : > { %865 = vmatpush.bf16.msra.mxu1 %v5863_v8 }
 0x107   : > { %v492_v58 = vpop.f32.mrf.mxu0  ;;  %866 = vmatpush.bf16.msra.mxu1 %v5859_v11 }
 0x10a   : > { %621 = vmatmul.bf16.gmra.mxu1 %v538_v59 }
 0x10f   : > { %v494_v3 = vpop.f32.mrf.mxu0 }
 0x110   : > { %v697_v4 = vpack.c.bf16 %v494_v3, %v492_v58  ;;  %v346_v58 = vld [vmem:[#allocation6 + $0x30] sm:$0xff] }
 0x112   : > { %772 = vmatmul.bf16.vlgmr.msrb.gmra.mxu0 %v697_v4  ;;  %v344_v4 = vld [vmem:[#allocation6 + $0x10] sm:$0xff] }
 0x117   : > { %v497_v12 = vpop.f32.mrf.mxu0 }
 0x11a   : > { %682 = vmatmul.bf16.vlgmr.msrb.gmra.mxu1 %v517_v13 }
 0x11f   : > { %v499_v16 = vpop.f32.mrf.mxu0 }
 0x120   : > { %v698_v17 = vpack.c.bf16 %v499_v16, %v497_v12 }
 0x122   : > { %777 = vmatmul.bf16.vlgmr.msra.gmra.mxu3 %v698_v17 }
 0x127   : > { %v502_v18 = vpop.f32.mrf.mxu0 }
 0x128   : > { %v699_v21 = vpack.c.bf16 %v502_v18, %v502_v18 }
 0x12a   : > { %687 = vmatmul.bf16.gmra.mxu1 %v518_v19 }
 0x12f   : > { %v504_v20 = vpop.f32.mrf.mxu0 }
 0x132   : > { %782 = vmatmul.bf16.gmra.mxu3 %v699_v21 }
 0x137   : > { %v507_v22 = vpop.f32.mrf.mxu0 }
 0x138   : > { %v792_v23 = vpack.c.bf16 %v507_v22, %v504_v20 }
 0x13a   : > { %867 = vmatmul.bf16.vlgmr.msra.gmra.mxu1 %v792_v23  ;;  %v7266_v23 = vld [vmem:[#allocation2 + $0x50] sm:$0xff] }
 0x13f   : > { %v509_v24 = vpop.f32.mrf.mxu0 }
 0x147   : > { %v512_v25 = vpop.f32.mrf.mxu0 }
 0x148   : > { %v793_v26 = vpack.c.bf16 %v512_v25, %v509_v24  ;;  %v7267_v24 = vld [vmem:[#allocation2 + $0x58] sm:$0xff]  ;;  %v7268_v25 = vld [vmem:[#allocation2 + $0x60] sm:$0xff] }
 0x14a   : > { %872 = vmatmul.bf16.gmra.mxu1 %v793_v26  ;;  %v7269_v26 = vld [vmem:[#allocation2 + $0x68] sm:$0xff] }
 0x14f   : > { %v514_v60 = vpop.f32.mrf.mxu0 }
 0x150   : > { %v794_v6 = vpack.c.bf16 %v514_v60, %v514_v60  ;;  %v7270_v60 = vld [vmem:[#allocation2 + $0x70] sm:$0xff] }
 0x15a   : > { %877 = vmatmul.bf16.gmra.mxu1 %v794_v6  ;;  %v7271_v6 = vld [vmem:[#allocation2 + $0x78] sm:$0xff] }
 0x15d   : > { %v693_v27 = vpop.f32.mrf.mxu2 }
 0x165   : > { %v695_v28 = vpop.f32.mrf.mxu2 }
 0x166   : > { %v7287_v28 = vld [vmem:[#allocation4 + $0x2f4] sm:$0xf0] }
 0x167   : > { %v612_v29 = vpop.f32.mrf.mxu1 }
 0x16f   : > { %v614_v30 = vpop.f32.mrf.mxu1 }
 0x177   : > { %v617_v31 = vpop.f32.mrf.mxu1 }
 0x17f   : > { %v619_v14 = vpop.f32.mrf.mxu1 }
 0x187   : > { %v622_v15 = vpop.f32.mrf.mxu1 }
 0x188   : > { %v694_v32 = vadd.f32 %v693_v27, %v622_v15  ;;  %v5948_v27 = vld [vmem:[#allocation4 + $0x2f0] sm:$0xf] }
 0x189   : > { %v5940_v15 = vld [vmem:[#allocation4 + $0x2d0] sm:$0xf] }
 0x18f   : > { %v624_v33 = vpop.f32.mrf.mxu1  ;;  %v773_v46 = vpop.f32.mrf.mxu0 }
 0x197   : > { %v683_v34 = vpop.f32.mrf.mxu1  ;;  %v775_v57 = vpop.f32.mrf.mxu0 }
 0x198   : > { %v684_v35 = vadd.f32 %v683_v34, %v612_v29  ;;  %v5949_v29 = vor.u32 %v7287_v28, %v5948_v27  ;;  %v5936_v34 = vld [vmem:[#allocation4 + $0x2c0] sm:$0xf]  ;;  %v7274_v27 = vld [vmem:[#allocation4 + $0x224] sm:$0xf0] }
 0x199   : > { %v5984_v28 = vld [vmem:[#allocation4 + $0x300] sm:$0xf] }
 0x19a   : > { %v787_v1 = vadd.f32 %v773_v46, %v684_v35  ;;  %1090 = vmatpush.bf16.msrb.mxu3 %v5949_v29  ;;  %v7284_v35 = vld [vmem:[#allocation4 + $0x2c4] sm:$0xf0] }
 0x19f   : > { %v685_v36 = vpop.f32.mrf.mxu1 }
 0x1a0   : > { %v686_v50 = vadd.f32 %v685_v36, %v614_v30  ;;  %v5944_v30 = vld [vmem:[#allocation4 + $0x2e0] sm:$0xf]  ;;  %v5937_v36 = vor.u32 %v7284_v35, %v5936_v34  ;;  %v7272_v35 = vld [vmem:[#allocation4 + $0x204] sm:$0xf0] }
 0x1a1   : > { %v5952_v34 = vld [vmem:[#allocation4 + $0x200] sm:$0xf] }
 0x1a2   : > { %v788_v61 = vadd.f32 %v775_v57, %v686_v50  ;;  %v7280_v50 = vld [vmem:[#allocation4 + $0x284] sm:$0xf0]  ;;  %v7279_v57 = vld [vmem:[#allocation4 + $0x274] sm:$0xf0] }
 0x1a5   : > { %v778_v37 = vpop.f32.mrf.mxu3 }
 0x1a7   : > { %v688_v38 = vpop.f32.mrf.mxu1 }
 0x1a8   : > { %v689_v49 = vadd.f32 %v688_v38, %v617_v31  ;;  %v7286_v31 = vld [vmem:[#allocation4 + $0x2e4] sm:$0xf0]  ;;  %v7283_v38 = vld [vmem:[#allocation4 + $0x2b4] sm:$0xf0] }
 0x1aa   : > { %v789_v53 = vadd.f32 %v778_v37, %v689_v49  ;;  %v5932_v37 = vld [vmem:[#allocation4 + $0x2b0] sm:$0xf]  ;;  %v5920_v49 = vld [vmem:[#allocation4 + $0x280] sm:$0xf] }
 0x1ad   : > { %v780_v39 = vpop.f32.mrf.mxu3 }
 0x1af   : > { %v690_v40 = vpop.f32.mrf.mxu1 }
 0x1b0   : > { %v691_v48 = vadd.f32 %v690_v40, %v619_v14  ;;  %v5945_v14 = vor.u32 %v7286_v31, %v5944_v30  ;;  %v5928_v40 = vld [vmem:[#allocation4 + $0x2a0] sm:$0xf]  ;;  %v7288_v30 = vld [vmem:[#allocation4 + $0x304] sm:$0xf0] }
 0x1b1   : > { %v5985_v31 = vor.u32 %v7288_v30, %v5984_v28  ;;  %v7311_v30 = vld [vmem:[#allocation4 + $0x474] sm:$0xf0] }
 0x1b2   : > { %v790_v51 = vadd.f32 %v780_v39, %v691_v48  ;;  %1091 = vmatpush.bf16.msrb.mxu3 %v5945_v14  ;;  %v5933_v39 = vor.u32 %v7283_v38, %v5932_v37 }
 0x1b5   : > { %v783_v41 = vpop.f32.mrf.mxu3 }
 0x1b6   : > { %v791_v52 = vadd.f32 %v783_v41, %v694_v32  ;;  %v7285_v32 = vld [vmem:[#allocation4 + $0x2d4] sm:$0xf0]  ;;  %v7282_v41 = vld [vmem:[#allocation4 + $0x2a4] sm:$0xf0] }
 0x1b7   : > { %v868_v42 = vpop.f32.mrf.mxu1  ;;  %v5941_v33 = vor.u32 %v7285_v32, %v5940_v15  ;;  %v5956_v15 = vld [vmem:[#allocation4 + $0x210] sm:$0xf]  ;;  %v7273_v32 = vld [vmem:[#allocation4 + $0x214] sm:$0xf0] }
 0x1b8   : > { %v882_v7 = vadd.f32 %v868_v42, %v787_v1  ;;  %v5929_v42 = vor.u32 %v7282_v41, %v5928_v40  ;;  %v6000_v1 = vld [vmem:[#allocation4 + $0x340] sm:$0xf]  ;;  %v7303_v40 = vld [vmem:[#allocation4 + $0x3f4] sm:$0xf0] }
 0x1b9   : > { %1092 = vmatpush.bf16.msrb.mxu3 %v5941_v33  ;;  %v5957_v33 = vor.u32 %v7273_v32, %v5956_v15  ;;  %v7327_v15 = vld [vmem:[#allocation4 + $0x574] sm:$0xf0]  ;;  %v6096_v32 = vld [vmem:[#allocation4 + $0x4c0] sm:$0xf] }
 0x1ba   : > { %v887_v17 = vadd.f32 %v882_v7, %v343_v9  ;;  %v5972_v7 = vld [vmem:[#allocation4 + $0x250] sm:$0xf] }
 0x1bb   : > { %v5996_v9 = vld [vmem:[#allocation4 + $0x330] sm:$0xf] }
 0x1bc   : > { %v892_v21 = vmax.f32 %v887_v17, 0.0  ;;  %v5992_v17 = vld [vmem:[#allocation4 + $0x320] sm:$0xf] }
 0x1bd   : > { %v785_v43 = vpop.f32.mrf.mxu3  ;;  %1093 = vmatpush.bf16.msrb.mxu3 %v5937_v36  ;;  %v5953_v36 = vor.u32 %v7272_v35, %v5952_v34 }
 0x1be   : > { %v5924_v43 = vld [vmem:[#allocation4 + $0x290] sm:$0xf] }
 0x1bf   : > { %v870_v44 = vpop.f32.mrf.mxu1 }
 0x1c0   : > { %v883_v2 = vadd.f32 %v870_v44, %v788_v61  ;;  %v7281_v44 = vld [vmem:[#allocation4 + $0x294] sm:$0xf0] }
 0x1c1   : > { %1094 = vmatpush.bf16.msrb.mxu3 %v5933_v39  ;;  %v5925_v46 = vor.u32 %v7281_v44, %v5924_v43  ;;  %v7293_v61 = vld [vmem:[#allocation4 + $0x354] sm:$0xf0]  ;;  %v6044_v39 = vld [vmem:[#allocation4 + $0x3f0] sm:$0xf]  ;;  %v7302_v43 = vld [vmem:[#allocation4 + $0x3e4] sm:$0xf0] }
 0x1c2   : > { %v888_v11 = vadd.f32 %v883_v2, %v344_v4  ;;  %v6045_v41 = vor.u32 %v7303_v40, %v6044_v39  ;;  %v6136_v39 = vld [vmem:[#allocation4 + $0x560] sm:$0xf] }
 0x1c4   : > { %v893_v20 = vmax.f32 %v888_v11, 0.0  ;;  %v7291_v11 = vld [vmem:[#allocation4 + $0x334] sm:$0xf0] }
 0x1c5   : > { %1095 = vmatpush.bf16.msrb.mxu3 %v5929_v42  ;;  %v6040_v42 = vld [vmem:[#allocation4 + $0x3e0] sm:$0xf] }
 0x1c6   : > { %v912_v22 = vpack.c.bf16 %v893_v20, %v892_v21  ;;  %v6041_v44 = vor.u32 %v7302_v43, %v6040_v42  ;;  %v6092_v42 = vld [vmem:[#allocation4 + $0x4b0] sm:$0xf]  ;;  %v7315_v43 = vld [vmem:[#allocation4 + $0x4b4] sm:$0xf0] }
 0x1c7   : > { %v873_v45 = vpop.f32.mrf.mxu1 }
 0x1c8   : > { %v884_v62 = vadd.f32 %v873_v45, %v789_v53  ;;  %v6012_v45 = vld [vmem:[#allocation4 + $0x370] sm:$0xf]  ;;  %v7294_v53 = vld [vmem:[#allocation4 + $0x364] sm:$0xf0] }
 0x1c9   : > { %1096 = vmatpush.bf16.msrb.mxu3 %v5925_v46  ;;  %v6036_v46 = vld [vmem:[#allocation4 + $0x3d0] sm:$0xf] }
 0x1ca   : > { %v889_v8 = vadd.f32 %v884_v62, %v345_v63  ;;  %v5976_v63 = vld [vmem:[#allocation4 + $0x260] sm:$0xf] }
 0x1cc   : > { %v894_v18 = vmax.f32 %v889_v8, 0.0  ;;  %v7277_v8 = vld [vmem:[#allocation4 + $0x254] sm:$0xf0] }
 0x1cf   : > { %v875_v47 = vpop.f32.mrf.mxu1 }
 0x1d0   : > { %v885_v54 = vadd.f32 %v875_v47, %v790_v51  ;;  %v7295_v47 = vld [vmem:[#allocation4 + $0x374] sm:$0xf0]  ;;  %v6008_v51 = vld [vmem:[#allocation4 + $0x360] sm:$0xf] }
 0x1d1   : > { %v6013_v48 = vor.u32 %v7295_v47, %v6012_v45  ;;  %v7301_v47 = vld [vmem:[#allocation4 + $0x3d4] sm:$0xf0] }
 0x1d2   : > { %v890_v3 = vadd.f32 %v885_v54, %v346_v58  ;;  %v6009_v54 = vor.u32 %v7294_v53, %v6008_v51  ;;  %v6004_v58 = vld [vmem:[#allocation4 + $0x350] sm:$0xf] }
 0x1d3   : > { %1240 = vmatpush.bf16.msrb.mxu1 %v6013_v48  ;;  %v6005_v62 = vor.u32 %v7293_v61, %v6004_v58  ;;  %v6037_v48 = vor.u32 %v7301_v47, %v6036_v46  ;;  %v6024_v58 = vld [vmem:[#allocation4 + $0x3a0] sm:$0xf]  ;;  %v6093_v46 = vor.u32 %v7315_v43, %v6092_v42  ;;  %v897_v43 = vld [vmem:[#allocation6 + $0x50] sm:$0xff] }
 0x1d4   : > { %v895_v13 = vmax.f32 %v890_v3, 0.0  ;;  %v7292_v3 = vld [vmem:[#allocation4 + $0x344] sm:$0xf0] }
 0x1d5   : > { %v6001_v4 = vor.u32 %v7292_v3, %v6000_v1  ;;  %v6016_v3 = vld [vmem:[#allocation4 + $0x380] sm:$0xf] }
 0x1d6   : > { %v913_v19 = vpack.c.bf16 %v895_v13, %v894_v18  ;;  %v5968_v13 = vld [vmem:[#allocation4 + $0x240] sm:$0xf] }
 0x1d7   : > { %v878_v56 = vpop.f32.mrf.mxu1  ;;  %1241 = vmatpush.bf16.msrb.mxu1 %v6009_v54  ;;  %v6028_v54 = vld [vmem:[#allocation4 + $0x3b0] sm:$0xf] }
 0x1d8   : > { %v886_v59 = vadd.f32 %v878_v56, %v791_v52  ;;  %v5921_v52 = vor.u32 %v7280_v50, %v5920_v49  ;;  %v5980_v56 = vld [vmem:[#allocation4 + $0x270] sm:$0xf]  ;;  %v6032_v49 = vld [vmem:[#allocation4 + $0x3c0] sm:$0xf]  ;;  %v7300_v50 = vld [vmem:[#allocation4 + $0x3c4] sm:$0xf0] }
 0x1d9   : > { %v6033_v51 = vor.u32 %v7300_v50, %v6032_v49  ;;  %v7309_v49 = vld [vmem:[#allocation4 + $0x454] sm:$0xf0]  ;;  %v6132_v50 = vld [vmem:[#allocation4 + $0x550] sm:$0xf] }
 0x1da   : > { %v891_v0 = vadd.f32 %v886_v59, %v347_v55  ;;  %1097 = vmatpush.bf16.msrb.mxu3 %v5921_v52  ;;  %v5981_v59 = vor.u32 %v7279_v57, %v5980_v56  ;;  %v7299_v56 = vld [vmem:[#allocation4 + $0x3b4] sm:$0xf0] }
 0x1db   : > { %1242 = vmatpush.bf16.msrb.mxu1 %v6005_v62  ;;  %v6029_v57 = vor.u32 %v7299_v56, %v6028_v54  ;;  %v6020_v62 = vld [vmem:[#allocation4 + $0x390] sm:$0xf]  ;;  %v7314_v54 = vld [vmem:[#allocation4 + $0x4a4] sm:$0xf0] }
 0x1dc   : > { %v896_v5 = vmax.f32 %v891_v0, 0.0  ;;  %v7278_v0 = vld [vmem:[#allocation4 + $0x264] sm:$0xf0] }
 0x1dd   : > { %v5977_v2 = vor.u32 %v7278_v0, %v5976_v63  ;;  %v7297_v63 = vld [vmem:[#allocation4 + $0x394] sm:$0xf0] }
 0x1de   : > { %v914_v10 = vpack.c.bf16 %v896_v5, %v896_v5  ;;  %1156 = vmatpush.bf16.msra.mxu3 %v5981_v59  ;;  %v7298_v59 = vld [vmem:[#allocation4 + $0x3a4] sm:$0xf0]  ;;  %v6021_v1 = vor.u32 %v7297_v63, %v6020_v62 }
 0x1df   : > { %v880_v12 = vpop.f32.mrf.mxu1  ;;  %1243 = vmatpush.bf16.msrb.mxu1 %v6001_v4  ;;  %v6025_v61 = vor.u32 %v7298_v59, %v6024_v58  ;;  %v7296_v4 = vld [vmem:[#allocation4 + $0x384] sm:$0xf0]  ;;  %v6064_v58 = vld [vmem:[#allocation4 + $0x440] sm:$0xf] }
 0x1e0   : > { %v965_v16 = vsel %vm454_vm0, %v914_v10, 0  ;;  %v5973_v10 = vor.u32 %v7277_v8, %v5972_v7  ;;  %v5997_v12 = vor.u32 %v7291_v11, %v5996_v9  ;;  %v6017_v7 = vor.u32 %v7296_v4, %v6016_v3  ;;  %v7308_v59 = vld [vmem:[#allocation4 + $0x444] sm:$0xf0]  ;;  %v7313_v3 = vld [vmem:[#allocation4 + $0x494] sm:$0xf0] }
 0x1e1   : > { %972 = vmatpush.bf16.msrb.mxu2 %v965_v16  ;;  %v7276_v16 = vld [vmem:[#allocation4 + $0x244] sm:$0xf0]  ;;  %v6065_v62 = vor.u32 %v7308_v59, %v6064_v58 }
 0x1e2   : > { %1157 = vmatpush.bf16.msra.mxu3 %v5977_v2  ;;  %v5969_v18 = vor.u32 %v7276_v16, %v5968_v13  ;;  %v7324_v63 = vld [vmem:[#allocation4 + $0x544] sm:$0xf0] }
 0x1e3   : > { %1244 = vmatpush.bf16.msrb.mxu1 %v5997_v12 }
 0x1e5   : > { %973 = vmatpush.bf16.msrb.mxu2 %v913_v19  ;;  %v7290_v19 = vld [vmem:[#allocation4 + $0x324] sm:$0xf0] }
 0x1e6   : > { %1158 = vmatpush.bf16.msra.mxu3 %v5973_v10  ;;  %v5993_v20 = vor.u32 %v7290_v19, %v5992_v17  ;;  %v6108_v19 = vld [vmem:[#allocation4 + $0x4f0] sm:$0xf] }
 0x1e8   : > { %1245 = vmatpush.bf16.msrb.mxu1 %v5993_v20  ;;  %v7319_v20 = vld [vmem:[#allocation4 + $0x4f4] sm:$0xf0] }
 0x1e9   : > { %974 = vmatpush.bf16.msrb.mxu2 %v912_v22  ;;  %v5964_v22 = vld [vmem:[#allocation4 + $0x230] sm:$0xf] }
 0x1ea   : > { %1159 = vmatpush.bf16.msra.mxu3 %v5969_v18 }
 0x1ec   : > { %5912 = vmatmul.msk.bf16.vlgmr.msrb.gmra.mxu2 %vm945_vm2, %v7266_v23  ;;  %v7275_v23 = vld [vmem:[#allocation4 + $0x234] sm:$0xf0] }
 0x1fc   : > { %5913 = vmatmul.msk.bf16.gmra.mxu2 %vm945_vm2, %v7267_v24  ;;  %v5988_v24 = vld [vmem:[#allocation4 + $0x310] sm:$0xf] }
 0x20c   : > { %5914 = vmatmul.msk.bf16.gmra.mxu2 %vm945_vm2, %v7268_v25  ;;  %v5965_v25 = vor.u32 %v7275_v23, %v5964_v22  ;;  %v6109_v22 = vor.u32 %v7319_v20, %v6108_v19  ;;  %v6104_v23 = vld [vmem:[#allocation4 + $0x4e0] sm:$0xf]  ;;  %v7306_v20 = vld [vmem:[#allocation4 + $0x424] sm:$0xf0] }
 0x20d   : > { %v6056_v19 = vld [vmem:[#allocation4 + $0x420] sm:$0xf] }
 0x20e   : > { %1160 = vmatpush.bf16.msra.mxu3 %v5965_v25  ;;  %1589 = vmatpush.bf16.msra.mxu2 %v6109_v22  ;;  %v6120_v22 = vld [vmem:[#allocation4 + $0x520] sm:$0xf] }
 0x21c   : > { %5915 = vmatmul.msk.bf16.gmra.mxu2 %vm945_vm2, %v7269_v26  ;;  %v7289_v26 = vld [vmem:[#allocation4 + $0x314] sm:$0xf0] }
 0x22c   : > { %5916 = vmatmul.msk.bf16.gmra.mxu2 %vm945_vm2, %v7270_v60  ;;  %v5989_v60 = vor.u32 %v7289_v26, %v5988_v24  ;;  %v7318_v24 = vld [vmem:[#allocation4 + $0x4e4] sm:$0xf0]  ;;  %v6100_v26 = vld [vmem:[#allocation4 + $0x4d0] sm:$0xf] }
 0x22d   : > { %v6105_v25 = vor.u32 %v7318_v24, %v6104_v23  ;;  %v6057_v23 = vor.u32 %v7306_v20, %v6056_v19  ;;  %v7322_v24 = vld [vmem:[#allocation4 + $0x524] sm:$0xf0] }
 0x22e   : > { %1246 = vmatpush.bf16.msrb.mxu1 %v5989_v60  ;;  %v7317_v60 = vld [vmem:[#allocation4 + $0x4d4] sm:$0xf0] }
 0x22f   : > { %1590 = vmatpush.bf16.msra.mxu2 %v6105_v25 }
 0x232   : > { %1247 = vmatpush.bf16.msrb.mxu1 %v5985_v31  ;;  %v6140_v31 = vld [vmem:[#allocation4 + $0x570] sm:$0xf] }
 0x233   : > { %v6141_v35 = vor.u32 %v7327_v15, %v6140_v31  ;;  %v7304_v15 = vld [vmem:[#allocation4 + $0x404] sm:$0xf0] }
 0x23c   : > { %5917 = vmatmul.msk.bf16.gmra.mxu2 %vm945_vm2, %v7271_v6  ;;  %v5960_v6 = vld [vmem:[#allocation4 + $0x220] sm:$0xf] }
 0x23d   : > { %v5961_v29 = vor.u32 %v7274_v27, %v5960_v6  ;;  %v6101_v27 = vor.u32 %v7317_v60, %v6100_v26  ;;  %v6121_v26 = vor.u32 %v7322_v24, %v6120_v22  ;;  %v6052_v60 = vld [vmem:[#allocation4 + $0x410] sm:$0xf] }
 0x23f   : > { %1161 = vmatpush.bf16.msra.mxu3 %v5961_v29  ;;  %1591 = vmatpush.bf16.msra.mxu2 %v6101_v27  ;;  %v6076_v29 = vld [vmem:[#allocation4 + $0x470] sm:$0xf]  ;;  %v7305_v27 = vld [vmem:[#allocation4 + $0x414] sm:$0xf0] }
 0x243   : > { %1162 = vmatpush.bf16.msra.mxu3 %v5957_v33  ;;  %v7316_v33 = vld [vmem:[#allocation4 + $0x4c4] sm:$0xf0] }
 0x247   : > { %1163 = vmatpush.bf16.msra.mxu3 %v5953_v36  ;;  %v6097_v36 = vor.u32 %v7316_v33, %v6096_v32  ;;  %v6112_v32 = vld [vmem:[#allocation4 + $0x500] sm:$0xf] }
 0x249   : > { %1592 = vmatpush.bf16.msra.mxu2 %v6097_v36 }
 0x24d   : > { %1593 = vmatpush.bf16.msra.mxu2 %v6093_v46  ;;  %v898_v46 = vld [vmem:[#allocation6 + $0x60] sm:$0xff] }
 0x26f   : > { %v8002_v55 = vpop.f32.mrf.mxu2 }
 0x277   : > { %v8004_v5 = vpop.f32.mrf.mxu2 }
 0x278   : > { %v1006_v8 = vpack.c.bf16 %v8004_v5, %v8002_v55 }
 0x27f   : > { %v8006_v21 = vpop.f32.mrf.mxu2 }
 0x280   : > { %v1007_v11 = vpack.c.bf16 %v8006_v21, %v8006_v21 }
 0x287   : > { %v983_v14 = vpop.f32.mrf.mxu2 }
 0x28f   : > { %v986_v37 = vpop.f32.mrf.mxu2 }
 0x290   : > { %v1024_v38 = vpack.c.bf16 %v986_v37, %v983_v14  ;;  %v6077_v14 = vor.u32 %v7311_v30, %v6076_v29  ;;  %v6072_v37 = vld [vmem:[#allocation4 + $0x460] sm:$0xf]  ;;  %v6053_v29 = vor.u32 %v7305_v27, %v6052_v60  ;;  %v7321_v30 = vld [vmem:[#allocation4 + $0x514] sm:$0xf0] }
 0x292   : > { %1098 = vmatmul.bf16.vlgmr.msrb.gmra.mxu3 %v1024_v38  ;;  %1571 = vmatpush.bf16.msra.mxu1 %v6077_v14  ;;  %v7310_v38 = vld [vmem:[#allocation4 + $0x464] sm:$0xf0]  ;;  %v6048_v14 = vld [vmem:[#allocation4 + $0x400] sm:$0xf] }
 0x293   : > { %1327 = vmatpush.bf16.msrb.mxu3 %v6045_v41  ;;  %v6073_v40 = vor.u32 %v7310_v38, %v6072_v37  ;;  %v7326_v41 = vld [vmem:[#allocation4 + $0x564] sm:$0xf0]  ;;  %v6049_v33 = vor.u32 %v7304_v15, %v6048_v14 }
 0x296   : > { %1572 = vmatpush.bf16.msra.mxu1 %v6073_v40 }
 0x297   : > { %v988_v45 = vpop.f32.mrf.mxu2  ;;  %1328 = vmatpush.bf16.msrb.mxu3 %v6041_v44 }
 0x298   : > { %v1025_v53 = vpack.c.bf16 %v988_v45, %v988_v45  ;;  %v6137_v45 = vor.u32 %v7326_v41, %v6136_v39 }
 0x29b   : > { %1329 = vmatpush.bf16.msrb.mxu3 %v6037_v48  ;;  %v6068_v48 = vld [vmem:[#allocation4 + $0x450] sm:$0xf] }
 0x29f   : > { %v991_v52 = vpop.f32.mrf.mxu2  ;;  %1330 = vmatpush.bf16.msrb.mxu3 %v6033_v51  ;;  %v6069_v51 = vor.u32 %v7309_v49, %v6068_v48 }
 0x2a1   : > { %1573 = vmatpush.bf16.msra.mxu1 %v6069_v51 }
 0x2a2   : > { %1103 = vmatmul.bf16.gmra.mxu3 %v1025_v53  ;;  %v6088_v53 = vld [vmem:[#allocation4 + $0x4a0] sm:$0xf] }
 0x2a3   : > { %1331 = vmatpush.bf16.msrb.mxu3 %v6029_v57  ;;  %v6089_v57 = vor.u32 %v7314_v54, %v6088_v53  ;;  %v6175_v53 = vld [vmem:[#allocation4 + $0x5f0] sm:$0xf]  ;;  %v1360_v54 = vlaneseq }
 0x2a5   : > { %1594 = vmatpush.bf16.msra.mxu2 %v6089_v57  ;;  %1574 = vmatpush.bf16.msra.mxu1 %v6065_v62  ;;  %v899_v57 = vld [vmem:[#allocation6 + $0x70] sm:$0xff] }
 0x2a7   : > { %v993_v0 = vpop.f32.mrf.mxu2  ;;  %1332 = vmatpush.bf16.msrb.mxu3 %v6025_v61  ;;  %v6128_v61 = vld [vmem:[#allocation4 + $0x540] sm:$0xf] }
 0x2a8   : > { %v1174_v2 = vpack.c.bf16 %v993_v0, %v991_v52  ;;  %v7325_v52 = vld [vmem:[#allocation4 + $0x554] sm:$0xf0]  ;;  %v6084_v0 = vld [vmem:[#allocation4 + $0x490] sm:$0xf] }
 0x2a9   : > { %v6133_v56 = vor.u32 %v7325_v52, %v6132_v50  ;;  %v6085_v4 = vor.u32 %v7313_v3, %v6084_v0 }
 0x2aa   : > { %1248 = vmatmul.bf16.vlgmr.msrb.gmra.mxu1 %v1174_v2  ;;  %v6129_v2 = vor.u32 %v7324_v63, %v6128_v61  ;;  %v8039_v61 = vshrl.u32 %v1360_v54, 7 }
 0x2ab   : > { %1333 = vmatpush.bf16.msrb.mxu3 %v6021_v1  ;;  %1595 = vmatpush.bf16.msra.mxu2 %v6085_v4 }
 0x2ac   : > { %8717 = vst [vmem:[#allocation12_spill] sm:$0xff] %v8039_v61  ;;  %vm1362_vm3 = vcmp.lt.s32.totalorder %v8039_v61, 1  ;;  %vm1369_vm4 = vcmp.lt.s32.totalorder %v8039_v61, 7  ;;  %v8059_v20 = vand.u32 65535, %v8039_v61 }
 0x2ae   : > { %v1634_v22 = vmul.u32 43690, %v8059_v20  ;;  %v1633_v24 = vmul.u32 43691, %v8059_v20 }
 0x2af   : > { %1334 = vmatpush.bf16.msrb.mxu3 %v6017_v7  ;;  %v996_v9 = vpop.f32.mrf.mxu2 }
 0x2b0   : > { %v1175_v10 = vpack.c.bf16 %v996_v9, %v996_v9  ;;  %v7307_v9 = vld [vmem:[#allocation4 + $0x434] sm:$0xf0] }
 0x2b2   : > { %1164 = vmatmul.bf16.vlgmr.msra.gmra.mxu3 %v1006_v8  ;;  %v6060_v8 = vld [vmem:[#allocation4 + $0x430] sm:$0xf] }
 0x2b3   : > { %1607 = vmatpush.bf16.msra.mxu3 %v6141_v35  ;;  %v7320_v35 = vld [vmem:[#allocation4 + $0x504] sm:$0xf0] }
 0x2b4   : > { %v6113_v37 = vor.u32 %v7320_v35, %v6112_v32  ;;  %v7334_v35 = vld [vmem:[#allocation4 + $0x5e4] sm:$0xf0] }
 0x2b7   : > { %v998_v12 = vpop.f32.mrf.mxu2  ;;  %1608 = vmatpush.bf16.msra.mxu3 %v6137_v45 }
 0x2ba   : > { %1253 = vmatmul.bf16.gmra.mxu1 %v1175_v10  ;;  %v6124_v10 = vld [vmem:[#allocation4 + $0x530] sm:$0xf] }
 0x2bb   : > { %1609 = vmatpush.bf16.msra.mxu3 %v6133_v56 }
 0x2bf   : > { %v1001_v13 = vpop.f32.mrf.mxu2  ;;  %1610 = vmatpush.bf16.msra.mxu3 %v6129_v2 }
 0x2c0   : > { %v1261_v16 = vpack.c.bf16 %v1001_v13, %v998_v12  ;;  %v7323_v12 = vld [vmem:[#allocation4 + $0x534] sm:$0xf0]  ;;  %v6080_v13 = vld [vmem:[#allocation4 + $0x480] sm:$0xf] }
 0x2c2   : > { %1169 = vmatmul.bf16.gmra.mxu3 %v1007_v11  ;;  %v6061_v11 = vor.u32 %v7307_v9, %v6060_v8 }
 0x2c4   : > { %1575 = vmatpush.bf16.msra.mxu1 %v6061_v11 }
 0x2c7   : > { %v1003_v17 = vpop.f32.mrf.mxu2 }
 0x2c8   : > { %v1262_v18 = vpack.c.bf16 %v1003_v17, %v1003_v17  ;;  %v6125_v17 = vor.u32 %v7323_v12, %v6124_v10  ;;  %1576 = vmatpush.bf16.msra.mxu1 %v6057_v23  ;;  %v8063_v23 = vshrl.u32 %v8039_v61, 16 }
 0x2ca   : > { %1611 = vmatpush.bf16.msra.mxu3 %v6125_v17  ;;  %8718 = vst [vmem:[#allocation13_spill] sm:$0xff] %v8063_v23  ;;  %v1635_v60 = vmul.u32 43691, %v8063_v23 }
 0x2cc   : > { %1577 = vmatpush.bf16.msra.mxu1 %v6053_v29 }
 0x2ce   : > { %1612 = vmatpush.bf16.msra.mxu3 %v6121_v26  ;;  %v8067_v26 = vadd.s32 8, %v8039_v61 }
 0x2d0   : > { %1578 = vmatpush.bf16.msra.mxu1 %v6049_v33  ;;  %8719 = vst [vmem:[#allocation14_spill] sm:$0xff] %v8067_v26  ;;  %v8071_v27 = vand.u32 65535, %v8067_v26  ;;  %v6171_v33 = vld [vmem:[#allocation4 + $0x5e0] sm:$0xf] }
 0x2d2   : > { %1335 = vmatmul.bf16.vlgmr.msrb.gmra.mxu3 %v1261_v16  ;;  %v7312_v16 = vld [vmem:[#allocation4 + $0x484] sm:$0xf0]  ;;  %8720 = vst [vmem:[#allocation15_spill] sm:$0xff] %v8071_v27  ;;  %v1663_v29 = vmul.u32 43690, %v8071_v27  ;;  %v1662_v14 = vmul.u32 43691, %v8071_v27 }
 0x2d4   : > { %v1666_v32 = vshll.u32 %v1663_v29, 16 }
 0x2d6   : > { %vm1670_vm6 = vc.u32 %v1662_v14, %v1666_v32 }
 0x2e2   : > { %1340 = vmatmul.bf16.gmra.mxu3 %v1262_v18  ;;  %v6081_v18 = vor.u32 %v7312_v16, %v6080_v13 }
 0x2e4   : > { %1596 = vmatpush.bf16.msra.mxu2 %v6081_v18 }
 0x315   : > { %v8012_v55 = vpop.f32.mrf.mxu3 }
 0x31d   : > { %v8014_v5 = vpop.f32.mrf.mxu3 }
 0x325   : > { %v8016_v21 = vpop.f32.mrf.mxu3 }
 0x327   : > { %v8018_v6 = vpop.f32.mrf.mxu1 }
 0x32d   : > { %v1106_v28 = vpop.f32.mrf.mxu3 }
 0x32e   : > { %v6116_v28 = vld [vmem:[#allocation4 + $0x510] sm:$0xf] }
 0x32f   : > { %v8020_v34 = vpop.f32.mrf.mxu1  ;;  %v6117_v31 = vor.u32 %v7321_v30, %v6116_v28  ;;  %v8074_v28 = vshrl.u32 %v8067_v26, 16  ;;  %v1639_v30 = vshll.u32 %v1635_v60, 16 }
 0x331   : > { %1613 = vmatpush.bf16.msra.mxu3 %v6117_v31  ;;  %8721 = vst [vmem:[#allocation16_spill] sm:$0xff] %v8074_v28  ;;  %v1664_v15 = vmul.u32 43691, %v8074_v28 }
 0x335   : > { %v8022_v44 = vpop.f32.mrf.mxu3  ;;  %1614 = vmatpush.bf16.msra.mxu3 %v6113_v37  ;;  %v8699_v37 = vmov 0  }
 0x336   : > { %v1166_v38 = vadd.f32 %v8022_v44, %v8012_v55  ;;  %v7335_v55 = vld [vmem:[#allocation4 + $0x5f4] sm:$0xf0] }
 0x337   : > { %v8024_v47 = vpop.f32.mrf.mxu1 }
 0x338   : > { %v1258_v41 = vadd.f32 %v8018_v6, %v1166_v38  ;;  %v6176_v6 = vor.u32 %v7335_v55, %v6175_v53 }
 0x33a   : > { %1822 = vmatpush.bf16.msra.mxu0 %v6176_v6 }
 0x33d   : > { %v1167_v1 = vpop.f32.mrf.mxu3 }
 0x33e   : > { %v1168_v40 = vadd.f32 %v1167_v1, %v8014_v5 }
 0x33f   : > { %v1256_v7 = vpop.f32.mrf.mxu1 }
 0x340   : > { %v1259_v45 = vadd.f32 %v8020_v34, %v1168_v40  ;;  %v1668_v40 = vshll.u32 %v1664_v15, 16 }
 0x345   : > { %v1170_v25 = vpop.f32.mrf.mxu3 }
 0x346   : > { %v1171_v51 = vadd.f32 %v1170_v25, %v8016_v21  ;;  %v1637_v25 = vshll.u32 %v1634_v22, 16 }
 0x348   : > { %v1260_v56 = vadd.f32 %v8024_v47, %v1171_v51  ;;  %vm1641_vm5 = vc.u32 %v1633_v24, %v1637_v25  ;;  %v1643_v31 = vadd.s32 %v1637_v25, %v1633_v24 }
 0x349   : > { %v1642_v38 = vsel %vm1641_vm5, 1, %v8699_v37 }
 0x34a   : > { %vm1645_vm7 = vc.u32 %v1643_v31, %v1639_v30  ;;  %v6151_v30 = vld [vmem:[#allocation4 + $0x590] sm:$0xf]  ;;  %v7329_v31 = vld [vmem:[#allocation4 + $0x594] sm:$0xf0] }
 0x34b   : > { %v1646_v53 = vsel %vm1645_vm7, 1, %v8699_v37 }
 0x34d   : > { %v1172_v36 = vpop.f32.mrf.mxu3 }
 0x34e   : > { %v1636_v36 = vmul.u32 43690, %v8063_v23  ;;  %v7585_v23 = vld [vmem:[#allocation4 + $0x11d4] sm:$0xf0] }
 0x355   : > { %v1336_v39 = vpop.f32.mrf.mxu3 }
 0x356   : > { %v1345_v42 = vadd.f32 %v1336_v39, %v1258_v41  ;;  %v6172_v39 = vor.u32 %v7334_v35, %v6171_v33  ;;  %v1672_v41 = vadd.s32 %v1666_v32, %v1662_v14  ;;  %v6152_v14 = vor.u32 %v7329_v31, %v6151_v30  ;;  %v1354_v30 = vld [vmem:[#allocation6 + $0x80] sm:$0xff] }
 0x358   : > { %v8031_v49 = vadd.f32 %v1345_v42, %v897_v43  ;;  %v8082_v42 = vadd.s32 16, %v8039_v61  ;;  %1823 = vmatpush.bf16.msra.mxu0 %v6172_v39  ;;  %v1665_v43 = vmul.u32 43690, %v8074_v28  ;;  %vm1674_vm8 = vc.u32 %v1672_v41, %v1668_v40  ;;  %v7574_v28 = vld [vmem:[#allocation4 + $0x1124] sm:$0xf0] }
 0x35a   : > { %v1351_v44 = vmax.f32 %v8031_v49, 0.0  ;;  %8722 = vst [vmem:[#allocation17_spill] sm:$0xff] %v8082_v42  ;;  %v8088_v55 = vand.u32 65535, %v8082_v42 }
 0x35c   : > { %v1357_v1 = vrot.slane %v1351_v44, 7  ;;  %v1366_v47 = vrot.slane %v1351_v44, 1  ;;  %8723 = vst [vmem:[#allocation18_spill] sm:$0xff] %v8088_v55  ;;  %v1692_v54 = vmul.u32 43690, %v8088_v55 }
 0x35d   : > { %v1338_v48 = vpop.f32.mrf.mxu3 }
 0x35e   : > { %v1346_v50 = vadd.f32 %v1338_v48, %v1259_v45  ;;  %v6167_v45 = vld [vmem:[#allocation4 + $0x5d0] sm:$0xf]  ;;  %v1644_v48 = vadd.s32 %v1642_v38, %v1636_v36  ;;  %v1696_v32 = vshrl.u32 %v1692_v54, 16  ;;  %v6147_v36 = vld [vmem:[#allocation4 + $0x580] sm:$0xf] }
 0x35f   : > { %v7328_v38 = vld [vmem:[#allocation4 + $0x584] sm:$0xf0] }
 0x360   : > { %v8034_v52 = vadd.f32 %v1346_v50, %v898_v46  ;;  %v7333_v46 = vld [vmem:[#allocation4 + $0x5d4] sm:$0xf0]  ;;  %v1671_v50 = vsel %vm1670_vm6, 1, %v8699_v37  ;;  %v6148_v41 = vor.u32 %v7328_v38, %v6147_v36 }
 0x361   : > { %v6168_v51 = vor.u32 %v7333_v46, %v6167_v45  ;;  %v1673_v6 = vadd.s32 %v1671_v50, %v1665_v43 }
 0x362   : > { %v1352_v5 = vmax.f32 %v8034_v52, 0.0 }
 0x363   : > { %1824 = vmatpush.bf16.msra.mxu0 %v6168_v51 }
 0x364   : > { %v1422_v34 = vpack.c.bf16 %v1352_v5, %v1351_v44  ;;  %v1358_v62 = vrot.slane %v1352_v5, 7  ;;  %v1367_v63 = vrot.slane %v1352_v5, 1  ;;  %v8091_v44 = vshrl.u32 %v8082_v42, 16 }
 0x365   : > { %v1341_v58 = vpop.f32.mrf.mxu3  ;;  %v1638_v5 = vshrl.u32 %v1634_v22, 16 }
 0x366   : > { %v1347_v59 = vadd.f32 %v1341_v58, %v1260_v56  ;;  %1597 = vmatmul.bf16.vlgmr.msra.gmra.mxu2 %v1422_v34  ;;  %v1364_v7 = vsel %vm1362_vm3, %v1357_v1, %v1358_v62  ;;  %v1371_v10 = vsel %vm1369_vm4, %v1366_v47, %v1367_v63  ;;  %8724 = vst [vmem:[#allocation19_spill] sm:$0xff] %v8091_v44  ;;  %v6163_v34 = vld [vmem:[#allocation4 + $0x5c0] sm:$0xf]  ;;  %v1675_v58 = vsel %vm1674_vm8, 1, %v8699_v37 }
 0x367   : > { %v1648_v56 = vadd.s32 %v1646_v53, %v1644_v48 }
 0x368   : > { %v8041_v21 = vadd.f32 %v1347_v59, %v899_v57  ;;  %v7332_v57 = vld [vmem:[#allocation4 + $0x5c4] sm:$0xf0]  ;;  %v1693_v59 = vmul.u32 43691, %v8091_v44 }
 0x36a   : > { %v1353_v0 = vmax.f32 %v8041_v21, 0.0  ;;  %v1698_v39 = vshrl.u32 %v1693_v59, 16 }
 0x36c   : > { %v1359_v2 = vrot.slane %v1353_v0, 7  ;;  %v1368_v3 = vrot.slane %v1353_v0, 1  ;;  %v1425_v13 = vpack.c.bf16 %v1353_v0, %v1353_v0  ;;  %v1695_v0 = vshll.u32 %v1692_v54, 16 }
 0x36d   : > { %v1343_v4 = vpop.f32.mrf.mxu3 }
 0x36e   : > { %v1365_v8 = vsel %vm1362_vm3, %v1359_v2, %v1357_v1  ;;  %v1370_v9 = vsel %vm1369_vm4, %v1367_v63, %v1368_v3  ;;  %v1363_v16 = vsel %vm1362_vm3, %v1358_v62, %v1359_v2  ;;  %v1372_v17 = vsel %vm1369_vm4, %v1368_v3, %v1366_v47 }
 0x36f   : > { %v1421_v11 = vpack.c.bf16 %v1364_v7, %v1365_v8  ;;  %v1423_v12 = vpack.c.bf16 %v1370_v9, %v1371_v10  ;;  %v1424_v18 = vpack.c.bf16 %v1363_v16, %v1363_v16  ;;  %v1426_v19 = vpack.c.bf16 %v1372_v17, %v1372_v17  ;;  %v6159_v7 = vld [vmem:[#allocation4 + $0x5b0] sm:$0xf]  ;;  %v7331_v8 = vld [vmem:[#allocation4 + $0x5b4] sm:$0xf0] }
 0x370   : > { %v6164_v62 = vor.u32 %v7332_v57, %v6163_v34  ;;  %v1691_v63 = vmul.u32 43691, %v8088_v55  ;;  %v1667_v1 = vshrl.u32 %v1663_v29, 16  ;;  %v1677_v47 = vadd.s32 %v1675_v58, %v1673_v6 }
 0x371   : > { %1579 = vmatmul.bf16.vlgmr.msra.gmra.mxu1 %v1421_v11  ;;  %1615 = vmatmul.bf16.vlgmr.msra.gmra.mxu3 %v1423_v12  ;;  %v1697_v2 = vshll.u32 %v1693_v59, 16  ;;  %v1640_v3 = vshrl.u32 %v1635_v60, 16  ;;  %v1649_v4 = vadd.s32 %v1648_v56, %v1638_v5  ;;  %v1694_v9 = vmul.u32 43690, %v8091_v44 }
 0x372   : > { %1825 = vmatpush.bf16.msra.mxu0 %v6164_v62  ;;  %vm1699_vm9 = vc.u32 %v1691_v63, %v1695_v0  ;;  %v1701_v10 = vadd.s32 %v1695_v0, %v1691_v63  ;;  %v6160_v11 = vor.u32 %v7331_v8, %v6159_v7  ;;  %v1669_v12 = vshrl.u32 %v1664_v15, 16  ;;  %v7358_v7 = vld [vmem:[#allocation4 + $0x764] sm:$0xf0] }
 0x373   : > { %v1700_v16 = vsel %vm1699_vm9, 1, %v8699_v37  ;;  %v1650_v17 = vadd.s32 %v1649_v4, %v1640_v3  ;;  %v8697_v3 = vmov 0.0  }
 0x374   : > { %vm1703_vm10 = vc.u32 %v1701_v10, %v1697_v2  ;;  %v1702_v24 = vadd.s32 %v1700_v16, %v1694_v9  ;;  %v6235_v2 = vld [vmem:[#allocation4 + $0x6e0] sm:$0xf]  ;;  %v7350_v10 = vld [vmem:[#allocation4 + $0x6e4] sm:$0xf0]  ;;  %v6271_v16 = vld [vmem:[#allocation4 + $0x770] sm:$0xf] }
 0x375   : > { %v1704_v25 = vsel %vm1703_vm10, 1, %v8699_v37  ;;  %v1651_v29 = vshrl.u32 %v1650_v17, 2  ;;  %v6236_v17 = vor.u32 %v7350_v10, %v6235_v2 }
 0x376   : > { %1602 = vmatmul.bf16.gmra.mxu2 %v1425_v13  ;;  %v1678_v13 = vadd.s32 %v1677_v47, %v1667_v1  ;;  %1826 = vmatpush.bf16.msra.mxu0 %v6160_v11  ;;  %v1706_v15 = vadd.s32 %v1704_v25, %v1702_v24  ;;  %v6239_v1 = vld [vmem:[#allocation4 + $0x6f0] sm:$0xf]  ;;  %v7351_v47 = vld [vmem:[#allocation4 + $0x6f4] sm:$0xf0] }
 0x377   : > { %v1652_v35 = vmul.u32 6, %v1651_v29  ;;  %v6240_v9 = vor.u32 %v7351_v47, %v6239_v1  ;;  %v6231_v25 = vld [vmem:[#allocation4 + $0x6d0] sm:$0xf]  ;;  %v7342_v1 = vld [vmem:[#allocation4 + $0x664] sm:$0xf0] }
 0x378   : > { %v1679_v60 = vadd.s32 %v1678_v13, %v1669_v12  ;;  %v1707_v40 = vadd.s32 %v1706_v15, %v1696_v32  ;;  %v6207_v12 = vld [vmem:[#allocation4 + $0x670] sm:$0xf]  ;;  %v7343_v13 = vld [vmem:[#allocation4 + $0x674] sm:$0xf0]  ;;  %v6267_v47 = vld [vmem:[#allocation4 + $0x760] sm:$0xf] }
 0x379   : > { %v1653_v45 = vsub.s32 %v8039_v61, %v1652_v35  ;;  %2083 = vmatpush.bf16.msrb.mxu2 %v6240_v9  ;;  %v7347_v9 = vld [vmem:[#allocation4 + $0x6b4] sm:$0xf0]  ;;  %v6268_v10 = vor.u32 %v7358_v7, %v6267_v47  ;;  %v7336_v47 = vld [vmem:[#allocation4 + $0x604] sm:$0xf0] }
 0x37a   : > { %v1680_v33 = vshrl.u32 %v1679_v60, 2  ;;  %v1708_v46 = vadd.s32 %v1707_v40, %v1698_v39  ;;  %v7349_v60 = vld [vmem:[#allocation4 + $0x6d4] sm:$0xf0] }
 0x37b   : > { %vm1714_vm11 = vcmp.ne.s32.totalorder %v1653_v45, 0  ;;  %vm1717_vm12 = vcmp.lt.s32.totalorder %v1653_v45, 0  ;;  %v1723_v53 = vadd.s32 6, %v1653_v45  ;;  %v6232_v36 = vor.u32 %v7349_v60, %v6231_v25  ;;  %v6195_v60 = vld [vmem:[#allocation4 + $0x640] sm:$0xf] }
 0x37c   : > { %v1681_v43 = vmul.u32 6, %v1680_v33  ;;  %v1709_v51 = vshrl.u32 %v1708_v46, 2  ;;  %vm1720_vm13 = vmand %vm1717_vm12, %vm1714_vm11  ;;  %v1355_v33 = vld [vmem:[#allocation6 + $0x90] sm:$0xff] }
 0x37d   : > { %v1726_v56 = vsel %vm1720_vm13, %v1723_v53, %v1653_v45  ;;  %2084 = vmatpush.bf16.msrb.mxu2 %v6236_v17 }
 0x37e   : > { %v1682_v48 = vsub.s32 %v8067_v26, %v1681_v43  ;;  %v1710_v54 = vmul.u32 6, %v1709_v51  ;;  %vm1729_vm5 = vcmp.ne.s32.totalorder %v1726_v56, 0  ;;  %vm1732_vm6 = vcmp.ne.s32.totalorder %v1726_v56, 5 }
 0x37f   : > { %vm1735_vm7 = vmand %vm1729_vm5, %vm1732_vm6  ;;  %vm5407_vm5 = vcmask 64512  }
 0x380   : > { %vm1715_vm14 = vcmp.ne.s32.totalorder %v1682_v48, 0  ;;  %vm1718_vm15 = vcmp.lt.s32.totalorder %v1682_v48, 0  ;;  %v1724_v6 = vadd.s32 6, %v1682_v48  ;;  %v1711_v58 = vsub.s32 %v8082_v42, %v1710_v54  ;;  %v1356_v54 = vld [vmem:[#allocation6 + $0xa0] sm:$0xff] }
 0x381   : > { %1584 = vmatmul.bf16.gmra.mxu1 %v1424_v18  ;;  %1620 = vmatmul.bf16.gmra.mxu3 %v1426_v19  ;;  %v6155_v18 = vld [vmem:[#allocation4 + $0x5a0] sm:$0xf]  ;;  %v7330_v19 = vld [vmem:[#allocation4 + $0x5a4] sm:$0xf0]  ;;  %vm1721_vm1 = vmand %vm1718_vm15, %vm1715_vm14  ;;  %v8104_v4 = vsel %vm1735_vm7, 1.0, %v8697_v3 }
 0x382   : > { %v6156_v22 = vor.u32 %v7330_v19, %v6155_v18  ;;  %v1727_v57 = vsel %vm1721_vm1, %v1724_v6, %v1682_v48  ;;  %vm1716_vm10 = vcmp.ne.s32.totalorder %v1711_v58, 0  ;;  %vm1719_vm11 = vcmp.lt.s32.totalorder %v1711_v58, 0  ;;  %v7359_v19 = vld [vmem:[#allocation4 + $0x774] sm:$0xf0]  ;;  %2085 = vmatpush.bf16.msrb.mxu2 %v6232_v36 }
 0x383   : > { %vm1730_vm8 = vcmp.ne.s32.totalorder %v1727_v57, 0  ;;  %vm1733_vm9 = vcmp.ne.s32.totalorder %v1727_v57, 5  ;;  %v1725_v8 = vadd.s32 6, %v1711_v58  ;;  %vm1722_vm13 = vmand %vm1719_vm11, %vm1716_vm10  ;;  %v6208_v18 = vor.u32 %v7343_v13, %v6207_v12  ;;  %v6199_v12 = vld [vmem:[#allocation4 + $0x650] sm:$0xf] }
 0x384   : > { %1827 = vmatpush.bf16.msra.mxu0 %v6156_v22  ;;  %vm8106_vm12 = vmand %vm1730_vm8, %vm1733_vm9  ;;  %v6272_v29 = vor.u32 %v7359_v19, %v6271_v16  ;;  %v7341_v13 = vld [vmem:[#allocation4 + $0x654] sm:$0xf0]  ;;  %v6263_v16 = vld [vmem:[#allocation4 + $0x750] sm:$0xf] }
 0x385   : > { %2065 = vmatpush.bf16.msrb.mxu1 %v6208_v18  ;;  %v1728_v15 = vsel %vm1722_vm13, %v1725_v8, %v1711_v58  ;;  %v6223_v8 = vld [vmem:[#allocation4 + $0x6b0] sm:$0xf]  ;;  %v6200_v17 = vor.u32 %v7341_v13, %v6199_v12  ;;  %v7357_v18 = vld [vmem:[#allocation4 + $0x754] sm:$0xf0]  ;;  %v6219_v19 = vld [vmem:[#allocation4 + $0x6a0] sm:$0xf] }
 0x386   : > { %2101 = vmatpush.bf16.msrb.mxu3 %v6272_v29  ;;  %vm1731_vm14 = vcmp.ne.s32.totalorder %v1728_v15, 0  ;;  %vm1734_vm15 = vcmp.ne.s32.totalorder %v1728_v15, 5  ;;  %v7340_v29 = vld [vmem:[#allocation4 + $0x644] sm:$0xf0]  ;;  %v6215_v15 = vld [vmem:[#allocation4 + $0x690] sm:$0xf] }
 0x387   : > { %vm1737_vm1 = vmand %vm1731_vm14, %vm1734_vm15  ;;  %v1753_v12 = vld [vmem:[#allocation6 + $0xb0] sm:$0xff] }
 0x388   : > { %1828 = vmatpush.bf16.msra.mxu0 %v6152_v14  ;;  %v8116_v14 = vsel %vm8106_vm12, 1.0, %v8697_v3  ;;  %v8120_v53 = vsel %vm1737_vm1, 1.0, %v8697_v3 }
 0x38a   : > { %2102 = vmatpush.bf16.msrb.mxu3 %v6268_v10 }
 0x38c   : > { %1829 = vmatpush.bf16.msra.mxu0 %v6148_v41 }
 0x3e9   : > { %v1598_v50 = vpop.f32.mrf.mxu2 }
 0x3ee   : > { %v1580_v5 = vpop.f32.mrf.mxu1 }
 0x3ef   : > { %v1599_v62 = vadd.f32 %v1598_v50, %v1580_v5 }
 0x3f1   : > { %v1600_v34 = vpop.f32.mrf.mxu2 }
 0x3f4   : > { %v1616_v59 = vpop.f32.mrf.mxu3 }
 0x3f5   : > { %v1617_v0 = vadd.f32 %v1616_v59, %v1599_v62  ;;  %v6227_v59 = vld [vmem:[#allocation4 + $0x6c0] sm:$0xf]  ;;  %v7348_v62 = vld [vmem:[#allocation4 + $0x6c4] sm:$0xf0] }
 0x3f6   : > { %v1582_v63 = vpop.f32.mrf.mxu1 }
 0x3f7   : > { %v1744_v22 = vmul.f32 %v8104_v4, %v1617_v0  ;;  %v1601_v24 = vadd.f32 %v1600_v34, %v1582_v63  ;;  %v6228_v63 = vor.u32 %v7348_v62, %v6227_v59  ;;  %v6203_v0 = vld [vmem:[#allocation4 + $0x660] sm:$0xf]  ;;  %v6247_v59 = vld [vmem:[#allocation4 + $0x710] sm:$0xf] }
 0x3f8   : > { %v6204_v2 = vor.u32 %v7342_v1, %v6203_v0  ;;  %v6179_v1 = vld [vmem:[#allocation4 + $0x600] sm:$0xf] }
 0x3f9   : > { %v1603_v11 = vpop.f32.mrf.mxu2  ;;  %v1747_v38 = vadd.f32 %v1744_v22, %v1354_v30  ;;  %2086 = vmatpush.bf16.msrb.mxu2 %v6228_v63  ;;  %v7346_v22 = vld [vmem:[#allocation4 + $0x6a4] sm:$0xf0]  ;;  %v6259_v30 = vld [vmem:[#allocation4 + $0x740] sm:$0xf]  ;;  %v7353_v63 = vld [vmem:[#allocation4 + $0x714] sm:$0xf0]  ;;  %v6180_v7 = vor.u32 %v7336_v47, %v6179_v1 }
 0x3fa   : > { %2066 = vmatpush.bf16.msrb.mxu1 %v6204_v2  ;;  %v6220_v25 = vor.u32 %v7346_v22, %v6219_v19  ;;  %v6248_v0 = vor.u32 %v7353_v63, %v6247_v59  ;;  %v6243_v2 = vld [vmem:[#allocation4 + $0x700] sm:$0xf]  ;;  %v7365_v1 = vld [vmem:[#allocation4 + $0x7d4] sm:$0xf0] }
 0x3fb   : > { %v1750_v43 = vmax.f32 %v1747_v38, 0.0  ;;  %v6191_v38 = vld [vmem:[#allocation4 + $0x630] sm:$0xf]  ;;  %v6299_v59 = vld [vmem:[#allocation4 + $0x7e0] sm:$0xf] }
 0x3fc   : > { %v1618_v31 = vpop.f32.mrf.mxu3 }
 0x3fd   : > { %v1619_v32 = vadd.f32 %v1618_v31, %v1601_v24  ;;  %v6264_v24 = vor.u32 %v7357_v18, %v6263_v16  ;;  %v6196_v31 = vor.u32 %v7340_v29, %v6195_v60  ;;  %v1754_v16 = vld [vmem:[#allocation6 + $0xc0] sm:$0xff]  ;;  %v7367_v60 = vld [vmem:[#allocation4 + $0x7f4] sm:$0xf0] }
 0x3fe   : > { %v1585_v35 = vpop.f32.mrf.mxu1  ;;  %2067 = vmatpush.bf16.msrb.mxu1 %v6200_v17 }
 0x3ff   : > { %v1745_v39 = vmul.f32 %v8116_v14, %v1619_v32  ;;  %v1604_v46 = vadd.f32 %v1603_v11, %v1585_v35  ;;  %v6224_v11 = vor.u32 %v7347_v9, %v6223_v8  ;;  %2103 = vmatpush.bf16.msrb.mxu3 %v6264_v24  ;;  %v7356_v32 = vld [vmem:[#allocation4 + $0x744] sm:$0xf0]  ;;  %v7345_v35 = vld [vmem:[#allocation4 + $0x694] sm:$0xf0] }
 0x400   : > { %v6216_v36 = vor.u32 %v7345_v35, %v6215_v15  ;;  %v7352_v8 = vld [vmem:[#allocation4 + $0x704] sm:$0xf0] }
 0x401   : > { %v1748_v40 = vadd.f32 %v1745_v39, %v1355_v33  ;;  %v1605_v41 = vpop.f32.mrf.mxu2  ;;  %2087 = vmatpush.bf16.msrb.mxu2 %v6224_v11  ;;  %v6260_v33 = vor.u32 %v7356_v32, %v6259_v30  ;;  %v7339_v39 = vld [vmem:[#allocation4 + $0x634] sm:$0xf0]  ;;  %v6244_v9 = vor.u32 %v7352_v8, %v6243_v2  ;;  %v1755_v32 = vld [vmem:[#allocation6 + $0xd0] sm:$0xff]  ;;  %v6291_v2 = vld [vmem:[#allocation4 + $0x7c0] sm:$0xf] }
 0x402   : > { %2068 = vmatpush.bf16.msrb.mxu1 %v6196_v31  ;;  %v6192_v41 = vor.u32 %v7339_v39, %v6191_v38 }
 0x403   : > { %v1751_v45 = vmax.f32 %v1748_v40, 0.0  ;;  %2104 = vmatpush.bf16.msrb.mxu3 %v6260_v33  ;;  %v6255_v40 = vld [vmem:[#allocation4 + $0x730] sm:$0xf] }
 0x404   : > { %v1621_v48 = vpop.f32.mrf.mxu3 }
 0x405   : > { %v1622_v50 = vadd.f32 %v1621_v48, %v1604_v46  ;;  %v1772_v51 = vpack.c.bf16 %v1751_v45, %v1750_v43  ;;  %2088 = vmatpush.bf16.msrb.mxu2 %v6220_v25  ;;  %v7355_v43 = vld [vmem:[#allocation4 + $0x734] sm:$0xf0]  ;;  %v6211_v45 = vld [vmem:[#allocation4 + $0x680] sm:$0xf]  ;;  %v7344_v46 = vld [vmem:[#allocation4 + $0x684] sm:$0xf0] }
 0x406   : > { %v1587_v5 = vpop.f32.mrf.mxu1  ;;  %v6256_v48 = vor.u32 %v7355_v43, %v6255_v40  ;;  %2069 = vmatpush.bf16.msrb.mxu1 %v6192_v41  ;;  %v6303_v25 = vld [vmem:[#allocation4 + $0x7f0] sm:$0xf] }
 0x407   : > { %1830 = vmatmul.bf16.vlgmr.msra.gmra.mxu0 %v1772_v51  ;;  %v1746_v6 = vmul.f32 %v8120_v53, %v1622_v50  ;;  %v6212_v50 = vor.u32 %v7344_v46, %v6211_v45  ;;  %v6187_v51 = vld [vmem:[#allocation4 + $0x620] sm:$0xf]  ;;  %v7338_v5 = vld [vmem:[#allocation4 + $0x624] sm:$0xf0]  ;;  %v6304_v31 = vor.u32 %v7367_v60, %v6303_v25 }
 0x408   : > { %2105 = vmatpush.bf16.msrb.mxu3 %v6256_v48  ;;  %v6275_v25 = vld [vmem:[#allocation4 + $0x780] sm:$0xf]  ;;  %v7360_v60 = vld [vmem:[#allocation4 + $0x784] sm:$0xf0] }
 0x409   : > { %v1749_v34 = vadd.f32 %v1746_v6, %v1356_v54  ;;  %2089 = vmatpush.bf16.msrb.mxu2 %v6216_v36  ;;  %v6251_v6 = vld [vmem:[#allocation4 + $0x720] sm:$0xf]  ;;  %v6188_v54 = vor.u32 %v7338_v5, %v6187_v51  ;;  %2197 = vmatpush.bf16.msrb.mxu0 %v6304_v31 }
 0x40b   : > { %v1752_v57 = vmax.f32 %v1749_v34, 0.0  ;;  %2070 = vmatpush.bf16.msrb.mxu1 %v6188_v54 }
 0x40c   : > { %v1623_v56 = vpop.f32.mrf.mxu3 }
 0x40d   : > { %v1773_v58 = vpack.c.bf16 %v1752_v57, %v1752_v57  ;;  %2090 = vmatpush.bf16.msrb.mxu2 %v6212_v50  ;;  %v7354_v56 = vld [vmem:[#allocation4 + $0x724] sm:$0xf0]  ;;  %v6183_v57 = vld [vmem:[#allocation4 + $0x610] sm:$0xf] }
 0x40e   : > { %v6252_v34 = vor.u32 %v7354_v56, %v6251_v6 }
 0x410   : > { %2106 = vmatpush.bf16.msrb.mxu3 %v6252_v34 }
 0x414   : > { %2107 = vmatpush.bf16.msrb.mxu3 %v6248_v0  ;;  %v6295_v0 = vld [vmem:[#allocation4 + $0x7d0] sm:$0xf] }
 0x415   : > { %v6296_v47 = vor.u32 %v7365_v1, %v6295_v0 }
 0x417   : > { %1835 = vmatmul.bf16.gmra.mxu0 %v1773_v58  ;;  %v7337_v58 = vld [vmem:[#allocation4 + $0x614] sm:$0xf0] }
 0x418   : > { %v6184_v62 = vor.u32 %v7337_v58, %v6183_v57  ;;  %2108 = vmatpush.bf16.msrb.mxu3 %v6244_v9  ;;  %v6287_v9 = vld [vmem:[#allocation4 + $0x7b0] sm:$0xf] }
 0x41a   : > { %2071 = vmatpush.bf16.msrb.mxu1 %v6184_v62  ;;  %v7366_v62 = vld [vmem:[#allocation4 + $0x7e4] sm:$0xf0] }
 0x41b   : > { %v6300_v63 = vor.u32 %v7366_v62, %v6299_v59  ;;  %v6323_v59 = vld [vmem:[#allocation4 + $0x840] sm:$0xf]  ;;  %v7372_v62 = vld [vmem:[#allocation4 + $0x844] sm:$0xf0] }
 0x41c   : > { %v6324_v1 = vor.u32 %v7372_v62, %v6323_v59  ;;  %v7380_v59 = vld [vmem:[#allocation4 + $0x8c4] sm:$0xf0] }
 0x41d   : > { %2198 = vmatpush.bf16.msrb.mxu0 %v6300_v63 }
 0x41e   : > { %2072 = vmatpush.bf16.msrb.mxu1 %v6180_v7  ;;  %v7364_v7 = vld [vmem:[#allocation4 + $0x7c4] sm:$0xf0] }
 0x41f   : > { %v6292_v8 = vor.u32 %v7364_v7, %v6291_v2 }
 0x421   : > { %2199 = vmatpush.bf16.msrb.mxu0 %v6296_v47 }
 0x425   : > { %2200 = vmatpush.bf16.msrb.mxu0 %v6292_v8 }
 0x484   : > { %v1831_v10 = vpop.f32.mrf.mxu0 }
 0x485   : > { %v1840_v11 = vmul.f32 %v8104_v4, %v1831_v10  ;;  %v7363_v10 = vld [vmem:[#allocation4 + $0x7b4] sm:$0xf0] }
 0x487   : > { %v1843_v13 = vadd.f32 %v1840_v11, %v1753_v12  ;;  %v6288_v11 = vor.u32 %v7363_v10, %v6287_v9  ;;  %v6283_v12 = vld [vmem:[#allocation4 + $0x7a0] sm:$0xf] }
 0x489   : > { %v8126_v19 = vadd.f32 %v1843_v13, %v8031_v49  ;;  %2201 = vmatpush.bf16.msrb.mxu0 %v6288_v11  ;;  %v7362_v13 = vld [vmem:[#allocation4 + $0x7a4] sm:$0xf0] }
 0x48b   : > { %v1849_v29 = vmax.f32 %v8126_v19, 0.0 }
 0x48c   : > { %v1833_v17 = vpop.f32.mrf.mxu0 }
 0x48d   : > { %v1841_v18 = vmul.f32 %v8116_v14, %v1833_v17  ;;  %v1855_v41 = vrot.slane %v1849_v29, 7  ;;  %v1861_v43 = vrot.slane %v1849_v29, 1  ;;  %v6279_v17 = vld [vmem:[#allocation4 + $0x790] sm:$0xf] }
 0x48f   : > { %v1844_v22 = vadd.f32 %v1841_v18, %v1754_v16  ;;  %v6284_v16 = vor.u32 %v7362_v13, %v6283_v12  ;;  %v7361_v18 = vld [vmem:[#allocation4 + $0x794] sm:$0xf0]  ;;  %v1854_v13 = vld [vmem:[#allocation6 + $0x100] sm:$0xff] }
 0x491   : > { %v8129_v24 = vadd.f32 %v1844_v22, %v8034_v52  ;;  %2202 = vmatpush.bf16.msrb.mxu0 %v6284_v16  ;;  %v6280_v22 = vor.u32 %v7361_v18, %v6279_v17 }
 0x493   : > { %v1850_v30 = vmax.f32 %v8129_v24, 0.0 }
 0x494   : > { %v1836_v15 = vpop.f32.mrf.mxu0 }
 0x495   : > { %v1842_v33 = vmul.f32 %v8120_v53, %v1836_v15  ;;  %v1916_v35 = vpack.c.bf16 %v1850_v30, %v1849_v29  ;;  %v1856_v52 = vrot.slane %v1850_v30, 7  ;;  %v1862_v38 = vrot.slane %v1850_v30, 1  ;;  %2203 = vmatpush.bf16.msrb.mxu0 %v6280_v22 }
 0x496   : > { %v6276_v29 = vor.u32 %v7360_v60, %v6275_v25  ;;  %v6319_v25 = vld [vmem:[#allocation4 + $0x830] sm:$0xf]  ;;  %v7371_v60 = vld [vmem:[#allocation4 + $0x834] sm:$0xf0] }
 0x497   : > { %v1845_v36 = vadd.f32 %v1842_v33, %v1755_v32  ;;  %2091 = vmatmul.bf16.vlgmr.msrb.gmra.mxu2 %v1916_v35  ;;  %v1859_v48 = vsel %vm1362_vm3, %v1855_v41, %v1856_v52 }
 0x499   : > { %v8135_v49 = vadd.f32 %v1845_v36, %v8041_v21  ;;  %v1865_v21 = vsel %vm1369_vm4, %v1861_v43, %v1862_v38  ;;  %2204 = vmatpush.bf16.msrb.mxu0 %v6276_v29  ;;  %v6320_v29 = vor.u32 %v7371_v60, %v6319_v25  ;;  %v7377_v25 = vld [vmem:[#allocation4 + $0x894] sm:$0xf0] }
 0x49b   : > { %v1851_v39 = vmax.f32 %v8135_v49, 0.0 }
 0x49c   : > { %v1838_v40 = vpop.f32.mrf.mxu0 }
 0x49d   : > { %v1857_v45 = vrot.slane %v1851_v39, 7  ;;  %v1863_v46 = vrot.slane %v1851_v39, 1  ;;  %v1919_v54 = vpack.c.bf16 %v1851_v39, %v1851_v39  ;;  %v6331_v39 = vld [vmem:[#allocation4 + $0x860] sm:$0xf] }
 0x49f   : > { %v1860_v50 = vsel %vm1362_vm3, %v1857_v45, %v1855_v41  ;;  %v1864_v51 = vsel %vm1369_vm4, %v1862_v38, %v1863_v46  ;;  %v1858_v56 = vsel %vm1362_vm3, %v1856_v52, %v1857_v45  ;;  %v1866_v34 = vsel %vm1369_vm4, %v1863_v46, %v1861_v43  ;;  %v6335_v52 = vld [vmem:[#allocation4 + $0x870] sm:$0xf]  ;;  %v7375_v38 = vld [vmem:[#allocation4 + $0x874] sm:$0xf0]  ;;  %v7374_v41 = vld [vmem:[#allocation4 + $0x864] sm:$0xf0] }
 0x4a0   : > { %v1915_v5 = vpack.c.bf16 %v1859_v48, %v1860_v50  ;;  %v1917_v6 = vpack.c.bf16 %v1864_v51, %v1865_v21  ;;  %v1918_v57 = vpack.c.bf16 %v1858_v56, %v1858_v56  ;;  %v1920_v58 = vpack.c.bf16 %v1866_v34, %v1866_v34  ;;  %v6327_v50 = vld [vmem:[#allocation4 + $0x850] sm:$0xf]  ;;  %v7373_v51 = vld [vmem:[#allocation4 + $0x854] sm:$0xf0]  ;;  %v1852_v21 = vld [vmem:[#allocation6 + $0xe0] sm:$0xff] }
 0x4a1   : > { %v6336_v40 = vor.u32 %v7375_v38, %v6335_v52  ;;  %v6332_v45 = vor.u32 %v7374_v41, %v6331_v39  ;;  %v6328_v34 = vor.u32 %v7373_v51, %v6327_v50  ;;  %v7368_v52 = vld [vmem:[#allocation4 + $0x804] sm:$0xf0]  ;;  %v7383_v41 = vld [vmem:[#allocation4 + $0x8f4] sm:$0xf0]  ;;  %v6359_v51 = vld [vmem:[#allocation4 + $0x8d0] sm:$0xf] }
 0x4a2   : > { %2073 = vmatmul.bf16.vlgmr.msrb.gmra.mxu1 %v1915_v5  ;;  %2109 = vmatmul.bf16.vlgmr.msrb.gmra.mxu3 %v1917_v6 }
 0x4a3   : > { %2293 = vmatpush.bf16.msra.mxu1 %v6336_v40  ;;  %v6367_v40 = vld [vmem:[#allocation4 + $0x8f0] sm:$0xf] }
 0x4a7   : > { %2096 = vmatmul.bf16.gmra.mxu2 %v1919_v54  ;;  %v1853_v54 = vld [vmem:[#allocation6 + $0xf0] sm:$0xff]  ;;  %2294 = vmatpush.bf16.msra.mxu1 %v6332_v45  ;;  %v6368_v45 = vor.u32 %v7383_v41, %v6367_v40 }
 0x4a9   : > { %2386 = vmatpush.bf16.msra.mxu2 %v6368_v45 }
 0x4ab   : > { %2295 = vmatpush.bf16.msra.mxu1 %v6328_v34 }
 0x4af   : > { %2296 = vmatpush.bf16.msra.mxu1 %v6324_v1 }
 0x4b2   : > { %2078 = vmatmul.bf16.gmra.mxu1 %v1918_v57  ;;  %2114 = vmatmul.bf16.gmra.mxu3 %v1920_v58 }
 0x4b3   : > { %2297 = vmatpush.bf16.msra.mxu1 %v6320_v29  ;;  %v6339_v29 = vld [vmem:[#allocation4 + $0x880] sm:$0xf] }
 0x51a   : > { %v2092_v30 = vpop.f32.mrf.mxu2 }
 0x51f   : > { %v2074_v31 = vpop.f32.mrf.mxu1 }
 0x520   : > { %v2093_v33 = vadd.f32 %v2092_v30, %v2074_v31  ;;  %v6315_v30 = vld [vmem:[#allocation4 + $0x820] sm:$0xf]  ;;  %v7370_v31 = vld [vmem:[#allocation4 + $0x824] sm:$0xf0] }
 0x522   : > { %v2094_v32 = vpop.f32.mrf.mxu2 }
 0x525   : > { %v2110_v15 = vpop.f32.mrf.mxu3 }
 0x526   : > { %v2111_v36 = vadd.f32 %v2110_v15, %v2093_v33  ;;  %v6311_v15 = vld [vmem:[#allocation4 + $0x810] sm:$0xf]  ;;  %v7369_v33 = vld [vmem:[#allocation4 + $0x814] sm:$0xf0] }
 0x527   : > { %v2076_v35 = vpop.f32.mrf.mxu1 }
 0x528   : > { %v2119_v46 = vmul.f32 %v8104_v4, %v2111_v36  ;;  %v2095_v48 = vadd.f32 %v2094_v32, %v2076_v35  ;;  %v6316_v32 = vor.u32 %v7370_v31, %v6315_v30  ;;  %v6312_v35 = vor.u32 %v7369_v33, %v6311_v15  ;;  %v6307_v36 = vld [vmem:[#allocation4 + $0x800] sm:$0xf]  ;;  %v7376_v30 = vld [vmem:[#allocation4 + $0x884] sm:$0xf0] }
 0x529   : > { %v6308_v38 = vor.u32 %v7368_v52, %v6307_v36  ;;  %v6340_v31 = vor.u32 %v7376_v30, %v6339_v29  ;;  %v2225_v36 = vld [vmem:[#allocation6 + $0x150] sm:$0xff] }
 0x52a   : > { %v2097_v43 = vpop.f32.mrf.mxu2  ;;  %v2122_v57 = vadd.f32 %v2119_v46, %v1852_v21  ;;  %2298 = vmatpush.bf16.msra.mxu1 %v6316_v32  ;;  %v7382_v46 = vld [vmem:[#allocation4 + $0x8e4] sm:$0xf0]  ;;  %v7381_v21 = vld [vmem:[#allocation4 + $0x8d4] sm:$0xf0]  ;;  %v2224_v32 = vld [vmem:[#allocation6 + $0x140] sm:$0xff] }
 0x52b   : > { %v6455_v29 = vld [vmem:[#allocation4 + $0xa50] sm:$0xf] }
 0x52c   : > { %v2125_v47 = vmax.f32 %v2122_v57, 0.0 }
 0x52d   : > { %v2112_v5 = vpop.f32.mrf.mxu3 }
 0x52e   : > { %v2113_v6 = vadd.f32 %v2112_v5, %v2095_v48  ;;  %2299 = vmatpush.bf16.msra.mxu1 %v6312_v35  ;;  %v2128_v5 = vld [vmem:[#allocation6 + $0x110] sm:$0xff] }
 0x52f   : > { %v2079_v56 = vpop.f32.mrf.mxu1 }
 0x530   : > { %v2120_v58 = vmul.f32 %v8116_v14, %v2113_v6  ;;  %v2098_v7 = vadd.f32 %v2097_v43, %v2079_v56  ;;  %v6363_v43 = vld [vmem:[#allocation4 + $0x8e0] sm:$0xf]  ;;  %v6360_v56 = vor.u32 %v7381_v21, %v6359_v51 }
 0x531   : > { %v6364_v48 = vor.u32 %v7382_v46, %v6363_v43  ;;  %v2129_v6 = vld [vmem:[#allocation6 + $0x120] sm:$0xff] }
 0x532   : > { %v2123_v63 = vadd.f32 %v2120_v58, %v1853_v54  ;;  %v2099_v0 = vpop.f32.mrf.mxu2  ;;  %2300 = vmatpush.bf16.msra.mxu1 %v6308_v38  ;;  %v6355_v58 = vld [vmem:[#allocation4 + $0x8c0] sm:$0xf] }
 0x533   : > { %2387 = vmatpush.bf16.msra.mxu2 %v6364_v48  ;;  %v2226_v43 = vld [vmem:[#allocation6 + $0x160] sm:$0xff] }
 0x534   : > { %v2126_v2 = vmax.f32 %v2123_v63, 0.0  ;;  %v6356_v63 = vor.u32 %v7380_v59, %v6355_v58  ;;  %v6423_v58 = vld [vmem:[#allocation4 + $0x9d0] sm:$0xf]  ;;  %v7397_v59 = vld [vmem:[#allocation4 + $0x9d4] sm:$0xf0] }
 0x535   : > { %v2115_v8 = vpop.f32.mrf.mxu3 }
 0x536   : > { %v2147_v9 = vpack.c.bf16 %v2126_v2, %v2125_v47  ;;  %v2116_v10 = vadd.f32 %v2115_v8, %v2098_v7  ;;  %v2130_v8 = vld [vmem:[#allocation6 + $0x130] sm:$0xff] }
 0x537   : > { %v2081_v11 = vpop.f32.mrf.mxu1  ;;  %2388 = vmatpush.bf16.msra.mxu2 %v6360_v56  ;;  %v6427_v56 = vld [vmem:[#allocation4 + $0x9e0] sm:$0xf] }
 0x538   : > { %2205 = vmatmul.bf16.vlgmr.msrb.gmra.mxu0 %v2147_v9  ;;  %v2121_v12 = vmul.f32 %v8120_v53, %v2116_v10 }
 0x53a   : > { %v2124_v17 = vadd.f32 %v2121_v12, %v1854_v13  ;;  %v6351_v13 = vld [vmem:[#allocation4 + $0x8b0] sm:$0xf] }
 0x53b   : > { %2389 = vmatpush.bf16.msra.mxu2 %v6356_v63  ;;  %v6399_v63 = vld [vmem:[#allocation4 + $0x970] sm:$0xf] }
 0x53c   : > { %v2127_v18 = vmax.f32 %v2124_v17, 0.0 }
 0x53d   : > { %v2117_v16 = vpop.f32.mrf.mxu3 }
 0x53e   : > { %v2148_v22 = vpack.c.bf16 %v2127_v18, %v2127_v18  ;;  %v7379_v16 = vld [vmem:[#allocation4 + $0x8b4] sm:$0xf0]  ;;  %v7378_v18 = vld [vmem:[#allocation4 + $0x8a4] sm:$0xf0] }
 0x53f   : > { %v6352_v17 = vor.u32 %v7379_v16, %v6351_v13  ;;  %v6459_v16 = vld [vmem:[#allocation4 + $0xa60] sm:$0xf] }
 0x541   : > { %2390 = vmatpush.bf16.msra.mxu2 %v6352_v17  ;;  %v7406_v17 = vld [vmem:[#allocation4 + $0xa64] sm:$0xf0] }
 0x548   : > { %2210 = vmatmul.bf16.gmra.mxu0 %v2148_v22  ;;  %v6343_v22 = vld [vmem:[#allocation4 + $0x890] sm:$0xf] }
 0x549   : > { %v6344_v60 = vor.u32 %v7377_v25, %v6343_v22  ;;  %v6391_v25 = vld [vmem:[#allocation4 + $0x950] sm:$0xf] }
 0x5b5   : > { %v2206_v39 = vpop.f32.mrf.mxu0 }
 0x5b6   : > { %v2215_v50 = vmul.f32 %v8104_v4, %v2206_v39 }
 0x5b8   : > { %v2218_v34 = vadd.f32 %v2215_v50, %v2128_v5  ;;  %v6431_v5 = vld [vmem:[#allocation4 + $0x9f0] sm:$0xf] }
 0x5ba   : > { %v2221_v0 = vadd.f32 %v2218_v34, %v8126_v19  ;;  %v6347_v19 = vld [vmem:[#allocation4 + $0x8a0] sm:$0xf]  ;;  %v7398_v34 = vld [vmem:[#allocation4 + $0x9e4] sm:$0xf0] }
 0x5bd   : > { %v2208_v54 = vpop.f32.mrf.mxu0 }
 0x5be   : > { %v2216_v57 = vmul.f32 %v8116_v14, %v2208_v54 }
 0x5c0   : > { %v2219_v62 = vadd.f32 %v2216_v57, %v2129_v6  ;;  %v7399_v6 = vld [vmem:[#allocation4 + $0x9f4] sm:$0xf0]  ;;  %v6428_v57 = vor.u32 %v7398_v34, %v6427_v56  ;;  %v6447_v34 = vld [vmem:[#allocation4 + $0xa30] sm:$0xf] }
 0x5c1   : > { %v6432_v54 = vor.u32 %v7399_v6, %v6431_v5  ;;  %v7393_v5 = vld [vmem:[#allocation4 + $0x994] sm:$0xf0] }
 0x5c2   : > { %v2222_v1 = vadd.f32 %v2219_v62, %v8129_v24  ;;  %v6348_v24 = vor.u32 %v7378_v18, %v6347_v19  ;;  %v6424_v62 = vor.u32 %v7397_v59, %v6423_v58  ;;  %v6415_v19 = vld [vmem:[#allocation4 + $0x9b0] sm:$0xf]  ;;  %v6460_v18 = vor.u32 %v7406_v17, %v6459_v16  ;;  %v7387_v56 = vld [vmem:[#allocation4 + $0x934] sm:$0xf0]  ;;  %v6403_v59 = vld [vmem:[#allocation4 + $0x980] sm:$0xf] }
 0x5c3   : > { %2644 = vmatpush.bf16.msra.mxu0 %v6432_v54  ;;  %v6383_v54 = vld [vmem:[#allocation4 + $0x930] sm:$0xf]  ;;  %v7403_v58 = vld [vmem:[#allocation4 + $0xa34] sm:$0xf0] }
 0x5c4   : > { %v2243_v47 = vpack.c.bf16 %v2222_v1, %v2221_v0  ;;  %2391 = vmatpush.bf16.msra.mxu2 %v6348_v24  ;;  %v7391_v0 = vld [vmem:[#allocation4 + $0x974] sm:$0xf0]  ;;  %v6463_v1 = vld [vmem:[#allocation4 + $0xa70] sm:$0xf] }
 0x5c5   : > { %v2211_v2 = vpop.f32.mrf.mxu0  ;;  %v7395_v24 = vld [vmem:[#allocation4 + $0x9b4] sm:$0xf0]  ;;  %v6439_v17 = vld [vmem:[#allocation4 + $0xa10] sm:$0xf] }
 0x5c6   : > { %2301 = vmatmul.bf16.vlgmr.msra.gmra.mxu1 %v2243_v47  ;;  %v2217_v7 = vmul.f32 %v8120_v53, %v2211_v2  ;;  %v6400_v47 = vor.u32 %v7391_v0, %v6399_v63  ;;  %v7407_v2 = vld [vmem:[#allocation4 + $0xa74] sm:$0xf0]  ;;  %v6416_v22 = vor.u32 %v7395_v24, %v6415_v19  ;;  %v6448_v63 = vor.u32 %v7403_v58, %v6447_v34 }
 0x5c7   : > { %2645 = vmatpush.bf16.msra.mxu0 %v6428_v57  ;;  %v6384_v57 = vor.u32 %v7387_v56, %v6383_v54  ;;  %v7385_v16 = vld [vmem:[#allocation4 + $0x914] sm:$0xf0] }
 0x5c8   : > { %v2220_v9 = vadd.f32 %v2217_v7, %v2130_v8  ;;  %2392 = vmatpush.bf16.msra.mxu2 %v6344_v60  ;;  %v6419_v7 = vld [vmem:[#allocation4 + $0x9c0] sm:$0xf]  ;;  %v7396_v8 = vld [vmem:[#allocation4 + $0x9c4] sm:$0xf0]  ;;  %2626 = vmatpush.bf16.msra.mxu3 %v6400_v47  ;;  %v7389_v60 = vld [vmem:[#allocation4 + $0x954] sm:$0xf0] }
 0x5c9   : > { %v6392_v30 = vor.u32 %v7389_v60, %v6391_v25 }
 0x5ca   : > { %v2223_v11 = vadd.f32 %v2220_v9, %v8135_v49  ;;  %v6464_v9 = vor.u32 %v7407_v2, %v6463_v1  ;;  %v6379_v2 = vld [vmem:[#allocation4 + $0x920] sm:$0xf] }
 0x5cb   : > { %2646 = vmatpush.bf16.msra.mxu0 %v6424_v62  ;;  %v7392_v62 = vld [vmem:[#allocation4 + $0x984] sm:$0xf0] }
 0x5cc   : > { %v2244_v12 = vpack.c.bf16 %v2223_v11, %v2223_v11  ;;  %2393 = vmatpush.bf16.msra.mxu2 %v6340_v31  ;;  %2662 = vmatpush.bf16.msrb.mxu1 %v6464_v9  ;;  %v6395_v11 = vld [vmem:[#allocation4 + $0x960] sm:$0xf]  ;;  %v7405_v31 = vld [vmem:[#allocation4 + $0xa54] sm:$0xf0]  ;;  %v6404_v0 = vor.u32 %v7392_v62, %v6403_v59 }
 0x5cd   : > { %v2213_v10 = vpop.f32.mrf.mxu0 }
 0x5ce   : > { %v6420_v10 = vor.u32 %v7396_v8, %v6419_v7  ;;  %v7386_v7 = vld [vmem:[#allocation4 + $0x924] sm:$0xf0]  ;;  %v6443_v8 = vld [vmem:[#allocation4 + $0xa20] sm:$0xf] }
 0x5d0   : > { %2647 = vmatpush.bf16.msra.mxu0 %v6420_v10  ;;  %2663 = vmatpush.bf16.msrb.mxu1 %v6460_v18  ;;  %v6380_v10 = vor.u32 %v7386_v7, %v6379_v2  ;;  %v7401_v18 = vld [vmem:[#allocation4 + $0xa14] sm:$0xf0] }
 0x5d1   : > { %v6440_v24 = vor.u32 %v7401_v18, %v6439_v17 }
 0x5d4   : > { %2648 = vmatpush.bf16.msra.mxu0 %v6416_v22 }
 0x5d6   : > { %2306 = vmatmul.bf16.gmra.mxu1 %v2244_v12  ;;  %v7390_v12 = vld [vmem:[#allocation4 + $0x964] sm:$0xf0] }
 0x5d7   : > { %v6396_v13 = vor.u32 %v7390_v12, %v6395_v11  ;;  %v7402_v11 = vld [vmem:[#allocation4 + $0xa24] sm:$0xf0] }
 0x5d8   : > { %v6444_v12 = vor.u32 %v7402_v11, %v6443_v8 }
 0x5d9   : > { %2627 = vmatpush.bf16.msra.mxu3 %v6396_v13  ;;  %v6375_v13 = vld [vmem:[#allocation4 + $0x910] sm:$0xf] }
 0x5da   : > { %v6376_v19 = vor.u32 %v7385_v16, %v6375_v13 }
 0x5dd   : > { %2628 = vmatpush.bf16.msra.mxu3 %v6392_v30  ;;  %v7384_v30 = vld [vmem:[#allocation4 + $0x904] sm:$0xf0] }
 0x643   : > { %v2302_v49 = vpop.f32.mrf.mxu1 }
 0x644   : > { %v2311_v15 = vmul.f32 %v8104_v4, %v2302_v49  ;;  %v7394_v49 = vld [vmem:[#allocation4 + $0x9a4] sm:$0xf0] }
 0x646   : > { %v8160_v33 = vadd.f32 %v2311_v15, %v2224_v32  ;;  %v6411_v32 = vld [vmem:[#allocation4 + $0x9a0] sm:$0xf]  ;;  %v6456_v15 = vor.u32 %v7405_v31, %v6455_v29 }
 0x647   : > { %v6371_v29 = vld [vmem:[#allocation4 + $0x900] sm:$0xf] }
 0x648   : > { %v5392_v35 = vmul.f32 %v8160_v33, %v8160_v33  ;;  %2664 = vmatpush.bf16.msrb.mxu1 %v6456_v15  ;;  %v6435_v31 = vld [vmem:[#allocation4 + $0xa00] sm:$0xf]  ;;  %v6372_v15 = vor.u32 %v7384_v30, %v6371_v29 }
 0x64a   : > { %5436 = vrot.lane.b32.xlu1 %v5392_v35, %s7835_s10  ;;  %5398 = vrot.lane.b32.xlu0 %v5392_v35, %s7836_s11 }
 0x64b   : > { %v2304_v52 = vpop.f32.mrf.mxu1 }
 0x64c   : > { %v2312_v38 = vmul.f32 %v8116_v14, %v2304_v52 }
 0x64e   : > { %v8165_v39 = vadd.f32 %v2312_v38, %v2225_v36  ;;  %v6387_v38 = vld [vmem:[#allocation4 + $0x940] sm:$0xf] }
 0x650   : > { %v5393_v40 = vmul.f32 %v8165_v39, %v8165_v39  ;;  %v2336_v41 = vpack.c.bf16 %v8165_v39, %v8160_v33 }
 0x652   : > { %5473 = vrot.lane.b32.xlu0 %v5392_v35, %s7837_s12  ;;  %5438 = vrot.lane.b32.xlu1 %v5393_v40, %s7835_s10 }
 0x653   : > { %2394 = vmatmul.bf16.vlgmr.msra.gmra.mxu2 %v2336_v41  ;;  %v2307_v45 = vpop.f32.mrf.mxu1  ;;  %v6451_v41 = vld [vmem:[#allocation4 + $0xa40] sm:$0xf] }
 0x654   : > { %v2313_v46 = vmul.f32 %v8120_v53, %v2307_v45 }
 0x656   : > { %v8172_v48 = vadd.f32 %v2313_v46, %v2226_v43 }
 0x658   : > { %v5394_v50 = vmul.f32 %v8172_v48, %v8172_v48  ;;  %v2337_v21 = vpack.c.bf16 %v8172_v48, %v8172_v48 }
 0x65a   : > { %5510 = vrot.lane.b32.xlu0 %v5392_v35, %s7838_s13  ;;  %5475 = vrot.lane.b32.xlu1 %v5393_v40, %s7837_s12  ;;  %v6412_v35 = vor.u32 %v7394_v49, %v6411_v32 }
 0x65b   : > { %5402 = vrot.lane.b32.xlu2 %v5394_v50, %s7836_s11  ;;  %v2309_v51 = vpop.f32.mrf.mxu1 }
 0x65c   : > { %2649 = vmatpush.bf16.msra.mxu0 %v6412_v35  ;;  %v7400_v35 = vld [vmem:[#allocation4 + $0xa04] sm:$0xf0] }
 0x662   : > { %5512 = vrot.lane.b32.xlu1 %v5393_v40, %s7838_s13  ;;  %5400 = vrot.lane.b32.xlu0 %v5393_v40, %s7836_s11  ;;  %v7388_v40 = vld [vmem:[#allocation4 + $0x944] sm:$0xf0] }
 0x663   : > { %5440 = vrot.lane.b32.xlu2 %v5394_v50, %s7835_s10  ;;  %2399 = vmatmul.bf16.gmra.mxu2 %v2337_v21  ;;  %v6388_v46 = vor.u32 %v7388_v40, %v6387_v38  ;;  %v6407_v21 = vld [vmem:[#allocation4 + $0x990] sm:$0xf] }
 0x664   : > { %v6408_v6 = vor.u32 %v7393_v5, %v6407_v21  ;;  %v2318_v5 = vld [vmem:[#allocation6 + $0x180] sm:$0xff] }
 0x665   : > { %2629 = vmatpush.bf16.msra.mxu3 %v6388_v46 }
 0x666   : > { %2650 = vmatpush.bf16.msra.mxu0 %v6408_v6 }
 0x669   : > { %2630 = vmatpush.bf16.msra.mxu3 %v6384_v57 }
 0x66a   : > { %2651 = vmatpush.bf16.msra.mxu0 %v6404_v0 }
 0x66b   : > { %5477 = vrot.lane.b32.xlu2 %v5394_v50, %s7837_s12 }
 0x66d   : > { %2631 = vmatpush.bf16.msra.mxu3 %v6380_v10 }
 0x671   : > { %2632 = vmatpush.bf16.msra.mxu3 %v6376_v19 }
 0x673   : > { %5514 = vrot.lane.b32.xlu2 %v5394_v50, %s7838_s13  ;;  %v7404_v50 = vld [vmem:[#allocation4 + $0xa44] sm:$0xf0] }
 0x674   : > { %v6452_v51 = vor.u32 %v7404_v50, %v6451_v41 }
 0x675   : > { %2633 = vmatpush.bf16.msra.mxu3 %v6372_v15 }
 0x676   : > { %2665 = vmatpush.bf16.msrb.mxu1 %v6452_v51  ;;  %v2317_v51 = vld [vmem:[#allocation6 + $0x170] sm:$0xff] }
 0x67a   : > { %2666 = vmatpush.bf16.msrb.mxu1 %v6448_v63 }
 0x67e   : > { %2667 = vmatpush.bf16.msrb.mxu1 %v6444_v12 }
 0x682   : > { %2668 = vmatpush.bf16.msrb.mxu1 %v6440_v24 }
 0x6b5   : > { %v5403_v22 = vpop.permute.xlu2 %5402 }
 0x6bc   : > { %v5437_v36 = vpop.permute.xlu1 %5436  ;;  %v5399_v52 = vpop.permute.xlu0 %5398 }
 0x6bd   : > { %v5408_v43 = vsel %vm5407_vm5, %v5399_v52, 0.0  ;;  %v5445_v45 = vsel %vm5407_vm5, %v5437_v36, 0.0  ;;  %v6436_v36 = vor.u32 %v7400_v35, %v6435_v31  ;;  %v5441_v38 = vpop.permute.xlu2 %5440 }
 0x6be   : > { %5409 = vadd.xlane.f32.xlu0 %v5408_v43  ;;  %5446 = vadd.xlane.f32.xlu2 %v5445_v45  ;;  %v5414_v45 = vsel %vm5407_vm5, %v5403_v22, 0.0  ;;  %v5451_v21 = vsel %vm5407_vm5, %v5441_v38, 0.0 }
 0x6bf   : > { %2669 = vmatpush.bf16.msrb.mxu1 %v6436_v36  ;;  %v6495_v36 = vld [vmem:[#allocation4 + $0xaf0] sm:$0xf] }
 0x6c4   : > { %v5474_v1 = vpop.permute.xlu0 %5473  ;;  %v5439_v47 = vpop.permute.xlu1 %5438 }
 0x6c5   : > { %v5482_v9 = vsel %vm5407_vm5, %v5474_v1, 0.0  ;;  %v5448_v49 = vsel %vm5407_vm5, %v5439_v47, 0.0  ;;  %v5478_v56 = vpop.permute.xlu2 %5477  ;;  %v2319_v1 = vld [vmem:[#allocation6 + $0x190] sm:$0xff] }
 0x6c6   : > { %5483 = vadd.xlane.f32.xlu2 %v5482_v9  ;;  %v5488_v0 = vsel %vm5407_vm5, %v5478_v56, 0.0 }
 0x6cc   : > { %v5511_v25 = vpop.permute.xlu0 %5510  ;;  %v5476_v60 = vpop.permute.xlu1 %5475 }
 0x6cd   : > { %v5485_v32 = vsel %vm5407_vm5, %v5476_v60, 0.0  ;;  %v5519_v41 = vsel %vm5407_vm5, %v5511_v25, 0.0  ;;  %v5515_v7 = vpop.permute.xlu2 %5514 }
 0x6ce   : > { %5486 = vadd.xlane.f32.xlu0 %v5485_v32  ;;  %5449 = vadd.xlane.f32.xlu2 %v5448_v49  ;;  %v5525_v12 = vsel %vm5407_vm5, %v5515_v7, 0.0  ;;  %v7408_v7 = vld [vmem:[#allocation4 + $0xa84] sm:$0xf0] }
 0x6d4   : > { %v5401_v52 = vpop.permute.xlu0 %5400  ;;  %v5513_v46 = vpop.permute.xlu1 %5512 }
 0x6d5   : > { %v5411_v40 = vsel %vm5407_vm5, %v5401_v52, 0.0  ;;  %v5522_v54 = vsel %vm5407_vm5, %v5513_v46, 0.0  ;;  %v7415_v52 = vld [vmem:[#allocation4 + $0xaf4] sm:$0xf0] }
 0x6d6   : > { %v2395_v43 = vpop.f32.mrf.mxu2  ;;  %5412 = vadd.xlane.f32.xlu1 %v5411_v40  ;;  %5520 = vadd.xlane.f32.xlu2 %v5519_v41  ;;  %v6496_v38 = vor.u32 %v7415_v52, %v6495_v36  ;;  %v6491_v40 = vld [vmem:[#allocation4 + $0xae0] sm:$0xf]  ;;  %v7414_v41 = vld [vmem:[#allocation4 + $0xae4] sm:$0xf0]  ;;  %v7413_v46 = vld [vmem:[#allocation4 + $0xad4] sm:$0xf0] }
 0x6d7   : > { %5415 = vadd.xlane.f32.xlu0 %v5414_v45  ;;  %v2404_v50 = vmul.f32 %v8104_v4, %v2395_v43  ;;  %v6492_v43 = vor.u32 %v7414_v41, %v6491_v40  ;;  %v6487_v45 = vld [vmem:[#allocation4 + $0xad0] sm:$0xf]  ;;  %v7439_v36 = vld [vmem:[#allocation4 + $0xc74] sm:$0xf0] }
 0x6d8   : > { %2758 = vmatpush.bf16.msrb.mxu2 %v6496_v38  ;;  %v6551_v40 = vld [vmem:[#allocation4 + $0xbd0] sm:$0xf]  ;;  %v7429_v41 = vld [vmem:[#allocation4 + $0xbd4] sm:$0xf0] }
 0x6d9   : > { %v8189_v34 = vadd.f32 %v2404_v50, %v2317_v51  ;;  %v6488_v50 = vor.u32 %v7413_v46, %v6487_v45  ;;  %v6483_v51 = vld [vmem:[#allocation4 + $0xac0] sm:$0xf] }
 0x6da   : > { %v2413_v45 = vld [vmem:[#allocation6 + $0x1a0] sm:$0xff] }
 0x6db   : > { %v2410_v59 = vmax.f32 %v8189_v34, 0.0 }
 0x6dc   : > { %2759 = vmatpush.bf16.msrb.mxu2 %v6492_v43 }
 0x6dd   : > { %v2416_v13 = vrot.slane %v2410_v59, 7  ;;  %v2422_v16 = vrot.slane %v2410_v59, 1 }
 0x6de   : > { %v2397_v6 = vpop.f32.mrf.mxu2  ;;  %5452 = vadd.xlane.f32.xlu1 %v5451_v21  ;;  %v7412_v21 = vld [vmem:[#allocation4 + $0xac4] sm:$0xf0] }
 0x6df   : > { %v2405_v57 = vmul.f32 %v8116_v14, %v2397_v6  ;;  %5523 = vadd.xlane.f32.xlu0 %v5522_v54  ;;  %v6479_v6 = vld [vmem:[#allocation4 + $0xab0] sm:$0xf]  ;;  %v7411_v54 = vld [vmem:[#allocation4 + $0xab4] sm:$0xf0] }
 0x6e0   : > { %2760 = vmatpush.bf16.msrb.mxu2 %v6488_v50  ;;  %v6480_v56 = vor.u32 %v7411_v54, %v6479_v6 }
 0x6e1   : > { %v8192_v58 = vadd.f32 %v2405_v57, %v2318_v5  ;;  %v6484_v5 = vor.u32 %v7412_v21, %v6483_v51  ;;  %v6475_v57 = vld [vmem:[#allocation4 + $0xaa0] sm:$0xf]  ;;  %v2414_v51 = vld [vmem:[#allocation6 + $0x1b0] sm:$0xff]  ;;  %v6552_v21 = vor.u32 %v7429_v41, %v6551_v40 }
 0x6e2   : > { %v6515_v41 = vld [vmem:[#allocation4 + $0xb40] sm:$0xf] }
 0x6e3   : > { %v2411_v62 = vmax.f32 %v8192_v58, 0.0 }
 0x6e4   : > { %2761 = vmatpush.bf16.msrb.mxu2 %v6484_v5 }
 0x6e5   : > { %v2477_v63 = vpack.c.bf16 %v2411_v62, %v2410_v59  ;;  %v2417_v9 = vrot.slane %v2411_v62, 7  ;;  %v2423_v10 = vrot.slane %v2411_v62, 1  ;;  %v7410_v59 = vld [vmem:[#allocation4 + $0xaa4] sm:$0xf0] }
 0x6e6   : > { %v2400_v47 = vpop.f32.mrf.mxu2  ;;  %5489 = vadd.xlane.f32.xlu1 %v5488_v0  ;;  %v6476_v62 = vor.u32 %v7410_v59, %v6475_v57  ;;  %v7409_v0 = vld [vmem:[#allocation4 + $0xa94] sm:$0xf0] }
 0x6e7   : > { %v2406_v2 = vmul.f32 %v8120_v53, %v2400_v47  ;;  %2652 = vmatmul.bf16.vlgmr.msra.gmra.mxu0 %v2477_v63  ;;  %v2420_v24 = vsel %vm1362_vm3, %v2416_v13, %v2417_v9  ;;  %v2426_v60 = vsel %vm1369_vm4, %v2422_v16, %v2423_v10  ;;  %v6471_v63 = vld [vmem:[#allocation4 + $0xa90] sm:$0xf] }
 0x6e8   : > { %2762 = vmatpush.bf16.msrb.mxu2 %v6480_v56 }
 0x6e9   : > { %v8198_v8 = vadd.f32 %v2406_v2, %v2319_v1  ;;  %v6472_v1 = vor.u32 %v7409_v0, %v6471_v63  ;;  %v6467_v2 = vld [vmem:[#allocation4 + $0xa80] sm:$0xf] }
 0x6eb   : > { %v2412_v11 = vmax.f32 %v8198_v8, 0.0 }
 0x6ec   : > { %2763 = vmatpush.bf16.msrb.mxu2 %v6476_v62 }
 0x6ed   : > { %v2418_v17 = vrot.slane %v2412_v11, 7  ;;  %v2424_v19 = vrot.slane %v2412_v11, 1  ;;  %v2480_v31 = vpack.c.bf16 %v2412_v11, %v2412_v11 }
 0x6ee   : > { %v2402_v18 = vpop.f32.mrf.mxu2  ;;  %5526 = vadd.xlane.f32.xlu1 %v5525_v12 }
 0x6ef   : > { %v2421_v22 = vsel %vm1362_vm3, %v2418_v17, %v2416_v13  ;;  %v2425_v25 = vsel %vm1369_vm4, %v2423_v10, %v2424_v19  ;;  %v2419_v32 = vsel %vm1362_vm3, %v2417_v9, %v2418_v17  ;;  %v2427_v49 = vsel %vm1369_vm4, %v2424_v19, %v2422_v16  ;;  %v6559_v18 = vld [vmem:[#allocation4 + $0xbf0] sm:$0xf] }
 0x6f0   : > { %v2476_v29 = vpack.c.bf16 %v2420_v24, %v2421_v22  ;;  %v2478_v30 = vpack.c.bf16 %v2425_v25, %v2426_v60  ;;  %v2479_v15 = vpack.c.bf16 %v2419_v32, %v2419_v32  ;;  %v2481_v35 = vpack.c.bf16 %v2427_v49, %v2427_v49  ;;  %2764 = vmatpush.bf16.msrb.mxu2 %v6472_v1  ;;  %v7431_v24 = vld [vmem:[#allocation4 + $0xbf4] sm:$0xf0]  ;;  %v6555_v22 = vld [vmem:[#allocation4 + $0xbe0] sm:$0xf]  ;;  %v7430_v60 = vld [vmem:[#allocation4 + $0xbe4] sm:$0xf0] }
 0x6f1   : > { %v6468_v9 = vor.u32 %v7408_v7, %v6467_v2  ;;  %v6560_v25 = vor.u32 %v7431_v24, %v6559_v18  ;;  %v6591_v32 = vld [vmem:[#allocation4 + $0xc70] sm:$0xf]  ;;  %v2415_v7 = vld [vmem:[#allocation6 + $0x1c0] sm:$0xff]  ;;  %v7422_v18 = vld [vmem:[#allocation4 + $0xb64] sm:$0xf0] }
 0x6f2   : > { %2634 = vmatmul.bf16.vlgmr.msra.gmra.mxu3 %v2476_v29  ;;  %2670 = vmatmul.bf16.vlgmr.msrb.gmra.mxu1 %v2478_v30  ;;  %v6527_v30 = vld [vmem:[#allocation4 + $0xb70] sm:$0xf]  ;;  %v6592_v43 = vor.u32 %v7439_v36, %v6591_v32  ;;  %v6587_v24 = vld [vmem:[#allocation4 + $0xc60] sm:$0xf]  ;;  %v7421_v32 = vld [vmem:[#allocation4 + $0xb54] sm:$0xf0] }
 0x6f3   : > { %3019 = vmatpush.bf16.msrb.mxu0 %v6560_v25  ;;  %v6543_v25 = vld [vmem:[#allocation4 + $0xbb0] sm:$0xf]  ;;  %v6539_v36 = vld [vmem:[#allocation4 + $0xba0] sm:$0xf] }
 0x6f4   : > { %2765 = vmatpush.bf16.msrb.mxu2 %v6468_v9  ;;  %3037 = vmatpush.bf16.msra.mxu1 %v6592_v43  ;;  %v7420_v43 = vld [vmem:[#allocation4 + $0xb44] sm:$0xf0] }
 0x6f7   : > { %2657 = vmatmul.bf16.gmra.mxu0 %v2480_v31  ;;  %v7423_v31 = vld [vmem:[#allocation4 + $0xb74] sm:$0xf0] }
 0x702   : > { %2639 = vmatmul.bf16.gmra.mxu3 %v2479_v15  ;;  %2675 = vmatmul.bf16.gmra.mxu1 %v2481_v35  ;;  %v6556_v15 = vor.u32 %v7430_v60, %v6555_v22  ;;  %v6528_v35 = vor.u32 %v7423_v31, %v6527_v30  ;;  %v7438_v22 = vld [vmem:[#allocation4 + $0xc64] sm:$0xf0]  ;;  %v7427_v60 = vld [vmem:[#allocation4 + $0xbb4] sm:$0xf0]  ;;  %v6519_v31 = vld [vmem:[#allocation4 + $0xb50] sm:$0xf] }
 0x703   : > { %v6544_v30 = vor.u32 %v7427_v60, %v6543_v25  ;;  %v7416_v25 = vld [vmem:[#allocation4 + $0xb04] sm:$0xf0]  ;;  %v6563_v60 = vld [vmem:[#allocation4 + $0xc00] sm:$0xf] }
 0x704   : > { %3001 = vmatpush.bf16.msrb.mxu3 %v6528_v35  ;;  %3020 = vmatpush.bf16.msrb.mxu0 %v6556_v15  ;;  %v6520_v15 = vor.u32 %v7421_v32, %v6519_v31  ;;  %v7437_v35 = vld [vmem:[#allocation4 + $0xc54] sm:$0xf0] }
 0x708   : > { %3021 = vmatpush.bf16.msrb.mxu0 %v6552_v21 }
 0x764   : > { %v2653_v47 = vpop.f32.mrf.mxu0 }
 0x76c   : > { %v2655_v10 = vpop.f32.mrf.mxu0 }
 0x76f   : > { %v2671_v11 = vpop.f32.mrf.mxu1 }
 0x774   : > { %v2658_v12 = vpop.f32.mrf.mxu0 }
 0x775   : > { %v2635_v13 = vpop.f32.mrf.mxu3 }
 0x776   : > { %v2654_v16 = vadd.f32 %v2653_v47, %v2635_v13  ;;  %v6547_v13 = vld [vmem:[#allocation4 + $0xbc0] sm:$0xf] }
 0x777   : > { %v2673_v17 = vpop.f32.mrf.mxu1 }
 0x778   : > { %v2672_v19 = vadd.f32 %v2671_v11, %v2654_v16  ;;  %v7428_v16 = vld [vmem:[#allocation4 + $0xbc4] sm:$0xf0] }
 0x77a   : > { %v2680_v52 = vmul.f32 %v8104_v4, %v2672_v19  ;;  %v6523_v19 = vld [vmem:[#allocation4 + $0xb60] sm:$0xf] }
 0x77c   : > { %v2660_v29 = vpop.f32.mrf.mxu0  ;;  %v2683_v5 = vadd.f32 %v2680_v52, %v2413_v45  ;;  %v7426_v52 = vld [vmem:[#allocation4 + $0xba4] sm:$0xf0]  ;;  %v6579_v45 = vld [vmem:[#allocation4 + $0xc40] sm:$0xf] }
 0x77d   : > { %v2637_v49 = vpop.f32.mrf.mxu3  ;;  %v6588_v29 = vor.u32 %v7438_v22, %v6587_v24  ;;  %v6540_v40 = vor.u32 %v7426_v52, %v6539_v36  ;;  %v7433_v24 = vld [vmem:[#allocation4 + $0xc14] sm:$0xf0]  ;;  %v6499_v22 = vld [vmem:[#allocation4 + $0xb00] sm:$0xf] }
 0x77e   : > { %v2656_v38 = vadd.f32 %v2655_v10, %v2637_v49  ;;  %v2686_v57 = vmax.f32 %v2683_v5, 0.0  ;;  %v6583_v49 = vld [vmem:[#allocation4 + $0xc50] sm:$0xf]  ;;  %v7425_v5 = vld [vmem:[#allocation4 + $0xb94] sm:$0xf0]  ;;  %v2690_v36 = vld [vmem:[#allocation6 + $0x1e0] sm:$0xff] }
 0x77f   : > { %v2676_v46 = vpop.f32.mrf.mxu1  ;;  %3038 = vmatpush.bf16.msra.mxu1 %v6588_v29  ;;  %v6500_v29 = vor.u32 %v7416_v25, %v6499_v22  ;;  %v7446_v22 = vld [vmem:[#allocation4 + $0xce4] sm:$0xf0] }
 0x780   : > { %v2674_v50 = vadd.f32 %v2673_v17, %v2656_v38  ;;  %v6548_v17 = vor.u32 %v7428_v16, %v6547_v13  ;;  %v6584_v38 = vor.u32 %v7437_v35, %v6583_v49  ;;  %v6503_v16 = vld [vmem:[#allocation4 + $0xb10] sm:$0xf] }
 0x782   : > { %v2681_v6 = vmul.f32 %v8116_v14, %v2674_v50  ;;  %3022 = vmatpush.bf16.msrb.mxu0 %v6548_v17  ;;  %v7436_v50 = vld [vmem:[#allocation4 + $0xc44] sm:$0xf0]  ;;  %v7417_v17 = vld [vmem:[#allocation4 + $0xb14] sm:$0xf0] }
 0x783   : > { %3039 = vmatpush.bf16.msra.mxu1 %v6584_v38  ;;  %v6580_v21 = vor.u32 %v7436_v50, %v6579_v45  ;;  %v2691_v50 = vld [vmem:[#allocation6 + $0x1f0] sm:$0xff] }
 0x784   : > { %v2684_v54 = vadd.f32 %v2681_v6, %v2414_v51  ;;  %v6535_v51 = vld [vmem:[#allocation4 + $0xb90] sm:$0xf] }
 0x785   : > { %v2640_v56 = vpop.f32.mrf.mxu3  ;;  %v6536_v6 = vor.u32 %v7425_v5, %v6535_v51 }
 0x786   : > { %v2687_v59 = vmax.f32 %v2684_v54, 0.0  ;;  %v2659_v62 = vadd.f32 %v2658_v12, %v2640_v56  ;;  %v6524_v12 = vor.u32 %v7422_v18, %v6523_v19  ;;  %3023 = vmatpush.bf16.msrb.mxu0 %v6544_v30  ;;  %v6511_v54 = vld [vmem:[#allocation4 + $0xb30] sm:$0xf]  ;;  %v7419_v56 = vld [vmem:[#allocation4 + $0xb34] sm:$0xf0]  ;;  %v6504_v18 = vor.u32 %v7417_v17, %v6503_v16 }
 0x787   : > { %v2678_v63 = vpop.f32.mrf.mxu1  ;;  %3040 = vmatpush.bf16.msra.mxu1 %v6580_v21  ;;  %v6567_v19 = vld [vmem:[#allocation4 + $0xc10] sm:$0xf]  ;;  %v7432_v30 = vld [vmem:[#allocation4 + $0xc04] sm:$0xf0] }
 0x788   : > { %v2708_v0 = vpack.c.bf16 %v2687_v59, %v2686_v57  ;;  %v2677_v1 = vadd.f32 %v2676_v46, %v2659_v62  ;;  %3002 = vmatpush.bf16.msrb.mxu3 %v6524_v12  ;;  %v6516_v46 = vor.u32 %v7420_v43, %v6515_v41  ;;  %v6575_v57 = vld [vmem:[#allocation4 + $0xc30] sm:$0xf]  ;;  %v6512_v59 = vor.u32 %v7419_v56, %v6511_v54  ;;  %v7435_v62 = vld [vmem:[#allocation4 + $0xc34] sm:$0xf0]  ;;  %v6531_v63 = vld [vmem:[#allocation4 + $0xb80] sm:$0xf] }
 0x789   : > { %v6568_v12 = vor.u32 %v7433_v24, %v6567_v19  ;;  %v6564_v31 = vor.u32 %v7432_v30, %v6563_v60  ;;  %v6623_v19 = vld [vmem:[#allocation4 + $0xcf0] sm:$0xf] }
 0x78a   : > { %2766 = vmatmul.bf16.vlgmr.msrb.gmra.mxu2 %v2708_v0  ;;  %v2682_v47 = vmul.f32 %v8120_v53, %v2677_v1  ;;  %3024 = vmatpush.bf16.msrb.mxu0 %v6540_v40  ;;  %v7424_v0 = vld [vmem:[#allocation4 + $0xb84] sm:$0xf0]  ;;  %v6576_v1 = vor.u32 %v7435_v62, %v6575_v57  ;;  %v6615_v60 = vld [vmem:[#allocation4 + $0xcd0] sm:$0xf] }
 0x78c   : > { %v2685_v9 = vadd.f32 %v2682_v47, %v2415_v7  ;;  %3003 = vmatpush.bf16.msrb.mxu3 %v6520_v15  ;;  %v6532_v47 = vor.u32 %v7424_v0, %v6531_v63  ;;  %3041 = vmatpush.bf16.msra.mxu1 %v6576_v1  ;;  %v7418_v7 = vld [vmem:[#allocation4 + $0xb24] sm:$0xf0]  ;;  %v2689_v15 = vld [vmem:[#allocation6 + $0x1d0] sm:$0xff] }
 0x78d   : > { %v2642_v2 = vpop.f32.mrf.mxu3 }
 0x78e   : > { %v2688_v10 = vmax.f32 %v2685_v9, 0.0  ;;  %3025 = vmatpush.bf16.msrb.mxu0 %v6536_v6  ;;  %v6507_v2 = vld [vmem:[#allocation4 + $0xb20] sm:$0xf] }
 0x78f   : > { %v6571_v9 = vld [vmem:[#allocation4 + $0xc20] sm:$0xf] }
 0x790   : > { %v2709_v11 = vpack.c.bf16 %v2688_v10, %v2688_v10  ;;  %3004 = vmatpush.bf16.msrb.mxu3 %v6516_v46  ;;  %v6508_v10 = vor.u32 %v7418_v7, %v6507_v2 }
 0x792   : > { %3026 = vmatpush.bf16.msrb.mxu0 %v6532_v47 }
 0x794   : > { %3005 = vmatpush.bf16.msrb.mxu3 %v6512_v59 }
 0x798   : > { %3006 = vmatpush.bf16.msrb.mxu3 %v6508_v10 }
 0x79a   : > { %2771 = vmatmul.bf16.gmra.mxu2 %v2709_v11  ;;  %v7434_v11 = vld [vmem:[#allocation4 + $0xc24] sm:$0xf0] }
 0x79b   : > { %v6572_v13 = vor.u32 %v7434_v11, %v6571_v9 }
 0x79c   : > { %3007 = vmatpush.bf16.msrb.mxu3 %v6504_v18  ;;  %v7447_v18 = vld [vmem:[#allocation4 + $0xcf4] sm:$0xf0] }
 0x79d   : > { %3042 = vmatpush.bf16.msra.mxu1 %v6572_v13  ;;  %v6624_v24 = vor.u32 %v7447_v18, %v6623_v19 }
 0x79f   : > { %3133 = vmatpush.bf16.msra.mxu2 %v6624_v24 }
 0x7a0   : > { %3008 = vmatpush.bf16.msrb.mxu3 %v6500_v29  ;;  %v7445_v29 = vld [vmem:[#allocation4 + $0xcd4] sm:$0xf0] }
 0x7a1   : > { %3043 = vmatpush.bf16.msra.mxu1 %v6568_v12  ;;  %v6619_v12 = vld [vmem:[#allocation4 + $0xce0] sm:$0xf]  ;;  %v6616_v30 = vor.u32 %v7445_v29, %v6615_v60 }
 0x7a2   : > { %v6620_v25 = vor.u32 %v7446_v22, %v6619_v12 }
 0x7a4   : > { %3134 = vmatpush.bf16.msra.mxu2 %v6620_v25 }
 0x7a5   : > { %3044 = vmatpush.bf16.msra.mxu1 %v6564_v31  ;;  %v6611_v31 = vld [vmem:[#allocation4 + $0xcc0] sm:$0xf] }
 0x7a8   : > { %3135 = vmatpush.bf16.msra.mxu2 %v6616_v30  ;;  %v2790_v30 = vld [vmem:[#allocation6 + $0x220] sm:$0xff] }
 0x80d   : > { %v2767_v32 = vpop.f32.mrf.mxu2 }
 0x80e   : > { %v2776_v49 = vmul.f32 %v8104_v4, %v2767_v32  ;;  %v7444_v32 = vld [vmem:[#allocation4 + $0xcc4] sm:$0xf0] }
 0x810   : > { %v2779_v35 = vadd.f32 %v2776_v49, %v2689_v15  ;;  %v6612_v49 = vor.u32 %v7444_v32, %v6611_v31  ;;  %v6607_v15 = vld [vmem:[#allocation4 + $0xcb0] sm:$0xf] }
 0x812   : > { %v8220_v40 = vadd.f32 %v2779_v35, %v8189_v34  ;;  %3136 = vmatpush.bf16.msra.mxu2 %v6612_v49  ;;  %v7443_v35 = vld [vmem:[#allocation4 + $0xcb4] sm:$0xf0] }
 0x814   : > { %v2785_v45 = vmax.f32 %v8220_v40, 0.0 }
 0x815   : > { %v2769_v52 = vpop.f32.mrf.mxu2 }
 0x816   : > { %v2777_v38 = vmul.f32 %v8116_v14, %v2769_v52  ;;  %v2791_v59 = vrot.slane %v2785_v45, 7  ;;  %v2797_v62 = vrot.slane %v2785_v45, 1  ;;  %v6603_v52 = vld [vmem:[#allocation4 + $0xca0] sm:$0xf] }
 0x818   : > { %v2780_v41 = vadd.f32 %v2777_v38, %v2690_v36  ;;  %v6608_v36 = vor.u32 %v7443_v35, %v6607_v15  ;;  %v7442_v38 = vld [vmem:[#allocation4 + $0xca4] sm:$0xf0] }
 0x81a   : > { %v8223_v43 = vadd.f32 %v2780_v41, %v8192_v58  ;;  %3137 = vmatpush.bf16.msra.mxu2 %v6608_v36  ;;  %v6604_v41 = vor.u32 %v7442_v38, %v6603_v52  ;;  %v3066_v52 = vld [vmem:[#allocation6 + $0x250] sm:$0xff] }
 0x81c   : > { %v2786_v46 = vmax.f32 %v8223_v43, 0.0 }
 0x81d   : > { %v2772_v51 = vpop.f32.mrf.mxu2 }
 0x81e   : > { %v2778_v21 = vmul.f32 %v8120_v53, %v2772_v51  ;;  %v2852_v5 = vpack.c.bf16 %v2786_v46, %v2785_v45  ;;  %v2792_v34 = vrot.slane %v2786_v46, 7  ;;  %v2798_v56 = vrot.slane %v2786_v46, 1  ;;  %3138 = vmatpush.bf16.msra.mxu2 %v6604_v41  ;;  %v6599_v45 = vld [vmem:[#allocation4 + $0xc90] sm:$0xf]  ;;  %v7441_v46 = vld [vmem:[#allocation4 + $0xc94] sm:$0xf0] }
 0x81f   : > { %v3065_v41 = vld [vmem:[#allocation6 + $0x240] sm:$0xff] }
 0x820   : > { %v2781_v6 = vadd.f32 %v2778_v21, %v2691_v50  ;;  %3027 = vmatmul.bf16.vlgmr.msrb.gmra.mxu0 %v2852_v5  ;;  %v2795_v1 = vsel %vm1362_vm3, %v2791_v59, %v2792_v34  ;;  %v6600_v50 = vor.u32 %v7441_v46, %v6599_v45  ;;  %v6595_v21 = vld [vmem:[#allocation4 + $0xc80] sm:$0xf]  ;;  %v7440_v5 = vld [vmem:[#allocation4 + $0xc84] sm:$0xf0] }
 0x822   : > { %v8229_v54 = vadd.f32 %v2781_v6, %v8198_v8  ;;  %v2801_v8 = vsel %vm1369_vm4, %v2797_v62, %v2798_v56  ;;  %3139 = vmatpush.bf16.msra.mxu2 %v6600_v50  ;;  %v6596_v6 = vor.u32 %v7440_v5, %v6595_v21  ;;  %v3064_v50 = vld [vmem:[#allocation6 + $0x230] sm:$0xff] }
 0x824   : > { %v2787_v57 = vmax.f32 %v8229_v54, 0.0 }
 0x825   : > { %v2774_v58 = vpop.f32.mrf.mxu2 }
 0x826   : > { %v2793_v63 = vrot.slane %v2787_v57, 7  ;;  %v2799_v0 = vrot.slane %v2787_v57, 1  ;;  %v2855_v10 = vpack.c.bf16 %v2787_v57, %v2787_v57  ;;  %3140 = vmatpush.bf16.msra.mxu2 %v6596_v6 }
 0x828   : > { %v2796_v47 = vsel %vm1362_vm3, %v2793_v63, %v2791_v59  ;;  %v2800_v2 = vsel %vm1369_vm4, %v2798_v56, %v2799_v0  ;;  %v2794_v11 = vsel %vm1362_vm3, %v2792_v34, %v2793_v63  ;;  %v2802_v13 = vsel %vm1369_vm4, %v2799_v0, %v2797_v62 }
 0x829   : > { %v2851_v7 = vpack.c.bf16 %v2795_v1, %v2796_v47  ;;  %v2853_v9 = vpack.c.bf16 %v2800_v2, %v2801_v8  ;;  %v2854_v16 = vpack.c.bf16 %v2794_v11, %v2794_v11  ;;  %v2856_v17 = vpack.c.bf16 %v2802_v13, %v2802_v13  ;;  %v2788_v8 = vld [vmem:[#allocation6 + $0x200] sm:$0xff] }
 0x82a   : > { %vm3237_vm3 = vcmask 195584   ;;  %vm5494_vm4 = vcmask 392448  }
 0x82b   : > { %3009 = vmatmul.bf16.vlgmr.msrb.gmra.mxu3 %v2851_v7  ;;  %3045 = vmatmul.bf16.vlgmr.msra.gmra.mxu1 %v2853_v9 }
 0x830   : > { %3032 = vmatmul.bf16.gmra.mxu0 %v2855_v10  ;;  %v2789_v10 = vld [vmem:[#allocation6 + $0x210] sm:$0xff] }
 0x83b   : > { %3014 = vmatmul.bf16.gmra.mxu3 %v2854_v16  ;;  %3050 = vmatmul.bf16.gmra.mxu1 %v2856_v17 }
 0x89d   : > { %v3028_v51 = vpop.f32.mrf.mxu0 }
 0x8a5   : > { %v3030_v34 = vpop.f32.mrf.mxu0 }
 0x8a8   : > { %v3046_v56 = vpop.f32.mrf.mxu1 }
 0x8ad   : > { %v3033_v57 = vpop.f32.mrf.mxu0 }
 0x8ae   : > { %v3010_v58 = vpop.f32.mrf.mxu3 }
 0x8af   : > { %v3029_v59 = vadd.f32 %v3028_v51, %v3010_v58 }
 0x8b0   : > { %v3048_v62 = vpop.f32.mrf.mxu1 }
 0x8b1   : > { %v3047_v63 = vadd.f32 %v3046_v56, %v3029_v59 }
 0x8b3   : > { %v3055_v47 = vmul.f32 %v8104_v4, %v3047_v63  ;;  %v7465_v63 = vld [vmem:[#allocation4 + $0xd74] sm:$0xf0] }
 0x8b5   : > { %v3035_v0 = vpop.f32.mrf.mxu0  ;;  %v3058_v11 = vadd.f32 %v3055_v47, %v2788_v8  ;;  %v6733_v47 = vld [vmem:[#allocation4 + $0xd60] sm:$0xf]  ;;  %v6729_v8 = vld [vmem:[#allocation4 + $0xd50] sm:$0xf] }
 0x8b6   : > { %v3012_v1 = vpop.f32.mrf.mxu3 }
 0x8b7   : > { %v3031_v2 = vadd.f32 %v3030_v34, %v3012_v1  ;;  %v3061_v19 = vmax.f32 %v3058_v11, 0.0  ;;  %v7453_v1 = vld [vmem:[#allocation2 + $0xa8] sm:$0xff]  ;;  %v6725_v11 = vld [vmem:[#allocation4 + $0xd40] sm:$0xf] }
 0x8b8   : > { %v3051_v7 = vpop.f32.mrf.mxu1 }
 0x8b9   : > { %v3049_v9 = vadd.f32 %v3048_v62, %v3031_v2  ;;  %v7448_v62 = vld [vmem:[#allocation2 + $0x80] sm:$0xff]  ;;  %v7464_v2 = vld [vmem:[#allocation4 + $0xd64] sm:$0xf0] }
 0x8bb   : > { %v3056_v13 = vmul.f32 %v8116_v14, %v3049_v9  ;;  %v7463_v9 = vld [vmem:[#allocation4 + $0xd54] sm:$0xf0] }
 0x8bd   : > { %v3059_v16 = vadd.f32 %v3056_v13, %v2789_v10  ;;  %v6730_v10 = vor.u32 %v7463_v9, %v6729_v8  ;;  %v7462_v13 = vld [vmem:[#allocation4 + $0xd44] sm:$0xf0]  ;;  %v6769_v9 = vld [vmem:[#allocation4 + $0xe70] sm:$0xf] }
 0x8be   : > { %v3015_v17 = vpop.f32.mrf.mxu3 }
 0x8bf   : > { %v3062_v18 = vmax.f32 %v3059_v16, 0.0  ;;  %v3034_v24 = vadd.f32 %v3033_v57, %v3015_v17  ;;  %v6726_v16 = vor.u32 %v7462_v13, %v6725_v11  ;;  %v6721_v17 = vld [vmem:[#allocation4 + $0xd30] sm:$0xf] }
 0x8c0   : > { %v3053_v12 = vpop.f32.mrf.mxu1 }
 0x8c1   : > { %v3083_v22 = vpack.c.bf16 %v3062_v18, %v3061_v19  ;;  %v3052_v25 = vadd.f32 %v3051_v7, %v3034_v24  ;;  %v6734_v7 = vor.u32 %v7464_v2, %v6733_v47  ;;  %v7461_v19 = vld [vmem:[#allocation4 + $0xd34] sm:$0xf0]  ;;  %v7454_v24 = vld [vmem:[#allocation2 + $0xb0] sm:$0xff]  ;;  %v6717_v12 = vld [vmem:[#allocation4 + $0xd20] sm:$0xf] }
 0x8c2   : > { %v6722_v18 = vor.u32 %v7461_v19, %v6721_v17  ;;  %v7466_v47 = vld [vmem:[#allocation4 + $0xd84] sm:$0xf0] }
 0x8c3   : > { %3141 = vmatmul.bf16.vlgmr.msra.gmra.mxu2 %v3083_v22  ;;  %v3057_v60 = vmul.f32 %v8120_v53, %v3052_v25  ;;  %v7460_v22 = vld [vmem:[#allocation4 + $0xd24] sm:$0xf0] }
 0x8c4   : > { %v6718_v25 = vor.u32 %v7460_v22, %v6717_v12  ;;  %v7480_v17 = vld [vmem:[#allocation4 + $0xe64] sm:$0xf0]  ;;  %v7479_v12 = vld [vmem:[#allocation4 + $0xe54] sm:$0xf0] }
 0x8c5   : > { %v3060_v31 = vadd.f32 %v3057_v60, %v2790_v30  ;;  %v6713_v60 = vld [vmem:[#allocation4 + $0xd10] sm:$0xf] }
 0x8c6   : > { %v3017_v29 = vpop.f32.mrf.mxu3 }
 0x8c7   : > { %v3063_v32 = vmax.f32 %v3060_v31, 0.0  ;;  %v7459_v29 = vld [vmem:[#allocation4 + $0xd14] sm:$0xf0]  ;;  %v6709_v31 = vld [vmem:[#allocation4 + $0xd00] sm:$0xf] }
 0x8c8   : > { %v6714_v30 = vor.u32 %v7459_v29, %v6713_v60  ;;  %v7478_v60 = vld [vmem:[#allocation4 + $0xe44] sm:$0xf0] }
 0x8c9   : > { %v3084_v49 = vpack.c.bf16 %v3063_v32, %v3063_v32  ;;  %v7458_v32 = vld [vmem:[#allocation4 + $0xd04] sm:$0xf0] }
 0x8d3   : > { %3146 = vmatmul.bf16.gmra.mxu2 %v3084_v49  ;;  %v6710_v49 = vor.u32 %v7458_v32, %v6709_v31  ;;  %v6753_v32 = vld [vmem:[#allocation4 + $0xe30] sm:$0xf] }
 0x946   : > { %v3142_v15 = vpop.f32.mrf.mxu2 }
 0x947   : > { %v3151_v46 = vmul.f32 %v8104_v4, %v3142_v15  ;;  %v7449_v4 = vld [vmem:[#allocation2 + $0x88] sm:$0xff]  ;;  %v7455_v15 = vld [vmem:[#allocation2 + $0xb8] sm:$0xff] }
 0x949   : > { %v3154_v6 = vadd.f32 %v3151_v46, %v3064_v50  ;;  %v7456_v46 = vld [vmem:[#allocation2 + $0xc0] sm:$0xff]  ;;  %v6697_v50 = vld [vmem:[#allocation4 + $0xdd0] sm:$0xf] }
 0x94e   : > { %v3144_v35 = vpop.f32.mrf.mxu2 }
 0x94f   : > { %v3152_v36 = vmul.f32 %v8116_v14, %v3144_v35  ;;  %v3157_v14 = vadd.f32 %v3154_v6, %v8220_v40  ;;  %v6737_v40 = vld [vmem:[#allocation4 + $0xd70] sm:$0xf]  ;;  %v7470_v6 = vld [vmem:[#allocation4 + $0xdc4] sm:$0xf0] }
 0x950   : > { %v6738_v0 = vor.u32 %v7465_v63, %v6737_v40  ;;  %v6705_v35 = vld [vmem:[#allocation4 + $0xdf0] sm:$0xf]  ;;  %v7467_v63 = vld [vmem:[#allocation4 + $0xd94] sm:$0xf0] }
 0x951   : > { %v3155_v21 = vadd.f32 %v3152_v36, %v3065_v41  ;;  %v7473_v36 = vld [vmem:[#allocation4 + $0xdf4] sm:$0xf0]  ;;  %v7472_v41 = vld [vmem:[#allocation4 + $0xde4] sm:$0xf0]  ;;  %v6681_v40 = vld [vmem:[#allocation4 + $0xd90] sm:$0xf] }
 0x952   : > { %3487 = vmatpush.bf16.msrb.mxu1 %v6738_v0  ;;  %v6682_v0 = vor.u32 %v7467_v63, %v6681_v40  ;;  %v6789_v63 = vld [vmem:[#allocation4 + $0xec0] sm:$0xf] }
 0x953   : > { %v3158_v56 = vadd.f32 %v3155_v21, %v8223_v43  ;;  %v7452_v43 = vld [vmem:[#allocation2 + $0xa0] sm:$0xff] }
 0x955   : > { %v3185_v59 = vpack.c.bf16 %v3158_v56, %v3157_v14 }
 0x956   : > { %v3147_v38 = vpop.f32.mrf.mxu2  ;;  %3488 = vmatpush.bf16.msrb.mxu1 %v6734_v7 }
 0x957   : > { %v3153_v45 = vmul.f32 %v8120_v53, %v3147_v38  ;;  %v7450_v53 = vld [vmem:[#allocation2 + $0x90] sm:$0xff]  ;;  %v6701_v38 = vld [vmem:[#allocation4 + $0xde0] sm:$0xf] }
 0x959   : > { %v3156_v51 = vadd.f32 %v3153_v45, %v3066_v52  ;;  %v6706_v52 = vor.u32 %v7473_v36, %v6705_v35  ;;  %v6702_v45 = vor.u32 %v7472_v41, %v6701_v38  ;;  %v6749_v35 = vld [vmem:[#allocation4 + $0xe20] sm:$0xf]  ;;  %v7476_v36 = vld [vmem:[#allocation4 + $0xe24] sm:$0xf0] }
 0x95a   : > { %3489 = vmatpush.bf16.msrb.mxu1 %v6730_v10  ;;  %v7481_v10 = vld [vmem:[#allocation4 + $0xe74] sm:$0xf0] }
 0x95b   : > { %v3159_v5 = vadd.f32 %v3156_v51, %v8229_v54  ;;  %v7451_v54 = vld [vmem:[#allocation2 + $0x98] sm:$0xff]  ;;  %3416 = vmatpush.bf16.msra.mxu0 %v6706_v52  ;;  %v6770_v13 = vor.u32 %v7481_v10, %v6769_v9  ;;  %v6750_v52 = vor.u32 %v7476_v36, %v6749_v35  ;;  %v6781_v10 = vld [vmem:[#allocation4 + $0xea0] sm:$0xf] }
 0x95c   : > { %v7471_v51 = vld [vmem:[#allocation4 + $0xdd4] sm:$0xf0] }
 0x95d   : > { %v3186_v34 = vpack.c.bf16 %v3159_v5, %v3159_v5  ;;  %v6698_v21 = vor.u32 %v7471_v51, %v6697_v50  ;;  %v6693_v5 = vld [vmem:[#allocation4 + $0xdc0] sm:$0xf]  ;;  %3577 = vmatpush.bf16.msrb.mxu2 %v6770_v13 }
 0x95e   : > { %v3149_v57 = vpop.f32.mrf.mxu2  ;;  %3490 = vmatpush.bf16.msrb.mxu1 %v6726_v16  ;;  %v6765_v16 = vld [vmem:[#allocation4 + $0xe60] sm:$0xf] }
 0x95f   : > { %v3269_v58 = vsel %vm454_vm0, %v3186_v34, 0  ;;  %3417 = vmatpush.bf16.msra.mxu0 %v6702_v45  ;;  %v6694_v34 = vor.u32 %v7470_v6, %v6693_v5  ;;  %v6689_v57 = vld [vmem:[#allocation4 + $0xdb0] sm:$0xf]  ;;  %v6766_v19 = vor.u32 %v7480_v17, %v6765_v16  ;;  %v6741_v51 = vld [vmem:[#allocation4 + $0xe00] sm:$0xf] }
 0x960   : > { %3277 = vmatpush.bf16.msra.mxu3 %v3269_v58  ;;  %v7469_v58 = vld [vmem:[#allocation4 + $0xdb4] sm:$0xf0]  ;;  %v6745_v45 = vld [vmem:[#allocation4 + $0xe10] sm:$0xf] }
 0x961   : > { %v6690_v14 = vor.u32 %v7469_v58, %v6689_v57  ;;  %3578 = vmatpush.bf16.msrb.mxu2 %v6766_v19  ;;  %v7489_v57 = vld [vmem:[#allocation4 + $0xef4] sm:$0xf0]  ;;  %v6777_v19 = vld [vmem:[#allocation4 + $0xe90] sm:$0xf] }
 0x962   : > { %3491 = vmatpush.bf16.msrb.mxu1 %v6722_v18 }
 0x963   : > { %3418 = vmatpush.bf16.msra.mxu0 %v6698_v21  ;;  %v7474_v21 = vld [vmem:[#allocation4 + $0xe04] sm:$0xf0] }
 0x964   : > { %3278 = vmatpush.bf16.msra.mxu3 %v3185_v59  ;;  %v6685_v59 = vld [vmem:[#allocation4 + $0xda0] sm:$0xf]  ;;  %v6742_v5 = vor.u32 %v7474_v21, %v6741_v51 }
 0x966   : > { %3492 = vmatpush.bf16.msrb.mxu1 %v6718_v25  ;;  %v6757_v25 = vld [vmem:[#allocation4 + $0xe40] sm:$0xf] }
 0x967   : > { %6665 = vmatmul.msk.bf16.vlgmr.msra.gmra.mxu3 %vm3237_vm3, %v7448_v62  ;;  %3419 = vmatpush.bf16.msra.mxu0 %v6694_v34  ;;  %v7468_v62 = vld [vmem:[#allocation4 + $0xda4] sm:$0xf0]  ;;  %v6758_v29 = vor.u32 %v7478_v60, %v6757_v25 }
 0x96a   : > { %3493 = vmatpush.bf16.msrb.mxu1 %v6714_v30 }
 0x96b   : > { %3420 = vmatpush.bf16.msra.mxu0 %v6690_v14 }
 0x96e   : > { %3494 = vmatpush.bf16.msrb.mxu1 %v6710_v49  ;;  %v7477_v49 = vld [vmem:[#allocation4 + $0xe34] sm:$0xf0] }
 0x977   : > { %6666 = vmatmul.msk.bf16.gmra.mxu3 %vm3237_vm3, %v7449_v4  ;;  %v6686_v4 = vor.u32 %v7468_v62, %v6685_v59  ;;  %v6797_v59 = vld [vmem:[#allocation4 + $0xee0] sm:$0xf]  ;;  %v7488_v62 = vld [vmem:[#allocation4 + $0xee4] sm:$0xf0] }
 0x979   : > { %3421 = vmatpush.bf16.msra.mxu0 %v6686_v4  ;;  %v6798_v4 = vor.u32 %v7488_v62, %v6797_v59 }
 0x97d   : > { %3422 = vmatpush.bf16.msra.mxu0 %v6682_v0  ;;  %v7486_v0 = vld [vmem:[#allocation4 + $0xec4] sm:$0xf0] }
 0x987   : > { %6667 = vmatmul.msk.bf16.gmra.mxu3 %vm3237_vm3, %v7450_v53 }
 0x997   : > { %6668 = vmatmul.msk.bf16.gmra.mxu3 %vm3237_vm3, %v7451_v54 }
 0x9a7   : > { %6669 = vmatmul.msk.bf16.gmra.mxu3 %vm3237_vm3, %v7452_v43  ;;  %v7457_v43 = vld [vmem:[#allocation2 + $0xc8] sm:$0xff] }
 0x9b7   : > { %6670 = vmatmul.msk.bf16.gmra.mxu3 %vm3237_vm3, %v7453_v1  ;;  %v6677_v1 = vld [vmem:[#allocation4 + $0xd80] sm:$0xf] }
 0x9b8   : > { %v6678_v2 = vor.u32 %v7466_v47, %v6677_v1  ;;  %v6790_v1 = vor.u32 %v7486_v0, %v6789_v63 }
 0x9ba   : > { %3423 = vmatpush.bf16.msra.mxu0 %v6678_v2 }
 0x9c7   : > { %6671 = vmatmul.msk.bf16.gmra.mxu3 %vm3237_vm3, %v7454_v24  ;;  %v6761_v24 = vld [vmem:[#allocation4 + $0xe50] sm:$0xf] }
 0x9c8   : > { %v6762_v22 = vor.u32 %v7479_v12, %v6761_v24  ;;  %v6773_v12 = vld [vmem:[#allocation4 + $0xe80] sm:$0xf] }
 0x9ca   : > { %3579 = vmatpush.bf16.msrb.mxu2 %v6762_v22  ;;  %v7482_v22 = vld [vmem:[#allocation4 + $0xe84] sm:$0xf0] }
 0x9cb   : > { %v6774_v25 = vor.u32 %v7482_v22, %v6773_v12  ;;  %v3163_v12 = vld [vmem:[#allocation6 + $0x290] sm:$0xff] }
 0x9ce   : > { %3580 = vmatpush.bf16.msrb.mxu2 %v6758_v29 }
 0x9d7   : > { %6672 = vmatmul.msk.bf16.gmra.mxu3 %vm3237_vm3, %v7455_v15  ;;  %v6754_v15 = vor.u32 %v7477_v49, %v6753_v32 }
 0x9d9   : > { %3581 = vmatpush.bf16.msrb.mxu2 %v6754_v15 }
 0x9dd   : > { %3582 = vmatpush.bf16.msrb.mxu2 %v6750_v52 }
 0x9e7   : > { %6673 = vmatmul.msk.bf16.gmra.mxu3 %vm3237_vm3, %v7456_v46  ;;  %v7475_v46 = vld [vmem:[#allocation4 + $0xe14] sm:$0xf0] }
 0x9e8   : > { %v6746_v50 = vor.u32 %v7475_v46, %v6745_v45 }
 0x9ea   : > { %v3280_v56 = vpop.f32.mrf.mxu3  ;;  %3583 = vmatpush.bf16.msrb.mxu2 %v6746_v50 }
 0x9ee   : > { %3584 = vmatpush.bf16.msrb.mxu2 %v6742_v5 }
 0x9f2   : > { %v3282_v53 = vpop.f32.mrf.mxu3 }
 0x9f3   : > { %v3330_v54 = vpack.c.bf16 %v3282_v53, %v3280_v56  ;;  %v6801_v56 = vld [vmem:[#allocation4 + $0xef0] sm:$0xf] }
 0x9f4   : > { %v6802_v14 = vor.u32 %v7489_v57, %v6801_v56 }
 0x9f5   : > { %3495 = vmatmul.bf16.vlgmr.msrb.gmra.mxu1 %v3330_v54  ;;  %v6793_v54 = vld [vmem:[#allocation4 + $0xed0] sm:$0xf] }
 0x9f6   : > { %3672 = vmatpush.bf16.msrb.mxu0 %v6802_v14 }
 0x9f7   : > { %6674 = vmatmul.msk.bf16.gmra.mxu3 %vm3237_vm3, %v7457_v43  ;;  %v7487_v43 = vld [vmem:[#allocation4 + $0xed4] sm:$0xf0] }
 0x9f8   : > { %v6794_v40 = vor.u32 %v7487_v43, %v6793_v54 }
 0x9fa   : > { %v3285_v8 = vpop.f32.mrf.mxu3  ;;  %3673 = vmatpush.bf16.msrb.mxu0 %v6798_v4 }
 0x9fe   : > { %3674 = vmatpush.bf16.msrb.mxu0 %v6794_v40 }
 0xa02   : > { %v3287_v7 = vpop.f32.mrf.mxu3  ;;  %3675 = vmatpush.bf16.msrb.mxu0 %v6790_v1 }
 0xa03   : > { %v3331_v11 = vpack.c.bf16 %v3287_v7, %v3285_v8  ;;  %v6785_v8 = vld [vmem:[#allocation4 + $0xeb0] sm:$0xf]  ;;  %v7485_v7 = vld [vmem:[#allocation4 + $0xeb4] sm:$0xf0] }
 0xa04   : > { %v6786_v9 = vor.u32 %v7485_v7, %v6785_v8 }
 0xa05   : > { %3500 = vmatmul.bf16.gmra.mxu1 %v3331_v11  ;;  %v7484_v11 = vld [vmem:[#allocation4 + $0xea4] sm:$0xf0] }
 0xa06   : > { %3676 = vmatpush.bf16.msrb.mxu0 %v6786_v9  ;;  %v6782_v13 = vor.u32 %v7484_v11, %v6781_v10 }
 0xa0a   : > { %v3290_v18 = vpop.f32.mrf.mxu3  ;;  %3677 = vmatpush.bf16.msrb.mxu0 %v6782_v13 }
 0xa0b   : > { %v3332_v31 = vpack.c.bf16 %v3290_v18, %v3290_v18  ;;  %v7483_v18 = vld [vmem:[#allocation4 + $0xe94] sm:$0xf0] }
 0xa0c   : > { %v6778_v24 = vor.u32 %v7483_v18, %v6777_v19  ;;  %v3164_v18 = vld [vmem:[#allocation6 + $0x2a0] sm:$0xff] }
 0xa0e   : > { %3678 = vmatpush.bf16.msrb.mxu0 %v6778_v24 }
 0xa12   : > { %v3292_v30 = vpop.f32.mrf.mxu3  ;;  %3679 = vmatpush.bf16.msrb.mxu0 %v6774_v25 }
 0xa15   : > { %3505 = vmatmul.bf16.gmra.mxu1 %v3332_v31 }
 0xa1a   : > { %v3295_v38 = vpop.f32.mrf.mxu3 }
 0xa1b   : > { %v3349_v41 = vpack.c.bf16 %v3295_v38, %v3292_v30 }
 0xa1d   : > { %3424 = vmatmul.bf16.vlgmr.msra.gmra.mxu0 %v3349_v41 }
 0xa22   : > { %v3297_v6 = vpop.f32.mrf.mxu3 }
 0xa2a   : > { %v3300_v34 = vpop.f32.mrf.mxu3 }
 0xa2b   : > { %v3350_v58 = vpack.c.bf16 %v3300_v34, %v3297_v6 }
 0xa2d   : > { %3429 = vmatmul.bf16.gmra.mxu0 %v3350_v58 }
 0xa32   : > { %v3302_v53 = vpop.f32.mrf.mxu3 }
 0xa33   : > { %v3351_v2 = vpack.c.bf16 %v3302_v53, %v3302_v53 }
 0xa3a   : > { %v3305_v47 = vpop.f32.mrf.mxu3 }
 0xa3d   : > { %3434 = vmatmul.bf16.gmra.mxu0 %v3351_v2 }
 0xa42   : > { %v3307_v16 = vpop.f32.mrf.mxu3 }
 0xa43   : > { %v3510_v17 = vpack.c.bf16 %v3307_v16, %v3305_v47 }
 0xa45   : > { %3585 = vmatmul.bf16.vlgmr.msrb.gmra.mxu2 %v3510_v17 }
 0xa4a   : > { %v3310_v60 = vpop.f32.mrf.mxu3 }
 0xa52   : > { %v3312_v29 = vpop.f32.mrf.mxu3 }
 0xa53   : > { %v3511_v30 = vpack.c.bf16 %v3312_v29, %v3310_v60  ;;  %v3162_v29 = vld [vmem:[#allocation6 + $0x280] sm:$0xff] }
 0xa55   : > { %3590 = vmatmul.bf16.gmra.mxu2 %v3511_v30 }
 0xa5a   : > { %v3315_v31 = vpop.f32.mrf.mxu3 }
 0xa5b   : > { %v3512_v49 = vpack.c.bf16 %v3315_v31, %v3315_v31 }
 0xa62   : > { %v3317_v32 = vpop.f32.mrf.mxu3 }
 0xa65   : > { %3595 = vmatmul.bf16.gmra.mxu2 %v3512_v49  ;;  %v3161_v49 = vld [vmem:[#allocation6 + $0x270] sm:$0xff] }
 0xa6a   : > { %v3320_v15 = vpop.f32.mrf.mxu3 }
 0xa6b   : > { %v3605_v35 = vpack.c.bf16 %v3320_v15, %v3317_v32 }
 0xa6d   : > { %3680 = vmatmul.bf16.vlgmr.msrb.gmra.mxu0 %v3605_v35 }
 0xa72   : > { %v3322_v36 = vpop.f32.mrf.mxu3  ;;  %v3496_v52 = vpop.f32.mrf.mxu1 }
 0xa7a   : > { %v3325_v38 = vpop.f32.mrf.mxu3  ;;  %v3498_v41 = vpop.f32.mrf.mxu1 }
 0xa7b   : > { %v3606_v45 = vpack.c.bf16 %v3325_v38, %v3322_v36 }
 0xa7d   : > { %3685 = vmatmul.bf16.gmra.mxu0 %v3606_v45 }
 0xa82   : > { %v3501_v46 = vpop.f32.mrf.mxu1  ;;  %v3327_v50 = vpop.f32.mrf.mxu3 }
 0xa83   : > { %v3607_v21 = vpack.c.bf16 %v3327_v50, %v3327_v50 }
 0xa8a   : > { %v3503_v51 = vpop.f32.mrf.mxu1 }
 0xa8d   : > { %3690 = vmatmul.bf16.gmra.mxu0 %v3607_v21 }
 0xa92   : > { %v3506_v5 = vpop.f32.mrf.mxu1 }
 0xa9a   : > { %v3425_v6 = vpop.f32.mrf.mxu0  ;;  %v3508_v34 = vpop.f32.mrf.mxu1 }
 0xa9b   : > { %v3497_v56 = vadd.f32 %v3496_v52, %v3425_v6  ;;  %v3160_v52 = vld [vmem:[#allocation6 + $0x260] sm:$0xff] }
 0xaa2   : > { %v3427_v57 = vpop.f32.mrf.mxu0 }
 0xaa3   : > { %v3499_v16 = vadd.f32 %v3498_v41, %v3427_v57  ;;  %v7490_v57 = vld [vmem:[#allocation2 + $0xd0] sm:$0xff] }
 0xaaa   : > { %v3430_v58 = vpop.f32.mrf.mxu0 }
 0xaab   : > { %v3502_v14 = vadd.f32 %v3501_v46, %v3430_v58  ;;  %v7491_v58 = vld [vmem:[#allocation2 + $0xd8] sm:$0xff] }
 0xab2   : > { %v3432_v59 = vpop.f32.mrf.mxu0 }
 0xab3   : > { %v3504_v10 = vadd.f32 %v3503_v51, %v3432_v59  ;;  %v7493_v59 = vld [vmem:[#allocation2 + $0xe8] sm:$0xff] }
 0xaba   : > { %v3435_v62 = vpop.f32.mrf.mxu0 }
 0xabb   : > { %v3507_v4 = vadd.f32 %v3506_v5, %v3435_v62  ;;  %v7494_v62 = vld [vmem:[#allocation2 + $0xf0] sm:$0xff] }
 0xac2   : > { %v3437_v53 = vpop.f32.mrf.mxu0 }
 0xac3   : > { %v7017_v53 = vld [vmem:[#allocation4 + $0xf78] sm:$0xf0] }
 0xac8   : > { %v3586_v54 = vpop.f32.mrf.mxu2 }
 0xac9   : > { %v3600_v43 = vadd.f32 %v3586_v54, %v3497_v56 }
 0xad0   : > { %v3588_v40 = vpop.f32.mrf.mxu2 }
 0xad1   : > { %v3601_v25 = vadd.f32 %v3588_v40, %v3499_v16  ;;  %v7009_v40 = vld [vmem:[#allocation4 + $0xf68] sm:$0xf0]  ;;  %v7512_v16 = vld [vmem:[#allocation4 + $0xf24] sm:$0xf] }
 0xad8   : > { %v3591_v63 = vpop.f32.mrf.mxu2 }
 0xad9   : > { %v3602_v17 = vadd.f32 %v3591_v63, %v3502_v14  ;;  %v7492_v14 = vld [vmem:[#allocation2 + $0xe0] sm:$0xff] }
 0xae0   : > { %v3593_v0 = vpop.f32.mrf.mxu2 }
 0xae1   : > { %v3603_v11 = vadd.f32 %v3593_v0, %v3504_v10  ;;  %v7495_v0 = vld [vmem:[#allocation2 + $0xf8] sm:$0xff]  ;;  %v7514_v10 = vld [vmem:[#allocation4 + $0xf34] sm:$0xf] }
 0xae8   : > { %v3596_v1 = vpop.f32.mrf.mxu2 }
 0xae9   : > { %v3604_v13 = vadd.f32 %v3596_v1, %v3507_v4  ;;  %v7522_v4 = vld [vmem:[#allocation4 + $0xf74] sm:$0xf] }
 0xaea   : > { %v3681_v47 = vpop.f32.mrf.mxu0  ;;  %v7020_v54 = vor.u32 %v7522_v4, %v7017_v53  ;;  %v7518_v1 = vld [vmem:[#allocation4 + $0xf54] sm:$0xf]  ;;  %v6937_v53 = vld [vmem:[#allocation4 + $0xfd8] sm:$0xf0] }
 0xaeb   : > { %v3695_v35 = vadd.f32 %v3681_v47, %v3600_v43  ;;  %v7520_v43 = vld [vmem:[#allocation4 + $0xf64] sm:$0xf]  ;;  %v7001_v47 = vld [vmem:[#allocation4 + $0xf58] sm:$0xf0] }
 0xaec   : > { %4314 = vmatpush.bf16.msrb.mxu3 %v7020_v54  ;;  %v7012_v63 = vor.u32 %v7520_v43, %v7009_v40  ;;  %v6927_v43 = vld [vmem:[#allocation4 + $0xfc0] sm:$0xf]  ;;  %v7533_v40 = vld [vmem:[#allocation4 + $0xfc4] sm:$0xf0] }
 0xaed   : > { %v3700_v51 = vadd.f32 %v3695_v35, %v3160_v52  ;;  %v7499_v35 = vld [vmem:[#allocation2 + $0x118] sm:$0xff]  ;;  %v6951_v52 = vld [vmem:[#allocation4 + $0xff0] sm:$0xf] }
 0xaef   : > { %v3705_v34 = vmax.f32 %v3700_v51, 0.0  ;;  %v6943_v51 = vld [vmem:[#allocation4 + $0xfe0] sm:$0xf] }
 0xaf0   : > { %v3598_v2 = vpop.f32.mrf.mxu2  ;;  %4315 = vmatpush.bf16.msrb.mxu3 %v7012_v63  ;;  %v7532_v63 = vld [vmem:[#allocation4 + $0xfc4] sm:$0xf] }
 0xaf1   : > { %v7004_v2 = vor.u32 %v7518_v1, %v7001_v47  ;;  %v6929_v1 = vld [vmem:[#allocation4 + $0xfc8] sm:$0xf0]  ;;  %v7500_v47 = vld [vmem:[#allocation2 + $0x120] sm:$0xff] }
 0xaf2   : > { %v3683_v8 = vpop.f32.mrf.mxu0 }
 0xaf3   : > { %v3696_v31 = vadd.f32 %v3683_v8, %v3601_v25  ;;  %v7516_v8 = vld [vmem:[#allocation4 + $0xf44] sm:$0xf] }
 0xaf4   : > { %4316 = vmatpush.bf16.msrb.mxu3 %v7004_v2  ;;  %v7508_v25 = vld [vmem:[#allocation4 + $0xf04] sm:$0xf]  ;;  %v6932_v2 = vor.u32 %v7532_v63, %v6929_v1  ;;  %v7523_v63 = vld [vmem:[#allocation4 + $0xf74] sm:$0xf0] }
 0xaf5   : > { %v3701_v45 = vadd.f32 %v3696_v31, %v3161_v49  ;;  %v7498_v31 = vld [vmem:[#allocation2 + $0x110] sm:$0xff] }
 0xaf7   : > { %v3706_v5 = vmax.f32 %v3701_v45, 0.0  ;;  %v7538_v45 = vld [vmem:[#allocation4 + $0xff4] sm:$0xf] }
 0xaf9   : > { %v3764_v56 = vpack.c.bf16 %v3706_v5, %v3705_v34  ;;  %v7536_v5 = vld [vmem:[#allocation4 + $0xfe4] sm:$0xf]  ;;  %v6945_v34 = vld [vmem:[#allocation4 + $0xfe8] sm:$0xf0] }
 0xafa   : > { %v3686_v7 = vpop.f32.mrf.mxu0 }
 0xafb   : > { %v3697_v60 = vadd.f32 %v3686_v7, %v3602_v17  ;;  %v6993_v7 = vld [vmem:[#allocation4 + $0xf48] sm:$0xf0] }
 0xafc   : > { %v6977_v17 = vld [vmem:[#allocation4 + $0xf28] sm:$0xf0] }
 0xafd   : > { %v3702_v36 = vadd.f32 %v3697_v60, %v3162_v29  ;;  %v6961_v60 = vld [vmem:[#allocation4 + $0xf08] sm:$0xf0] }
 0xafe   : > { %v6964_v29 = vor.u32 %v7508_v25, %v6961_v60  ;;  %v6903_v60 = vld [vmem:[#allocation4 + $0xf90] sm:$0xf] }
 0xaff   : > { %v3707_v21 = vmax.f32 %v3702_v36, 0.0 }
 0xb02   : > { %v3688_v9 = vpop.f32.mrf.mxu0 }
 0xb03   : > { %v3698_v19 = vadd.f32 %v3688_v9, %v3603_v11  ;;  %v6996_v9 = vor.u32 %v7516_v8, %v6993_v7  ;;  %v6985_v11 = vld [vmem:[#allocation4 + $0xf38] sm:$0xf0]  ;;  %v6919_v7 = vld [vmem:[#allocation4 + $0xfb0] sm:$0xf] }
 0xb05   : > { %v3703_v32 = vadd.f32 %v3698_v19, %v3163_v12  ;;  %4317 = vmatpush.bf16.msrb.mxu3 %v6996_v9  ;;  %v6980_v19 = vor.u32 %v7512_v16, %v6977_v17  ;;  %v6969_v12 = vld [vmem:[#allocation4 + $0xf18] sm:$0xf0]  ;;  %v7531_v9 = vld [vmem:[#allocation4 + $0xfb4] sm:$0xf0]  ;;  %v6911_v17 = vld [vmem:[#allocation4 + $0xfa0] sm:$0xf] }
 0xb07   : > { %v3708_v41 = vmax.f32 %v3703_v32, 0.0 }
 0xb09   : > { %v3765_v6 = vpack.c.bf16 %v3708_v41, %v3707_v21  ;;  %v7537_v21 = vld [vmem:[#allocation4 + $0xfe4] sm:$0xf0] }
 0xb0a   : > { %v3691_v24 = vpop.f32.mrf.mxu0 }
 0xb0b   : > { %v3699_v22 = vadd.f32 %v3691_v24, %v3604_v13  ;;  %v6988_v13 = vor.u32 %v7514_v10, %v6985_v11  ;;  %v7510_v24 = vld [vmem:[#allocation4 + $0xf14] sm:$0xf]  ;;  %v6920_v10 = vor.u32 %v7531_v9, %v6919_v7  ;;  %v7521_v7 = vld [vmem:[#allocation4 + $0xf64] sm:$0xf0]  ;;  %v7071_v9 = vld [vmem:[#allocation4 + $0x1060] sm:$0xf] }
 0xb0c   : > { %v7530_v11 = vld [vmem:[#allocation4 + $0xfb4] sm:$0xf] }
 0xb0d   : > { %v3704_v30 = vadd.f32 %v3699_v22, %v3164_v18  ;;  %4318 = vmatpush.bf16.msrb.mxu3 %v6988_v13  ;;  %v7496_v18 = vld [vmem:[#allocation2 + $0x100] sm:$0xff]  ;;  %v6972_v22 = vor.u32 %v7510_v24, %v6969_v12  ;;  %v6921_v13 = vld [vmem:[#allocation4 + $0xfb8] sm:$0xf0]  ;;  %v6913_v12 = vld [vmem:[#allocation4 + $0xfa8] sm:$0xf0] }
 0xb0e   : > { %v6924_v16 = vor.u32 %v7530_v11, %v6921_v13  ;;  %v7553_v11 = vld [vmem:[#allocation4 + $0x1064] sm:$0xf0] }
 0xb0f   : > { %v3709_v15 = vmax.f32 %v3704_v30, 0.0  ;;  %v7497_v30 = vld [vmem:[#allocation2 + $0x108] sm:$0xff] }
 0xb11   : > { %v3766_v38 = vpack.c.bf16 %v3709_v15, %v3709_v15  ;;  %4319 = vmatpush.bf16.msrb.mxu3 %v6980_v19  ;;  %v7529_v19 = vld [vmem:[#allocation4 + $0xfa4] sm:$0xf0] }
 0xb12   : > { %v3693_v46 = vpop.f32.mrf.mxu0  ;;  %v6912_v24 = vor.u32 %v7529_v19, %v6911_v17  ;;  %v6999_v17 = vld [vmem:[#allocation4 + $0xf50] sm:$0xf]  ;;  %v7519_v19 = vld [vmem:[#allocation4 + $0xf54] sm:$0xf0] }
 0xb13   : > { %v3912_v50 = vsel %vm454_vm0, %v3766_v38, 0  ;;  %v7539_v38 = vld [vmem:[#allocation4 + $0xff4] sm:$0xf0]  ;;  %v6953_v46 = vld [vmem:[#allocation4 + $0xff8] sm:$0xf0]  ;;  %vm5457_vm0 = vcmask 261248  }
 0xb14   : > { %3919 = vmatpush.bf16.msra.mxu1 %v3912_v50  ;;  %v6952_v41 = vor.u32 %v7539_v38, %v6951_v52  ;;  %v6956_v50 = vor.u32 %v7538_v45, %v6953_v46  ;;  %v7525_v52 = vld [vmem:[#allocation4 + $0xf84] sm:$0xf0]  ;;  %v7524_v38 = vld [vmem:[#allocation4 + $0xf84] sm:$0xf] }
 0xb15   : > { %4320 = vmatpush.bf16.msrb.mxu3 %v6972_v22  ;;  %v7501_v46 = vld [vmem:[#allocation2 + $0x128] sm:$0xff] }
 0xb16   : > { %4135 = vmatpush.bf16.msra.mxu2 %v6952_v41  ;;  %4168 = vmatpush.bf16.msra.mxu0 %v6956_v50  ;;  %v6897_v41 = vld [vmem:[#allocation4 + $0xf88] sm:$0xf0] }
 0xb17   : > { %v6900_v50 = vor.u32 %v7524_v38, %v6897_v41  ;;  %v6983_v38 = vld [vmem:[#allocation4 + $0xf30] sm:$0xf] }
 0xb18   : > { %3920 = vmatpush.bf16.msra.mxu1 %v3765_v6  ;;  %v6944_v6 = vor.u32 %v7537_v21, %v6943_v51  ;;  %v7047_v41 = vld [vmem:[#allocation4 + $0x1030] sm:$0xf] }
 0xb19   : > { %4321 = vmatpush.bf16.msrb.mxu3 %v6964_v29  ;;  %v7527_v29 = vld [vmem:[#allocation4 + $0xf94] sm:$0xf0] }
 0xb1a   : > { %4136 = vmatpush.bf16.msra.mxu2 %v6944_v6  ;;  %v7502_v6 = vld [vmem:[#allocation2 + $0x130] sm:$0xff] }
 0xb1c   : > { %3921 = vmatpush.bf16.msra.mxu1 %v3764_v56  ;;  %v6948_v56 = vor.u32 %v7536_v5, %v6945_v34 }
 0xb1e   : > { %4169 = vmatpush.bf16.msra.mxu0 %v6948_v56 }
 0xb1f   : > { %6875 = vmatmul.msk.bf16.vlgmr.msra.gmra.mxu1 %vm945_vm2, %v7490_v57 }
 0xb2f   : > { %6876 = vmatmul.msk.bf16.gmra.mxu1 %vm945_vm2, %v7491_v58 }
 0xb3f   : > { %6877 = vmatmul.msk.bf16.gmra.mxu1 %vm945_vm2, %v7492_v14  ;;  %v6935_v14 = vld [vmem:[#allocation4 + $0xfd0] sm:$0xf] }
 0xb4f   : > { %6878 = vmatmul.msk.bf16.gmra.mxu1 %vm945_vm2, %v7493_v59  ;;  %v7535_v59 = vld [vmem:[#allocation4 + $0xfd4] sm:$0xf0] }
 0xb50   : > { %v6936_v4 = vor.u32 %v7535_v59, %v6935_v14  ;;  %v7503_v14 = vld [vmem:[#allocation2 + $0x138] sm:$0xff] }
 0xb52   : > { %4137 = vmatpush.bf16.msra.mxu2 %v6936_v4 }
 0xb5f   : > { %6879 = vmatmul.msk.bf16.gmra.mxu1 %vm945_vm2, %v7494_v62  ;;  %v7534_v62 = vld [vmem:[#allocation4 + $0xfd4] sm:$0xf] }
 0xb60   : > { %v6940_v54 = vor.u32 %v7534_v62, %v6937_v53  ;;  %v7504_v53 = vld [vmem:[#allocation2 + $0x140] sm:$0xff] }
 0xb62   : > { %4170 = vmatpush.bf16.msra.mxu0 %v6940_v54 }
 0xb66   : > { %4171 = vmatpush.bf16.msra.mxu0 %v6932_v2 }
 0xb6a   : > { %4172 = vmatpush.bf16.msra.mxu0 %v6924_v16  ;;  %v7072_v16 = vor.u32 %v7553_v11, %v7071_v9 }
 0xb6f   : > { %6880 = vmatmul.msk.bf16.gmra.mxu1 %vm945_vm2, %v7495_v0  ;;  %v6928_v0 = vor.u32 %v7533_v40, %v6927_v43  ;;  %v7015_v40 = vld [vmem:[#allocation4 + $0xf70] sm:$0xf] }
 0xb70   : > { %v7016_v1 = vor.u32 %v7523_v63, %v7015_v40  ;;  %v7543_v40 = vld [vmem:[#allocation4 + $0x1014] sm:$0xf0] }
 0xb71   : > { %4138 = vmatpush.bf16.msra.mxu2 %v6928_v0  ;;  %v7079_v0 = vld [vmem:[#allocation4 + $0x1070] sm:$0xf] }
 0xb75   : > { %4139 = vmatpush.bf16.msra.mxu2 %v6920_v10 }
 0xb79   : > { %4140 = vmatpush.bf16.msra.mxu2 %v6912_v24  ;;  %v7000_v24 = vor.u32 %v7519_v19, %v6999_v17  ;;  %v7507_v17 = vld [vmem:[#allocation2 + $0x158] sm:$0xff] }
 0xb7f   : > { %6881 = vmatmul.msk.bf16.gmra.mxu1 %vm945_vm2, %v7496_v18  ;;  %v7528_v18 = vld [vmem:[#allocation4 + $0xfa4] sm:$0xf] }
 0xb80   : > { %v6916_v22 = vor.u32 %v7528_v18, %v6913_v12  ;;  %v7063_v18 = vld [vmem:[#allocation4 + $0x1050] sm:$0xf]  ;;  %v7551_v12 = vld [vmem:[#allocation4 + $0x1054] sm:$0xf0] }
 0xb82   : > { %4173 = vmatpush.bf16.msra.mxu0 %v6916_v22  ;;  %v7064_v22 = vor.u32 %v7551_v12, %v7063_v18 }
 0xb8f   : > { %6882 = vmatmul.msk.bf16.gmra.mxu1 %vm945_vm2, %v7497_v30  ;;  %v7526_v30 = vld [vmem:[#allocation4 + $0xf94] sm:$0xf] }
 0xb9c   : > { %v3923_v32 = vpop.f32.mrf.mxu1 }
 0xb9f   : > { %6883 = vmatmul.msk.bf16.gmra.mxu1 %vm945_vm2, %v7498_v31 }
 0xba4   : > { %v3925_v49 = vpop.f32.mrf.mxu1 }
 0xba5   : > { %v8274_v15 = vpack.c.bf16 %v3925_v49, %v3923_v32  ;;  %v6904_v32 = vor.u32 %v7527_v29, %v6903_v60  ;;  %v6905_v49 = vld [vmem:[#allocation4 + $0xf98] sm:$0xf0]  ;;  %v7517_v60 = vld [vmem:[#allocation4 + $0xf44] sm:$0xf0]  ;;  %v7055_v29 = vld [vmem:[#allocation4 + $0x1040] sm:$0xf] }
 0xba7   : > { %4322 = vmatmul.bf16.vlgmr.msrb.gmra.mxu3 %v8274_v15  ;;  %4141 = vmatpush.bf16.msra.mxu2 %v6904_v32 }
 0xbac   : > { %v3928_v36 = vpop.f32.mrf.mxu1 }
 0xbaf   : > { %6884 = vmatmul.msk.bf16.gmra.mxu1 %vm945_vm2, %v7499_v35  ;;  %v6908_v35 = vor.u32 %v7526_v30, %v6905_v49  ;;  %v7505_v30 = vld [vmem:[#allocation2 + $0x148] sm:$0xff] }
 0xbb0   : > { %v7549_v49 = vld [vmem:[#allocation4 + $0x1044] sm:$0xf0] }
 0xbb1   : > { %4174 = vmatpush.bf16.msra.mxu0 %v6908_v35 }
 0xbb4   : > { %v3930_v57 = vpop.f32.mrf.mxu1 }
 0xbb5   : > { %v8278_v58 = vpack.c.bf16 %v3930_v57, %v3928_v36  ;;  %v6895_v36 = vld [vmem:[#allocation4 + $0xf80] sm:$0xf]  ;;  %4175 = vmatpush.bf16.msra.mxu0 %v6900_v50  ;;  %v7547_v50 = vld [vmem:[#allocation4 + $0x1034] sm:$0xf0] }
 0xbb6   : > { %v6896_v45 = vor.u32 %v7525_v52, %v6895_v36  ;;  %v7056_v36 = vor.u32 %v7549_v49, %v7055_v29  ;;  %v7569_v49 = vld [vmem:[#allocation4 + $0x10e4] sm:$0xf0] }
 0xbb7   : > { %4327 = vmatmul.bf16.gmra.mxu3 %v8278_v58 }
 0xbb8   : > { %4142 = vmatpush.bf16.msra.mxu2 %v6896_v45  ;;  %v7515_v45 = vld [vmem:[#allocation4 + $0xf34] sm:$0xf0] }
 0xbbc   : > { %v3933_v8 = vpop.f32.mrf.mxu1  ;;  %4281 = vmatpush.bf16.msrb.mxu2 %v7016_v1  ;;  %v7509_v1 = vld [vmem:[#allocation4 + $0xf04] sm:$0xf0] }
 0xbbf   : > { %6885 = vmatmul.msk.bf16.gmra.mxu1 %vm945_vm2, %v7500_v47  ;;  %v7555_v47 = vld [vmem:[#allocation4 + $0x1074] sm:$0xf0] }
 0xbc0   : > { %v7080_v2 = vor.u32 %v7555_v47, %v7079_v0  ;;  %v6959_v0 = vld [vmem:[#allocation4 + $0xf00] sm:$0xf] }
 0xbc1   : > { %v7023_v47 = vld [vmem:[#allocation4 + $0x1000] sm:$0xf] }
 0xbc2   : > { %4448 = vmatpush.bf16.msrb.mxu0 %v7080_v2  ;;  %v7506_v2 = vld [vmem:[#allocation2 + $0x150] sm:$0xff] }
 0xbc4   : > { %v3935_v25 = vpop.f32.mrf.mxu1 }
 0xbc5   : > { %v8282_v31 = vpack.c.bf16 %v3935_v25, %v3933_v8  ;;  %v7007_v8 = vld [vmem:[#allocation4 + $0xf60] sm:$0xf] }
 0xbc6   : > { %v7008_v10 = vor.u32 %v7521_v7, %v7007_v8  ;;  %4449 = vmatpush.bf16.msrb.mxu0 %v7072_v16  ;;  %v6991_v25 = vld [vmem:[#allocation4 + $0xf40] sm:$0xf]  ;;  %v6960_v8 = vor.u32 %v7509_v1, %v6959_v0  ;;  %v7541_v7 = vld [vmem:[#allocation4 + $0x1004] sm:$0xf0]  ;;  %v7552_v0 = vld [vmem:[#allocation4 + $0x1064] sm:$0xf] }
 0xbc7   : > { %4332 = vmatmul.bf16.gmra.mxu3 %v8282_v31  ;;  %v6992_v32 = vor.u32 %v7517_v60, %v6991_v25  ;;  %v7571_v25 = vld [vmem:[#allocation4 + $0x10f4] sm:$0xf0]  ;;  %v7073_v1 = vld [vmem:[#allocation4 + $0x1068] sm:$0xf0] }
 0xbc8   : > { %4282 = vmatpush.bf16.msrb.mxu2 %v7008_v10  ;;  %v7024_v10 = vor.u32 %v7541_v7, %v7023_v47  ;;  %v7103_v47 = vld [vmem:[#allocation4 + $0x10a0] sm:$0xf]  ;;  %v7568_v7 = vld [vmem:[#allocation4 + $0x10e4] sm:$0xf] }
 0xbca   : > { %4450 = vmatpush.bf16.msrb.mxu0 %v7064_v22  ;;  %v7143_v22 = vld [vmem:[#allocation4 + $0x10f0] sm:$0xf] }
 0xbcb   : > { %v7144_v60 = vor.u32 %v7571_v25, %v7143_v22  ;;  %v7566_v22 = vld [vmem:[#allocation4 + $0x10d4] sm:$0xf]  ;;  %v7129_v25 = vld [vmem:[#allocation4 + $0x10d8] sm:$0xf0] }
 0xbcc   : > { %v3938_v51 = vpop.f32.mrf.mxu1  ;;  %4283 = vmatpush.bf16.msrb.mxu2 %v7000_v24 }
 0xbcd   : > { %4633 = vmatpush.bf16.msra.mxu3 %v7144_v60 }
 0xbce   : > { %4451 = vmatpush.bf16.msrb.mxu0 %v7056_v36 }
 0xbcf   : > { %6886 = vmatmul.msk.bf16.gmra.mxu1 %vm945_vm2, %v7501_v46  ;;  %v6984_v46 = vor.u32 %v7515_v45, %v6983_v38  ;;  %v7127_v45 = vld [vmem:[#allocation4 + $0x10d0] sm:$0xf] }
 0xbd0   : > { %4284 = vmatpush.bf16.msrb.mxu2 %v6992_v32  ;;  %v7135_v32 = vld [vmem:[#allocation4 + $0x10e0] sm:$0xf] }
 0xbd4   : > { %v3940_v21 = vpop.f32.mrf.mxu1  ;;  %4285 = vmatpush.bf16.msrb.mxu2 %v6984_v46 }
 0xbd5   : > { %v8286_v5 = vpack.c.bf16 %v3940_v21, %v3938_v51  ;;  %v7048_v51 = vor.u32 %v7547_v50, %v7047_v41  ;;  %v6975_v21 = vld [vmem:[#allocation4 + $0xf20] sm:$0xf]  ;;  %v7567_v41 = vld [vmem:[#allocation4 + $0x10d4] sm:$0xf0] }
 0xbd6   : > { %v7128_v46 = vor.u32 %v7567_v41, %v7127_v45  ;;  %v7557_v41 = vld [vmem:[#allocation4 + $0x1084] sm:$0xf0] }
 0xbd7   : > { %4337 = vmatmul.bf16.gmra.mxu3 %v8286_v5  ;;  %4452 = vmatpush.bf16.msrb.mxu0 %v7048_v51  ;;  %v7119_v51 = vld [vmem:[#allocation4 + $0x10c0] sm:$0xf] }
 0xbdc   : > { %v3943_v34 = vpop.f32.mrf.mxu1 }
 0xbdd   : > { %v8290_v57 = vpack.c.bf16 %v3943_v34, %v3943_v34  ;;  %v7039_v34 = vld [vmem:[#allocation4 + $0x1020] sm:$0xf] }
 0xbdf   : > { %6887 = vmatmul.msk.bf16.gmra.mxu1 %vm945_vm2, %v7502_v6  ;;  %v7513_v6 = vld [vmem:[#allocation4 + $0xf24] sm:$0xf0] }
 0xbe4   : > { %v3945_v56 = vpop.f32.mrf.mxu1 }
 0xbe7   : > { %4342 = vmatmul.bf16.gmra.mxu3 %v8290_v57 }
 0xbec   : > { %v3948_v59 = vpop.f32.mrf.mxu1 }
 0xbed   : > { %v4034_v62 = vpack.c.bf16 %v3948_v59, %v3945_v56  ;;  %v6976_v56 = vor.u32 %v7513_v6, %v6975_v21  ;;  %v7565_v21 = vld [vmem:[#allocation4 + $0x10c4] sm:$0xf0] }
 0xbee   : > { %v7120_v6 = vor.u32 %v7565_v21, %v7119_v51  ;;  %v7121_v51 = vld [vmem:[#allocation4 + $0x10c8] sm:$0xf0] }
 0xbef   : > { %6888 = vmatmul.msk.bf16.gmra.mxu1 %vm945_vm2, %v7503_v14  ;;  %4143 = vmatmul.bf16.vlgmr.msra.gmra.mxu2 %v4034_v62  ;;  %v7545_v14 = vld [vmem:[#allocation4 + $0x1024] sm:$0xf0] }
 0xbf0   : > { %4176 = vmatmul.bf16.vlgmr.msra.gmra.mxu0 %v4034_v62  ;;  %v7040_v62 = vor.u32 %v7545_v14, %v7039_v34  ;;  %4286 = vmatpush.bf16.msrb.mxu2 %v6976_v56  ;;  %v7081_v14 = vld [vmem:[#allocation4 + $0x1078] sm:$0xf0] }
 0xbf2   : > { %4453 = vmatpush.bf16.msrb.mxu0 %v7040_v62 }
 0xbf4   : > { %v3950_v4 = vpop.f32.mrf.mxu1 }
 0xbfc   : > { %v3953_v54 = vpop.f32.mrf.mxu1 }
 0xbfd   : > { %v4035_v43 = vpack.c.bf16 %v3953_v54, %v3950_v4  ;;  %v6967_v4 = vld [vmem:[#allocation4 + $0xf10] sm:$0xf] }
 0xbfe   : > { %v7031_v54 = vld [vmem:[#allocation4 + $0x1010] sm:$0xf] }
 0xbff   : > { %6889 = vmatmul.msk.bf16.gmra.mxu1 %vm945_vm2, %v7504_v53  ;;  %4148 = vmatmul.bf16.gmra.mxu2 %v4035_v43  ;;  %v7511_v53 = vld [vmem:[#allocation4 + $0xf14] sm:$0xf0]  ;;  %v7032_v63 = vor.u32 %v7543_v40, %v7031_v54  ;;  %v7145_v54 = vld [vmem:[#allocation4 + $0x10f8] sm:$0xf0] }
 0xc00   : > { %4181 = vmatmul.bf16.gmra.mxu0 %v4035_v43  ;;  %v6968_v43 = vor.u32 %v7511_v53, %v6967_v4  ;;  %v7563_v4 = vld [vmem:[#allocation4 + $0x10b4] sm:$0xf0]  ;;  %v7570_v53 = vld [vmem:[#allocation4 + $0x10f4] sm:$0xf] }
 0xc01   : > { %4454 = vmatpush.bf16.msrb.mxu0 %v7032_v63  ;;  %v7148_v40 = vor.u32 %v7570_v53, %v7145_v54  ;;  %v7113_v54 = vld [vmem:[#allocation4 + $0x10b8] sm:$0xf0] }
 0xc02   : > { %4287 = vmatpush.bf16.msrb.mxu2 %v6968_v43 }
 0xc04   : > { %v3955_v13 = vpop.f32.mrf.mxu1 }
 0xc05   : > { %4455 = vmatpush.bf16.msrb.mxu0 %v7024_v10 }
 0xc06   : > { %4288 = vmatpush.bf16.msrb.mxu2 %v6960_v8  ;;  %v7561_v8 = vld [vmem:[#allocation4 + $0x10a4] sm:$0xf0] }
 0xc07   : > { %v7104_v10 = vor.u32 %v7561_v8, %v7103_v47 }
 0xc09   : > { %4666 = vmatpush.bf16.msra.mxu0 %v7148_v40 }
 0xc0c   : > { %v3958_v35 = vpop.f32.mrf.mxu1 }
 0xc0d   : > { %v4036_v52 = vpack.c.bf16 %v3958_v35, %v3955_v13  ;;  %v7136_v35 = vor.u32 %v7569_v49, %v7135_v32  ;;  %v7548_v49 = vld [vmem:[#allocation4 + $0x1044] sm:$0xf] }
 0xc0f   : > { %6890 = vmatmul.msk.bf16.gmra.mxu1 %vm945_vm2, %v7505_v30  ;;  %4153 = vmatmul.bf16.gmra.mxu2 %v4036_v52 }
 0xc10   : > { %4186 = vmatmul.bf16.gmra.mxu0 %v4036_v52  ;;  %4634 = vmatpush.bf16.msra.mxu3 %v7136_v35  ;;  %v7057_v35 = vld [vmem:[#allocation4 + $0x1048] sm:$0xf0] }
 0xc11   : > { %v7060_v45 = vor.u32 %v7548_v49, %v7057_v35 }
 0xc14   : > { %v3960_v59 = vpop.f32.mrf.mxu1  ;;  %4635 = vmatpush.bf16.msra.mxu3 %v7128_v46  ;;  %v7564_v46 = vld [vmem:[#allocation4 + $0x10c4] sm:$0xf] }
 0xc18   : > { %4636 = vmatpush.bf16.msra.mxu3 %v7120_v6 }
 0xc1c   : > { %v3963_v9 = vpop.f32.mrf.mxu1 }
 0xc1d   : > { %v4037_v11 = vpack.c.bf16 %v3963_v9, %v3960_v59  ;;  %v7111_v59 = vld [vmem:[#allocation4 + $0x10b0] sm:$0xf] }
 0xc1e   : > { %v7112_v43 = vor.u32 %v7563_v4, %v7111_v59  ;;  %v7546_v59 = vld [vmem:[#allocation4 + $0x1034] sm:$0xf] }
 0xc1f   : > { %6891 = vmatmul.msk.bf16.gmra.mxu1 %vm945_vm2, %v7506_v2  ;;  %4158 = vmatmul.bf16.gmra.mxu2 %v4037_v11  ;;  %v7076_v2 = vor.u32 %v7552_v0, %v7073_v1  ;;  %v7562_v4 = vld [vmem:[#allocation4 + $0x10b4] sm:$0xf]  ;;  %v7544_v0 = vld [vmem:[#allocation4 + $0x1024] sm:$0xf]  ;;  %v7041_v1 = vld [vmem:[#allocation4 + $0x1028] sm:$0xf0] }
 0xc20   : > { %4191 = vmatmul.bf16.gmra.mxu0 %v4037_v11  ;;  %4637 = vmatpush.bf16.msra.mxu3 %v7112_v43  ;;  %v7116_v43 = vor.u32 %v7562_v4, %v7113_v54  ;;  %v7044_v47 = vor.u32 %v7544_v0, %v7041_v1 }
 0xc24   : > { %v3965_v13 = vpop.f32.mrf.mxu1  ;;  %4638 = vmatpush.bf16.msra.mxu3 %v7104_v10 }
 0xc25   : > { %v4038_v18 = vpack.c.bf16 %v3965_v13, %v3965_v13  ;;  %v7550_v13 = vld [vmem:[#allocation4 + $0x1054] sm:$0xf] }
 0xc2a   : > { %v8297_v16 = vpop.f32.mrf.mxu3 }
 0xc2c   : > { %v3968_v19 = vpop.f32.mrf.mxu1 }
 0xc2f   : > { %6892 = vmatmul.msk.bf16.gmra.mxu1 %vm945_vm2, %v7507_v17  ;;  %4163 = vmatmul.bf16.gmra.mxu2 %v4038_v18  ;;  %v7065_v17 = vld [vmem:[#allocation4 + $0x1058] sm:$0xf0]  ;;  %vm5420_vm2 = vcmask 130048  }
 0xc30   : > { %4196 = vmatmul.bf16.gmra.mxu0 %v4038_v18  ;;  %v7068_v18 = vor.u32 %v7550_v13, %v7065_v17 }
 0xc32   : > { %v8300_v24 = vpop.f32.mrf.mxu3 }
 0xc34   : > { %v3970_v12 = vpop.f32.mrf.mxu1 }
 0xc35   : > { %v8304_v36 = vpack.c.bf16 %v3970_v12, %v3968_v19  ;;  %v7095_v19 = vld [vmem:[#allocation4 + $0x1090] sm:$0xf]  ;;  %v7559_v12 = vld [vmem:[#allocation4 + $0x1094] sm:$0xf0] }
 0xc36   : > { %v7096_v60 = vor.u32 %v7559_v12, %v7095_v19  ;;  %v7540_v19 = vld [vmem:[#allocation4 + $0x1004] sm:$0xf] }
 0xc37   : > { %v7556_v12 = vld [vmem:[#allocation4 + $0x1084] sm:$0xf] }
 0xc38   : > { %4639 = vmatpush.bf16.msra.mxu3 %v7096_v60 }
 0xc3a   : > { %v8302_v29 = vpop.f32.mrf.mxu3 }
 0xc3c   : > { %v3973_v30 = vpop.f32.mrf.mxu1 }
 0xc3f   : > { %4289 = vmatmul.bf16.vlgmr.msrb.gmra.mxu2 %v8274_v15  ;;  %v7554_v15 = vld [vmem:[#allocation4 + $0x1074] sm:$0xf] }
 0xc40   : > { %4456 = vmatmul.bf16.vlgmr.msrb.gmra.mxu0 %v8304_v36  ;;  %v7084_v62 = vor.u32 %v7554_v15, %v7081_v14  ;;  %v7124_v15 = vor.u32 %v7564_v46, %v7121_v51 }
 0xc42   : > { %v8308_v52 = vpop.f32.mrf.mxu3  ;;  %4481 = vmatpush.bf16.msra.mxu2 %v7084_v62  ;;  %v7049_v62 = vld [vmem:[#allocation4 + $0x1038] sm:$0xf0] }
 0xc43   : > { %v7052_v53 = vor.u32 %v7546_v59, %v7049_v62 }
 0xc44   : > { %v3975_v38 = vpop.f32.mrf.mxu1 }
 0xc45   : > { %v8312_v56 = vpack.c.bf16 %v3975_v38, %v3973_v30  ;;  %v7132_v30 = vor.u32 %v7566_v22, %v7129_v25  ;;  %v7087_v38 = vld [vmem:[#allocation4 + $0x1080] sm:$0xf]  ;;  %v7089_v25 = vld [vmem:[#allocation4 + $0x1088] sm:$0xf0] }
 0xc46   : > { %4482 = vmatpush.bf16.msra.mxu2 %v7076_v2  ;;  %v7088_v6 = vor.u32 %v7557_v41, %v7087_v38  ;;  %v7105_v2 = vld [vmem:[#allocation4 + $0x10a8] sm:$0xf0] }
 0xc48   : > { %4640 = vmatpush.bf16.msra.mxu3 %v7088_v6 }
 0xc4a   : > { %v8310_v50 = vpop.f32.mrf.mxu3  ;;  %4483 = vmatpush.bf16.msra.mxu2 %v7068_v18  ;;  %v7025_v18 = vld [vmem:[#allocation4 + $0x1008] sm:$0xf0] }
 0xc4b   : > { %v7028_v22 = vor.u32 %v7540_v19, %v7025_v18  ;;  %v8383_v19 = vld [vmem:[#allocation7 + $0x58] sm:$0xff] }
 0xc4c   : > { %v3978_v34 = vpop.f32.mrf.mxu1 }
 0xc4e   : > { %4484 = vmatpush.bf16.msra.mxu2 %v7060_v45 }
 0xc4f   : > { %4294 = vmatmul.bf16.gmra.mxu2 %v8278_v58  ;;  %v7137_v58 = vld [vmem:[#allocation4 + $0x10e8] sm:$0xf0] }
 0xc50   : > { %4461 = vmatmul.bf16.gmra.mxu0 %v8312_v56  ;;  %v7140_v11 = vor.u32 %v7568_v7, %v7137_v58  ;;  %v7542_v58 = vld [vmem:[#allocation4 + $0x1014] sm:$0xf] }
 0xc52   : > { %v8316_v63 = vpop.f32.mrf.mxu3  ;;  %4667 = vmatpush.bf16.msra.mxu0 %v7140_v11  ;;  %4485 = vmatpush.bf16.msra.mxu2 %v7052_v53  ;;  %v7097_v11 = vld [vmem:[#allocation4 + $0x1098] sm:$0xf0] }
 0xc54   : > { %v3980_v9 = vpop.f32.mrf.mxu1 }
 0xc55   : > { %v8320_v14 = vpack.c.bf16 %v3980_v9, %v3978_v34  ;;  %v7560_v34 = vld [vmem:[#allocation4 + $0x10a4] sm:$0xf]  ;;  %v7558_v9 = vld [vmem:[#allocation4 + $0x1094] sm:$0xf] }
 0xc56   : > { %4668 = vmatpush.bf16.msra.mxu0 %v7132_v30  ;;  %v7108_v7 = vor.u32 %v7560_v34, %v7105_v2  ;;  %4486 = vmatpush.bf16.msra.mxu2 %v7044_v47  ;;  %v7100_v13 = vor.u32 %v7558_v9, %v7097_v11  ;;  %v7092_v30 = vor.u32 %v7556_v12, %v7089_v25  ;;  %v8389_v12 = vld [vmem:[#allocation7 + $0x50] sm:$0xff]  ;;  %v8392_v25 = vld [vmem:[#allocation7 + $0x48] sm:$0xff] }
 0xc5a   : > { %v8318_v32 = vpop.f32.mrf.mxu3  ;;  %4669 = vmatpush.bf16.msra.mxu0 %v7124_v15 }
 0xc5c   : > { %v3983_v21 = vpop.f32.mrf.mxu1 }
 0xc5e   : > { %4670 = vmatpush.bf16.msra.mxu0 %v7116_v43 }
 0xc5f   : > { %4299 = vmatmul.bf16.gmra.mxu2 %v8282_v31  ;;  %v7033_v31 = vld [vmem:[#allocation4 + $0x1018] sm:$0xf0] }
 0xc60   : > { %4466 = vmatmul.bf16.gmra.mxu0 %v8320_v14  ;;  %v7036_v10 = vor.u32 %v7542_v58, %v7033_v31  ;;  %v8372_v31 = vld [vmem:[#allocation7 + $0x70] sm:$0xff] }
 0xc62   : > { %v8324_v40 = vpop.f32.mrf.mxu3  ;;  %4671 = vmatpush.bf16.msra.mxu0 %v7108_v7  ;;  %4487 = vmatpush.bf16.msra.mxu2 %v7036_v10  ;;  %v8375_v10 = vld [vmem:[#allocation7 + $0x68] sm:$0xff] }
 0xc64   : > { %v3985_v8 = vpop.f32.mrf.mxu1 }
 0xc65   : > { %v8328_v35 = vpack.c.bf16 %v3985_v8, %v3983_v21 }
 0xc66   : > { %4672 = vmatpush.bf16.msra.mxu0 %v7100_v13  ;;  %4488 = vmatpush.bf16.msra.mxu2 %v7028_v22  ;;  %v8378_v13 = vld [vmem:[#allocation7 + $0x60] sm:$0xff] }
 0xc6a   : > { %v8326_v17 = vpop.f32.mrf.mxu3  ;;  %4673 = vmatpush.bf16.msra.mxu0 %v7092_v30 }
 0xc6c   : > { %v3988_v60 = vpop.f32.mrf.mxu1 }
 0xc6d   : > { %v4177_v49 = vpop.f32.mrf.mxu0  ;;  %v8341_v62 = vpack.c.bf16 %v3988_v60, %v3988_v60 }
 0xc6e   : > { %v8331_v38 = vadd.f32 %v8297_v16, %v4177_v49  ;;  %v8398_v49 = vld [vmem:[#allocation7 + $0x40] sm:$0xff] }
 0xc6f   : > { %4304 = vmatmul.bf16.gmra.mxu2 %v8286_v5 }
 0xc70   : > { %4471 = vmatmul.bf16.gmra.mxu0 %v8328_v35 }
 0xc72   : > { %v8335_v45 = vpop.f32.mrf.mxu2  ;;  %v4345_v41 = vpop.f32.mrf.mxu3 }
 0xc73   : > { %v8401_v41 = vld [vmem:[#allocation7 + $0x38] sm:$0xff] }
 0xc74   : > { %v3990_v46 = vpop.f32.mrf.mxu1 }
 0xc75   : > { %v8337_v51 = vpop.f32.mrf.mxu0 }
 0xc7a   : > { %v8339_v6 = vpop.f32.mrf.mxu2 }
 0xc7c   : > { %v3993_v15 = vpop.f32.mrf.mxu1 }
 0xc7d   : > { %v4532_v59 = vpack.c.bf16 %v3993_v15, %v3990_v46  ;;  %v4182_v21 = vpop.f32.mrf.mxu0  ;;  %v8406_v15 = vld [vmem:[#allocation7 + $0x30] sm:$0xff] }
 0xc7e   : > { %v8344_v16 = vadd.f32 %v8302_v29, %v4182_v21  ;;  %v8412_v21 = vld [vmem:[#allocation7 + $0x20] sm:$0xff] }
 0xc7f   : > { %4309 = vmatmul.bf16.gmra.mxu2 %v8290_v57  ;;  %4641 = vmatmul.bf16.vlgmr.msra.gmra.mxu3 %v4532_v59 }
 0xc80   : > { %4476 = vmatmul.bf16.gmra.mxu0 %v8341_v62 }
 0xc82   : > { %v8348_v5 = vpop.f32.mrf.mxu2 }
 0xc84   : > { %v3995_v4 = vpop.f32.mrf.mxu1 }
 0xc85   : > { %v8350_v53 = vpop.f32.mrf.mxu0 }
 0xc8a   : > { %v8352_v54 = vpop.f32.mrf.mxu2 }
 0xc8c   : > { %v3998_v43 = vpop.f32.mrf.mxu1 }
 0xc8d   : > { %v4533_v0 = vpack.c.bf16 %v3998_v43, %v3995_v4  ;;  %v4187_v1 = vpop.f32.mrf.mxu0 }
 0xc8e   : > { %v8355_v34 = vadd.f32 %v8310_v50, %v4187_v1  ;;  %v8367_v50 = vld [vmem:[#allocation7 + $0x78] sm:$0xff] }
 0xc8f   : > { %4489 = vmatmul.bf16.vlgmr.msra.gmra.mxu2 %v8304_v36  ;;  %4646 = vmatmul.bf16.gmra.mxu3 %v4533_v0 }
 0xc90   : > { %4674 = vmatmul.bf16.vlgmr.msra.gmra.mxu0 %v4532_v59  ;;  %v8409_v59 = vld [vmem:[#allocation7 + $0x28] sm:$0xff] }
 0xc91   : > { %5366 = vmatpush.msrb.mxu0 %v8367_v50 }
 0xc92   : > { %v8358_v57 = vpop.f32.mrf.mxu2 }
 0xc93   : > { %5367 = vmatpush.msrb.mxu0 %v8372_v31 }
 0xc94   : > { %v4000_v29 = vpop.f32.mrf.mxu1 }
 0xc95   : > { %v8360_v47 = vpop.f32.mrf.mxu0  ;;  %5368 = vmatpush.msrb.mxu0 %v8375_v10 }
 0xc97   : > { %5369 = vmatpush.msrb.mxu0 %v8378_v13 }
 0xc99   : > { %5370 = vmatpush.msrb.mxu0 %v8383_v19 }
 0xc9a   : > { %v8362_v2 = vpop.f32.mrf.mxu2 }
 0xc9b   : > { %5371 = vmatpush.msrb.mxu0 %v8389_v12 }
 0xc9c   : > { %v4003_v8 = vpop.f32.mrf.mxu1 }
 0xc9d   : > { %v4534_v7 = vpack.c.bf16 %v4003_v8, %v4000_v29  ;;  %v8364_v58 = vpop.f32.mrf.mxu0  ;;  %5372 = vmatpush.msrb.mxu0 %v8392_v25  ;;  %v8422_v8 = vld [vmem:[#allocation7 + $0x8] sm:$0xff] }
 0xc9f   : > { %4494 = vmatmul.bf16.gmra.mxu2 %v8312_v56  ;;  %4651 = vmatmul.bf16.gmra.mxu3 %v4534_v7 }
 0xca0   : > { %4679 = vmatmul.bf16.gmra.mxu0 %v4533_v0  ;;  %v8418_v0 = vld [vmem:[#allocation7 + $0x10] sm:$0xff] }
 0xca1   : > { %5373 = vmatpush.msrb.mxu0 %v8398_v49 }
 0xca2   : > { %v8370_v36 = vpop.f32.mrf.mxu2 }
 0xca3   : > { %5374 = vmatpush.msrb.mxu0 %v8401_v41 }
 0xca4   : > { %v4005_v9 = vpop.f32.mrf.mxu1 }
 0xca5   : > { %v4194_v11 = vpop.f32.mrf.mxu0  ;;  %5375 = vmatpush.msrb.mxu0 %v8406_v15 }
 0xca6   : > { %v8381_v56 = vadd.f32 %v8324_v40, %v4194_v11 }
 0xca7   : > { %5376 = vmatpush.msrb.mxu0 %v8409_v59 }
 0xca9   : > { %5377 = vmatpush.msrb.mxu0 %v8412_v21 }
 0xcaa   : > { %v8387_v18 = vpop.f32.mrf.mxu2 }
 0xcac   : > { %v4008_v22 = vpop.f32.mrf.mxu1 }
 0xcad   : > { %v4535_v60 = vpack.c.bf16 %v4008_v22, %v4005_v9  ;;  %v4197_v30 = vpop.f32.mrf.mxu0 }
 0xcae   : > { %v8396_v40 = vadd.f32 %v8326_v17, %v4197_v30  ;;  %v7179_v30 = vld [vmem:[#allocation4 + $0x1170] sm:$0xf] }
 0xcaf   : > { %4499 = vmatmul.bf16.gmra.mxu2 %v8320_v14  ;;  %4656 = vmatmul.bf16.gmra.mxu3 %v4535_v60  ;;  %v8415_v14 = vld [vmem:[#allocation7 + $0x18] sm:$0xff] }
 0xcb0   : > { %4684 = vmatmul.bf16.gmra.mxu0 %v4534_v7  ;;  %v8425_v7 = vld [vmem:[#allocation7] sm:$0xff] }
 0xcb1   : > { %5378 = vmatpush.msrb.mxu0 %v8415_v14 }
 0xcb2   : > { %v8404_v46 = vpop.f32.mrf.mxu2 }
 0xcb3   : > { %5379 = vmatpush.msrb.mxu0 %v8418_v0 }
 0xcb4   : > { %v4010_v43 = vpop.f32.mrf.mxu1 }
 0xcb5   : > { %v4199_v17 = vpop.f32.mrf.mxu0  ;;  %v4536_v1 = vpack.c.bf16 %v4010_v43, %v4010_v43  ;;  %5380 = vmatpush.msrb.mxu0 %v8422_v8 }
 0xcb6   : > { %v7579_v17 = vld [vmem:[#allocation4 + $0x1174] sm:$0xf0] }
 0xcb7   : > { %5381 = vmatpush.msrb.mxu0 %v8425_v7  ;;  %v7180_v43 = vor.u32 %v7579_v17, %v7179_v30  ;;  %v7577_v30 = vld [vmem:[#allocation4 + $0x1154] sm:$0xf0] }
 0xcb9   : > { %4900 = vmatpush.bf16.msrb.mxu2 %v7180_v43 }
 0xcba   : > { %v4166_v4 = vpop.f32.mrf.mxu2 }
 0xcbd   : > { %v4457_v29 = vpop.f32.mrf.mxu0 }
 0xcbf   : > { %4504 = vmatmul.bf16.gmra.mxu2 %v8328_v35  ;;  %4661 = vmatmul.bf16.gmra.mxu3 %v4536_v1 }
 0xcc0   : > { %4689 = vmatmul.bf16.gmra.mxu0 %v4535_v60 }
 0xcc2   : > { %v4290_v9 = vpop.f32.mrf.mxu2 }
 0xcc3   : > { %v4291_v11 = vadd.f32 %v4290_v9, %v8335_v45  ;;  %v7175_v45 = vld [vmem:[#allocation4 + $0x1160] sm:$0xf]  ;;  %v7578_v9 = vld [vmem:[#allocation4 + $0x1164] sm:$0xf0] }
 0xcc4   : > { %v7176_v42 = vor.u32 %v7578_v9, %v7175_v45  ;;  %v7575_v45 = vld [vmem:[#allocation4 + $0x1134] sm:$0xf0] }
 0xcc5   : > { %v8430_v22 = vpop.f32.mrf.mxu0  ;;  %v8432_v4 = vadd.f32 %v4457_v29, %v4291_v11  ;;  %v7171_v11 = vld [vmem:[#allocation4 + $0x1150] sm:$0xf]  ;;  %v7587_v9 = vld [vmem:[#allocation4 + $0x11f4] sm:$0xf0] }
 0xcc6   : > { %4901 = vmatpush.bf16.msrb.mxu2 %v7176_v42  ;;  %v7172_v17 = vor.u32 %v7577_v30, %v7171_v11  ;;  %v7211_v42 = vld [vmem:[#allocation4 + $0x11f0] sm:$0xf] }
 0xcc7   : > { %v7212_v11 = vor.u32 %v7587_v9, %v7211_v42  ;;  %v7572_v42 = vld [vmem:[#allocation4 + $0x1104] sm:$0xf0]  ;;  %v7199_v9 = vld [vmem:[#allocation4 + $0x11c0] sm:$0xf] }
 0xcc9   : > { %4933 = vmatpush.bf16.msrb.mxu3 %v7212_v11  ;;  %v7584_v11 = vld [vmem:[#allocation4 + $0x11c4] sm:$0xf0] }
 0xcca   : > { %v8434_v35 = vpop.f32.mrf.mxu2  ;;  %4902 = vmatpush.bf16.msrb.mxu2 %v7172_v17  ;;  %v7159_v17 = vld [vmem:[#allocation4 + $0x1120] sm:$0xf] }
 0xccd   : > { %v4462_v60 = vpop.f32.mrf.mxu0 }
 0xccf   : > { %4509 = vmatmul.bf16.gmra.mxu2 %v8341_v62  ;;  %v7167_v62 = vld [vmem:[#allocation4 + $0x1140] sm:$0xf] }
 0xcd0   : > { %4694 = vmatmul.bf16.gmra.mxu0 %v4536_v1  ;;  %v7576_v1 = vld [vmem:[#allocation4 + $0x1144] sm:$0xf0] }
 0xcd1   : > { %v7168_v44 = vor.u32 %v7576_v1, %v7167_v62  ;;  %v7160_v62 = vor.u32 %v7574_v28, %v7159_v17  ;;  %v7200_v17 = vor.u32 %v7584_v11, %v7199_v9 }
 0xcd2   : > { %v4295_v3 = vpop.f32.mrf.mxu2 }
 0xcd3   : > { %v4296_v37 = vadd.f32 %v4295_v3, %v8348_v5  ;;  %4903 = vmatpush.bf16.msrb.mxu2 %v7168_v44  ;;  %v7163_v5 = vld [vmem:[#allocation4 + $0x1130] sm:$0xf]  ;;  %v7586_v44 = vld [vmem:[#allocation4 + $0x11e4] sm:$0xf0] }
 0xcd5   : > { %v8438_v26 = vpop.f32.mrf.mxu0  ;;  %v8440_v61 = vadd.f32 %v4462_v60, %v4296_v37  ;;  %v7164_v60 = vor.u32 %v7575_v45, %v7163_v5  ;;  %v7203_v45 = vld [vmem:[#allocation4 + $0x11d0] sm:$0xf] }
 0xcd7   : > { %4904 = vmatpush.bf16.msrb.mxu2 %v7164_v60 }
 0xcda   : > { %v8442_v29 = vpop.f32.mrf.mxu2 }
 0xcdb   : > { %4905 = vmatpush.bf16.msrb.mxu2 %v7160_v62 }
 0xcdd   : > { %v4467_v43 = vpop.f32.mrf.mxu0 }
 0xce0   : > { %5382 = vmatmul.f32.vlgmr.msrb.gmra.mxu0 %v8160_v33  ;;  %v7207_v33 = vld [vmem:[#allocation4 + $0x11e0] sm:$0xf] }
 0xce1   : > { %v7208_v1 = vor.u32 %v7586_v44, %v7207_v33  ;;  %v7195_v33 = vld [vmem:[#allocation4 + $0x11b0] sm:$0xf]  ;;  %v7583_v44 = vld [vmem:[#allocation4 + $0x11b4] sm:$0xf0] }
 0xce2   : > { %v4300_v3 = vpop.f32.mrf.mxu2 }
 0xce3   : > { %v4301_v37 = vadd.f32 %v4300_v3, %v8358_v57  ;;  %v7155_v57 = vld [vmem:[#allocation4 + $0x1110] sm:$0xf]  ;;  %v7573_v3 = vld [vmem:[#allocation4 + $0x1114] sm:$0xf0]  ;;  %4934 = vmatpush.bf16.msrb.mxu3 %v7208_v1 }
 0xce4   : > { %v7156_v5 = vor.u32 %v7573_v3, %v7155_v57  ;;  %v7191_v57 = vld [vmem:[#allocation4 + $0x11a0] sm:$0xf]  ;;  %v7582_v3 = vld [vmem:[#allocation4 + $0x11a4] sm:$0xf0] }
 0xce5   : > { %v8446_v55 = vpop.f32.mrf.mxu0  ;;  %v8448_v30 = vadd.f32 %v4467_v43, %v4301_v37  ;;  %v7204_v43 = vor.u32 %v7585_v23, %v7203_v45  ;;  %v7151_v37 = vld [vmem:[#allocation4 + $0x1100] sm:$0xf]  ;;  %v7196_v23 = vor.u32 %v7583_v44, %v7195_v33 }
 0xce6   : > { %4906 = vmatpush.bf16.msrb.mxu2 %v7156_v5  ;;  %v7152_v28 = vor.u32 %v7572_v42, %v7151_v37  ;;  %v7192_v5 = vor.u32 %v7582_v3, %v7191_v57  ;;  %v7580_v42 = vld [vmem:[#allocation4 + $0x1184] sm:$0xf0]  ;;  %v4298_v3 = vadd.f32 %v8442_v29, %v8352_v54 }
 0xce7   : > { %4935 = vmatpush.bf16.msrb.mxu3 %v7204_v43  ;;  %v7581_v43 = vld [vmem:[#allocation4 + $0x1194] sm:$0xf0]  ;;  %v3713_v54 = vld [vmem:[#allocation6 + $0x2c8] sm:$0xff] }
 0xcea   : > { %v8450_v27 = vpop.f32.mrf.mxu2  ;;  %4907 = vmatpush.bf16.msrb.mxu2 %v7152_v28 }
 0xceb   : > { %4936 = vmatpush.bf16.msrb.mxu3 %v7200_v17  ;;  %v3710_v17 = vld [vmem:[#allocation6 + $0x2b0] sm:$0xff] }
 0xced   : > { %v8452_v60 = vpop.f32.mrf.mxu0 }
 0xcee   : > { %7604 = vmatpush.msra.mxu2 %v8367_v50  ;;  %v7187_v50 = vld [vmem:[#allocation4 + $0x1190] sm:$0xf] }
 0xcef   : > { %4937 = vmatpush.bf16.msrb.mxu3 %v7196_v23  ;;  %v7188_v37 = vor.u32 %v7581_v43, %v7187_v50  ;;  %v3714_v50 = vld [vmem:[#allocation6 + $0x2d0] sm:$0xff] }
 0xcf0   : > { %7605 = vmatpush.msra.mxu2 %v8372_v31 }
 0xcf2   : > { %v8454_v62 = vpop.f32.mrf.mxu2  ;;  %7606 = vmatpush.msra.mxu2 %v8375_v10  ;;  %v7183_v10 = vld [vmem:[#allocation4 + $0x1180] sm:$0xf] }
 0xcf3   : > { %4938 = vmatpush.bf16.msrb.mxu3 %v7192_v5 }
 0xcf4   : > { %7607 = vmatpush.msra.mxu2 %v8378_v13  ;;  %v7184_v13 = vor.u32 %v7580_v42, %v7183_v10  ;;  %v3716_v10 = vld [vmem:[#allocation6 + $0x2e0] sm:$0xff] }
 0xcf5   : > { %v8458_v1 = vpop.f32.mrf.mxu0 }
 0xcf6   : > { %7608 = vmatpush.msra.mxu2 %v8383_v19 }
 0xcf7   : > { %4939 = vmatpush.bf16.msrb.mxu3 %v7188_v37 }
 0xcf8   : > { %7609 = vmatpush.msra.mxu2 %v8389_v12  ;;  %v4293_v12 = vadd.f32 %v8434_v35, %v8339_v6 }
 0xcfa   : > { %v8462_v45 = vpop.f32.mrf.mxu2  ;;  %7610 = vmatpush.msra.mxu2 %v8392_v25 }
 0xcfb   : > { %4940 = vmatpush.bf16.msrb.mxu3 %v7184_v13 }
 0xcfc   : > { %7611 = vmatpush.msra.mxu2 %v8398_v49 }
 0xcfd   : > { %v4477_v31 = vpop.f32.mrf.mxu0 }
 0xcfe   : > { %7612 = vmatpush.msra.mxu2 %v8401_v41  ;;  %v4516_v41 = vadd.f32 %v8430_v22, %v4293_v12 }
 0xd00   : > { %7613 = vmatpush.msra.mxu2 %v8406_v15 }
 0xd02   : > { %v4310_v28 = vpop.f32.mrf.mxu2  ;;  %v4642_v9 = vpop.f32.mrf.mxu3  ;;  %7614 = vmatpush.msra.mxu2 %v8409_v59 }
 0xd03   : > { %v4311_v19 = vadd.f32 %v4310_v28, %v8404_v46  ;;  %v4699_v49 = vadd.f32 %v4642_v9, %v8432_v4  ;;  %v3712_v46 = vld [vmem:[#allocation6 + $0x2c0] sm:$0xff] }
 0xd04   : > { %7615 = vmatpush.msra.mxu2 %v8412_v21 }
 0xd05   : > { %v4479_v11 = vpop.f32.mrf.mxu0  ;;  %v8473_v25 = vadd.f32 %v4477_v31, %v4311_v19  ;;  %v4717_v15 = vadd.f32 %v4699_v49, %v3710_v17  ;;  %v4520_v31 = vadd.f32 %v8438_v26, %v4298_v3 }
 0xd06   : > { %7616 = vmatpush.msra.mxu2 %v8415_v14 }
 0xd07   : > { %v4735_v59 = vmax.f32 %v4717_v15, 0.0 }
 0xd08   : > { %7617 = vmatpush.msra.mxu2 %v8418_v0 }
 0xd0a   : > { %v4312_v33 = vpop.f32.mrf.mxu2  ;;  %v4644_v44 = vpop.f32.mrf.mxu3  ;;  %7618 = vmatpush.msra.mxu2 %v8422_v8  ;;  %v4326_v8 = vadd.f32 %v8300_v24, %v8337_v51 }
 0xd0b   : > { %v4701_v23 = vadd.f32 %v4644_v44, %v4516_v41 }
 0xd0c   : > { %7619 = vmatpush.msra.mxu2 %v8425_v7  ;;  %v3711_v7 = vld [vmem:[#allocation6 + $0x2b8] sm:$0xff] }
 0xd0d   : > { %v4719_v6 = vadd.f32 %v4701_v23, %v3712_v46  ;;  %v4675_v35 = vpop.f32.mrf.mxu0  ;;  %v4303_v46 = vadd.f32 %v8450_v27, %v8362_v2  ;;  %v3717_v2 = vld [vmem:[#allocation6 + $0x2e8] sm:$0xff] }
 0xd0f   : > { %v4737_v4 = vmax.f32 %v4719_v6, 0.0  ;;  %v3718_v6 = vld [vmem:[#allocation6 + $0x2f0] sm:$0xff] }
 0xd11   : > { %v4794_v21 = vpack.c.bf16 %v4737_v4, %v4735_v59  ;;  %v4524_v4 = vadd.f32 %v8446_v55, %v4303_v46 }
 0xd12   : > { %v4490_v57 = vpop.f32.mrf.mxu2  ;;  %v4647_v22 = vpop.f32.mrf.mxu3 }
 0xd13   : > { %4908 = vmatmul.bf16.vlgmr.msrb.gmra.mxu2 %v4794_v21  ;;  %v4515_v14 = vadd.f32 %v4490_v57, %v8331_v38  ;;  %v4703_v0 = vadd.f32 %v4647_v22, %v8440_v61  ;;  %v3715_v21 = vld [vmem:[#allocation6 + $0x2d8] sm:$0xff]  ;;  %v3720_v22 = vld [vmem:[#allocation6 + $0x300] sm:$0xff] }
 0xd15   : > { %v4677_v5 = vpop.f32.mrf.mxu0  ;;  %v4700_v43 = vadd.f32 %v4675_v35, %v4515_v14  ;;  %v4721_v13 = vadd.f32 %v4703_v0, %v3714_v50  ;;  %v4331_v35 = vadd.f32 %v8308_v52, %v8350_v53  ;;  %v4306_v52 = vadd.f32 %v8454_v62, %v8370_v36 }
 0xd16   : > { %v4336_v36 = vadd.f32 %v8316_v63, %v8360_v47 }
 0xd17   : > { %v4718_v29 = vadd.f32 %v4700_v43, %v3711_v7  ;;  %v4739_v61 = vmax.f32 %v4721_v13, 0.0  ;;  %v4308_v13 = vadd.f32 %v8462_v45, %v8387_v18 }
 0xd19   : > { %v4736_v17 = vmax.f32 %v4718_v29, 0.0 }
 0xd1a   : > { %v4492_v37 = vpop.f32.mrf.mxu2  ;;  %v4649_v42 = vpop.f32.mrf.mxu3 }
 0xd1b   : > { %v4517_v28 = vadd.f32 %v4492_v37, %v4326_v8  ;;  %v4705_v9 = vadd.f32 %v4649_v42, %v4520_v31 }
 0xd1d   : > { %v4702_v38 = vadd.f32 %v4677_v5, %v4517_v28  ;;  %v4723_v19 = vadd.f32 %v4705_v9, %v3716_v10  ;;  %v4680_v12 = vpop.f32.mrf.mxu0  ;;  %v4526_v9 = vadd.f32 %v8452_v60, %v4306_v52 }
 0xd1f   : > { %v4720_v11 = vadd.f32 %v4702_v38, %v3713_v54  ;;  %v4741_v49 = vmax.f32 %v4723_v19, 0.0  ;;  %v3722_v38 = vld [vmem:[#allocation6 + $0x310] sm:$0xff]  ;;  %v4528_v19 = vadd.f32 %v8458_v1, %v4308_v13 }
 0xd21   : > { %v4738_v24 = vmax.f32 %v4720_v11, 0.0  ;;  %v4796_v51 = vpack.c.bf16 %v4741_v49, %v4739_v61  ;;  %v3724_v11 = vld [vmem:[#allocation6 + $0x320] sm:$0xff] }
 0xd22   : > { %v4495_v41 = vpop.f32.mrf.mxu2  ;;  %v4652_v26 = vpop.f32.mrf.mxu3 }
 0xd23   : > { %v4795_v33 = vpack.c.bf16 %v4738_v24, %v4736_v17  ;;  %4913 = vmatmul.bf16.gmra.mxu2 %v4796_v51  ;;  %v4519_v44 = vadd.f32 %v4495_v41, %v8344_v16  ;;  %v4707_v23 = vadd.f32 %v4652_v26, %v8448_v30 }
 0xd25   : > { %v4682_v15 = vpop.f32.mrf.mxu0  ;;  %4941 = vmatmul.bf16.vlgmr.msrb.gmra.mxu3 %v4795_v33  ;;  %v4704_v59 = vadd.f32 %v4680_v12, %v4519_v44  ;;  %v4725_v14 = vadd.f32 %v4707_v23, %v3718_v6  ;;  %v3719_v12 = vld [vmem:[#allocation6 + $0x2f8] sm:$0xff]  ;;  %v4339_v23 = vadd.f32 %v8318_v32, %v8364_v58 }
 0xd27   : > { %v4722_v16 = vadd.f32 %v4704_v59, %v3715_v21  ;;  %v4743_v30 = vmax.f32 %v4725_v14, 0.0  ;;  %v3726_v21 = vld [vmem:[#allocation6 + $0x330] sm:$0xff] }
 0xd29   : > { %v4740_v53 = vmax.f32 %v4722_v16, 0.0 }
 0xd2a   : > { %v4497_v57 = vpop.f32.mrf.mxu2  ;;  %v4654_v3 = vpop.f32.mrf.mxu3 }
 0xd2b   : > { %v4521_v5 = vadd.f32 %v4497_v57, %v4331_v35  ;;  %v4709_v27 = vadd.f32 %v4654_v3, %v4524_v4  ;;  %v3723_v3 = vld [vmem:[#allocation6 + $0x318] sm:$0xff] }
 0xd2d   : > { %v4706_v0 = vadd.f32 %v4682_v15, %v4521_v5  ;;  %v4727_v50 = vadd.f32 %v4709_v27, %v3720_v22  ;;  %v4685_v8 = vpop.f32.mrf.mxu0 }
 0xd2f   : > { %v4724_v43 = vadd.f32 %v4706_v0, %v3717_v2  ;;  %v4745_v31 = vmax.f32 %v4727_v50, 0.0  ;;  %v3725_v2 = vld [vmem:[#allocation6 + $0x328] sm:$0xff] }
 0xd31   : > { %v4742_v55 = vmax.f32 %v4724_v43, 0.0  ;;  %v4798_v7 = vpack.c.bf16 %v4745_v31, %v4743_v30 }
 0xd32   : > { %v4500_v37 = vpop.f32.mrf.mxu2  ;;  %v4657_v10 = vpop.f32.mrf.mxu3 }
 0xd33   : > { %4918 = vmatmul.bf16.gmra.mxu2 %v4798_v7  ;;  %v4797_v42 = vpack.c.bf16 %v4742_v55, %v4740_v53  ;;  %v4523_v28 = vadd.f32 %v4500_v37, %v8355_v34  ;;  %v4711_v29 = vadd.f32 %v4657_v10, %v4526_v9  ;;  %v3721_v34 = vld [vmem:[#allocation6 + $0x308] sm:$0xff]  ;;  %v3727_v7 = vld [vmem:[#allocation6 + $0x338] sm:$0xff]  ;;  %v5447_v37 = vpop.xlane.xlu2 %5446 }
 0xd35   : > { %v4687_v54 = vpop.f32.mrf.mxu0  ;;  %4946 = vmatmul.bf16.gmra.mxu3 %v4797_v42  ;;  %v4708_v62 = vadd.f32 %v4685_v8, %v4523_v28  ;;  %v4729_v17 = vadd.f32 %v4711_v29, %v3722_v38  ;;  %v5410_v42 = vpop.xlane.xlu0 %5409 }
 0xd37   : > { %v4726_v24 = vadd.f32 %v4708_v62, %v3719_v12  ;;  %v4747_v26 = vmax.f32 %v4729_v17, 0.0  ;;  %v4979_v12 = vmul.u32 58254, %v8059_v20 }
 0xd39   : > { %v4744_v44 = vmax.f32 %v4726_v24, 0.0  ;;  %v4982_v17 = vshll.u32 %v4979_v12, 16 }
 0xd3a   : > { %v4502_v61 = vpop.f32.mrf.mxu2  ;;  %v4659_v49 = vpop.f32.mrf.mxu3 }
 0xd3b   : > { %v4525_v18 = vadd.f32 %v4502_v61, %v4336_v36  ;;  %v4713_v45 = vadd.f32 %v4659_v49, %v4528_v19  ;;  %v5484_v38 = vpop.xlane.xlu2 %5483  ;;  %v4978_v61 = vmul.u32 14564, %v8059_v20 }
 0xd3d   : > { %v4710_v60 = vadd.f32 %v4687_v54, %v4525_v18  ;;  %v4731_v51 = vadd.f32 %v4713_v45, %v3724_v11  ;;  %v4690_v41 = vpop.f32.mrf.mxu0  ;;  %v8727_v11 = vld [vmem:[#allocation13_spill] sm:$0xff]  ;;  %vm4986_vm6 = vc.u32 %v4978_v61, %v4982_v17  ;;  %v4988_v45 = vadd.s32 %v4982_v17, %v4978_v61 }
 0xd3e   : > { %v4980_v49 = vmul.u32 14564, %v8727_v11  ;;  %v4981_v18 = vmul.u32 58254, %v8727_v11 }
 0xd3f   : > { %v4728_v33 = vadd.f32 %v4710_v60, %v3721_v34  ;;  %v4749_v46 = vmax.f32 %v4731_v51, 0.0  ;;  %v8728_v34 = vmov 0  }
 0xd40   : > { %v4987_v24 = vsel %vm4986_vm6, 1, %v8728_v34 }
 0xd41   : > { %v4746_v63 = vmax.f32 %v4728_v33, 0.0  ;;  %v4800_v47 = vpack.c.bf16 %v4749_v46, %v4747_v26  ;;  %v4989_v60 = vadd.s32 %v4987_v24, %v4981_v18  ;;  %v4983_v26 = vshrl.u32 %v4979_v12, 16  ;;  %v8730_v46 = vld [vmem:[#allocation16_spill] sm:$0xff] }
 0xd42   : > { %v4505_v15 = vpop.f32.mrf.mxu2  ;;  %v4662_v1 = vpop.f32.mrf.mxu3 }
 0xd43   : > { %4923 = vmatmul.bf16.gmra.mxu2 %v4800_v47  ;;  %v4799_v6 = vpack.c.bf16 %v4746_v63, %v4744_v44  ;;  %v4527_v35 = vadd.f32 %v4505_v15, %v4339_v23  ;;  %v4715_v59 = vadd.f32 %v4662_v1, %v8473_v25  ;;  %v5009_v44 = vmul.u32 14564, %v8730_v46 }
 0xd44   : > { %v5010_v47 = vmul.u32 58254, %v8730_v46  ;;  %v4985_v23 = vshrl.u32 %v4980_v49, 16 }
 0xd45   : > { %v4692_v4 = vpop.f32.mrf.mxu0  ;;  %4951 = vmatmul.bf16.gmra.mxu3 %v4799_v6  ;;  %v4712_v57 = vadd.f32 %v4690_v41, %v4527_v35  ;;  %v4733_v22 = vadd.f32 %v4715_v59, %v3726_v21  ;;  %v8729_v41 = vld [vmem:[#allocation15_spill] sm:$0xff]  ;;  %v5013_v15 = vshll.u32 %v5009_v44, 16 }
 0xd46   : > { %v5007_v20 = vmul.u32 14564, %v8729_v41 }
 0xd47   : > { %v4730_v16 = vadd.f32 %v4712_v57, %v3723_v3  ;;  %v4751_v0 = vmax.f32 %v4733_v22, 0.0  ;;  %v8731_v57 = vld [vmem:[#allocation18_spill] sm:$0xff] }
 0xd48   : > { %v5037_v22 = vmul.u32 58254, %v8731_v57 }
 0xd49   : > { %v4748_v8 = vmax.f32 %v4730_v16, 0.0  ;;  %v4802_v30 = vpack.c.bf16 %v4751_v0, %v4751_v0  ;;  %v5014_v16 = vshrl.u32 %v5009_v44, 16 }
 0xd4a   : > { %v4507_v14 = vpop.f32.mrf.mxu2  ;;  %v4664_v5 = vpop.f32.mrf.mxu3 }
 0xd4b   : > { %v4529_v27 = vadd.f32 %v4507_v14, %v8381_v56  ;;  %v5036_v5 = vmul.u32 14564, %v8731_v57 }
 0xd4d   : > { %v4714_v50 = vadd.f32 %v4692_v4, %v4529_v27  ;;  %v4695_v32 = vpop.f32.mrf.mxu0  ;;  %v8732_v27 = vld [vmem:[#allocation19_spill] sm:$0xff] }
 0xd4f   : > { %v4732_v58 = vadd.f32 %v4714_v50, %v3725_v2  ;;  %v5038_v2 = vmul.u32 14564, %v8732_v27  ;;  %v5040_v50 = vshll.u32 %v5037_v22, 16 }
 0xd51   : > { %v4750_v43 = vmax.f32 %v4732_v58, 0.0  ;;  %v5042_v58 = vshll.u32 %v5038_v2, 16  ;;  %vm5044_vm10 = vc.u32 %v5036_v5, %v5040_v50 }
 0xd52   : > { %v4510_v25 = vpop.f32.mrf.mxu2 }
 0xd53   : > { %v4531_v31 = vadd.f32 %v4510_v25, %v8396_v40  ;;  %4928 = vmatmul.bf16.gmra.mxu2 %v4802_v30  ;;  %v4801_v52 = vpack.c.bf16 %v4750_v43, %v4748_v8  ;;  %v5046_v8 = vadd.s32 %v5040_v50, %v5036_v5  ;;  %v5045_v43 = vsel %vm5044_vm10, 1, %v8728_v34  ;;  %v8733_v25 = vld [vmem:[#allocation12_spill] sm:$0xff] }
 0xd55   : > { %v4697_v53 = vpop.f32.mrf.mxu0  ;;  %4956 = vmatmul.bf16.gmra.mxu3 %v4801_v52  ;;  %v4716_v55 = vadd.f32 %v4695_v32, %v4531_v31  ;;  %v5039_v32 = vmul.u32 58254, %v8732_v27  ;;  %v8539_v31 = vadd.s32 24, %v8733_v25  ;;  %vm5048_vm11 = vc.u32 %v5046_v8, %v5042_v58 }
 0xd57   : > { %v4734_v10 = vadd.f32 %v4716_v55, %v3727_v7  ;;  %v5047_v53 = vadd.s32 %v5045_v43, %v5039_v32  ;;  %v5041_v55 = vshrl.u32 %v5037_v22, 16  ;;  %v5062_v7 = vand.u32 65535, %v8539_v31 }
 0xd58   : > { %v8573_v43 = vadd.s32 48, %v8733_v25 }
 0xd59   : > { %v4752_v54 = vmax.f32 %v4734_v10, 0.0 }
 0xd5a   : > { %v4512_v56 = vpop.f32.mrf.mxu2 }
 0xd5b   : > { %v4803_v36 = vpack.c.bf16 %v4752_v54, %v4752_v54  ;;  %v5049_v56 = vsel %vm5048_vm11, 1, %v8728_v34 }
 0xd5d   : > { %v8511_v13 = vpop.f32.mrf.mxu0 }
 0xd5e   : > { %v5454_v28 = vadd.f32 %v5447_v37, %v8511_v13  ;;  %v5417_v9 = vadd.f32 %v5410_v42, %v8511_v13  ;;  %v5491_v62 = vadd.f32 %v5484_v38, %v8511_v13  ;;  %v5063_v37 = vshrl.u32 %v8539_v31, 16 }
 0xd5f   : > { %v5051_v42 = vadd.s32 %v5049_v56, %v5047_v53 }
 0xd60   : > { %v5458_v40 = vsel %vm5457_vm0, %v5454_v28, inf  ;;  %v5421_v29 = vsel %vm5420_vm2, %v5417_v9, inf  ;;  %v5495_v19 = vsel %vm5494_vm4, %v5491_v62, inf  ;;  %v5065_v28 = vmul.u32 14564, %v5062_v7 }
 0xd61   : > { %5459 = vmin.xlane.f32.xlu1 %v5458_v40  ;;  %5422 = vmin.xlane.f32.xlu2 %v5421_v29  ;;  %v5066_v9 = vmul.u32 58254, %v5062_v7  ;;  %v5067_v40 = vmul.u32 14564, %v5063_v37  ;;  %v5043_v29 = vshrl.u32 %v5038_v2, 16  ;;  %v5052_v38 = vadd.s32 %v5051_v42, %v5041_v55  ;;  %v8735_v7 = vld [vmem:[#allocation17_spill] sm:$0xff] }
 0xd62   : > { %v8545_v62 = vadd.s32 32, %v8733_v25  ;;  %v5149_v42 = vand.u32 65535, %v8573_v43 }
 0xd63   : > { %5385 = vmatmul.f32.vlgmr.msra.gmra.mxu2 %v8165_v39  ;;  %v4984_v39 = vshll.u32 %v4980_v49, 16  ;;  %v5071_v12 = vshll.u32 %v5067_v40, 16 }
 0xd64   : > { %v5091_v49 = vand.u32 65535, %v8545_v62  ;;  %v5092_v24 = vshrl.u32 %v8545_v62, 16 }
 0xd65   : > { %4961 = vmatmul.bf16.gmra.mxu3 %v4803_v36  ;;  %vm4990_vm7 = vc.u32 %v4988_v45, %v4984_v39  ;;  %v5069_v36 = vshll.u32 %v5066_v9, 16  ;;  %v5053_v39 = vadd.s32 %v5052_v38, %v5043_v29 }
 0xd66   : > { %v4991_v51 = vsel %vm4990_vm7, 1, %v8728_v34 }
 0xd67   : > { %v4993_v33 = vadd.s32 %v4991_v51, %v4989_v60  ;;  %vm5073_vm12 = vc.u32 %v5065_v28, %v5069_v36  ;;  %v5075_v11 = vadd.s32 %v5069_v36, %v5065_v28  ;;  %v5095_v60 = vmul.u32 58254, %v5091_v49 }
 0xd68   : > { %v5074_v18 = vsel %vm5073_vm12, 1, %v8728_v34  ;;  %v5054_v44 = vshrl.u32 %v5053_v39, 4  ;;  %v8736_v39 = vmov 0.0  }
 0xd69   : > { %5496 = vmin.xlane.f32.xlu2 %v5495_v19  ;;  %v4994_v6 = vadd.s32 %v4993_v33, %v4983_v26  ;;  %v5068_v19 = vmul.u32 58254, %v5063_v37  ;;  %vm5077_vm13 = vc.u32 %v5075_v11, %v5071_v12  ;;  %v5094_v26 = vmul.u32 14564, %v5091_v49 }
 0xd6a   : > { %v5078_v51 = vsel %vm5077_vm13, 1, %v8728_v34  ;;  %v8553_v33 = vmul.u32 14564, %v5092_v24  ;;  %v5099_v53 = vshrl.u32 %v5095_v60, 16 }
 0xd6b   : > { %5388 = vmatmul.f32.gmra.mxu2 %v8172_v48  ;;  %v5008_v48 = vmul.u32 58254, %v8729_v41  ;;  %v4995_v14 = vadd.s32 %v4994_v6, %v4985_v23  ;;  %v5076_v45 = vadd.s32 %v5074_v18, %v5068_v19  ;;  %v8734_v41 = vld [vmem:[#allocation14_spill] sm:$0xff]  ;;  %v8581_v19 = vmul.u32 58254, %v5149_v42 }
 0xd6c   : > { %v5100_v23 = vshll.u32 %v8553_v33, 16  ;;  %v8588_v18 = vadd.s32 56, %v8733_v25 }
 0xd6d   : > { %v5011_v63 = vshll.u32 %v5008_v48, 16  ;;  %v5012_v4 = vshrl.u32 %v5008_v48, 16  ;;  %v4996_v30 = vshrl.u32 %v4995_v14, 4  ;;  %v5055_v14 = vmul.u32 18, %v5054_v44 }
 0xd6f   : > { %vm5015_vm8 = vc.u32 %v5007_v20, %v5011_v63  ;;  %v5017_v1 = vadd.s32 %v5011_v63, %v5007_v20  ;;  %v4997_v10 = vmul.u32 18, %v4996_v30  ;;  %v5098_v20 = vshll.u32 %v5095_v60, 16 }
 0xd70   : > { %v5016_v35 = vsel %vm5015_vm8, 1, %v8728_v34  ;;  %v5070_v63 = vshrl.u32 %v5066_v9, 16  ;;  %v5056_v37 = vsub.s32 %v8735_v7, %v5055_v14 }
 0xd71   : > { %v5018_v59 = vadd.s32 %v5016_v35, %v5010_v47  ;;  %vm5019_vm9 = vc.u32 %v5017_v1, %v5013_v15  ;;  %v4998_v61 = vsub.s32 %v8733_v25, %v4997_v10  ;;  %v5080_v47 = vadd.s32 %v5078_v51, %v5076_v45 }
 0xd72   : > { %v5020_v21 = vsel %vm5019_vm9, 1, %v8728_v34  ;;  %v8558_v15 = vadd.s32 40, %v8733_v25  ;;  %v5097_v1 = vmul.u32 58254, %v5092_v24  ;;  %vm5102_vm1 = vc.u32 %v5094_v26, %v5098_v20 }
 0xd73   : > { %v5022_v3 = vadd.s32 %v5020_v21, %v5018_v59  ;;  %vm5233_vm14 = vcmp.ne.s32.totalorder %v4998_v61, 0  ;;  %vm5242_vm15 = vcmp.lt.s32.totalorder %v4998_v61, 0  ;;  %v5104_v6 = vadd.s32 %v5098_v20, %v5094_v26 }
 0xd74   : > { %v5260_v35 = vadd.s32 18, %v4998_v61  ;;  %v5103_v59 = vsel %vm5102_vm1, 1, %v8728_v34  ;;  %vm5251_vm7 = vmand %vm5242_vm15, %vm5233_vm14  ;;  %v5072_v21 = vshrl.u32 %v5067_v40, 16  ;;  %v5081_v57 = vadd.s32 %v5080_v47, %v5070_v63  ;;  %v4753_v63 = vld [vmem:[#allocation6 + $0x340] sm:$0xff] }
 0xd75   : > { %v5023_v0 = vadd.s32 %v5022_v3, %v5012_v4  ;;  %vm5106_vm6 = vc.u32 %v5104_v6, %v5100_v23  ;;  %v5120_v4 = vand.u32 65535, %v8558_v15  ;;  %v5121_v22 = vshrl.u32 %v8558_v15, 16 }
 0xd76   : > { %v5105_v5 = vadd.s32 %v5103_v59, %v5097_v1  ;;  %v5107_v27 = vsel %vm5106_vm6, 1, %v8728_v34  ;;  %v5269_v50 = vsel %vm5251_vm7, %v5260_v35, %v4998_v61  ;;  %v5082_v58 = vadd.s32 %v5081_v57, %v5072_v21 }
 0xd77   : > { %v5024_v52 = vadd.s32 %v5023_v0, %v5014_v16  ;;  %v5123_v2 = vmul.u32 14564, %v5120_v4  ;;  %v5124_v16 = vmul.u32 58254, %v5120_v4  ;;  %v8567_v0 = vmul.u32 14564, %v5121_v22 }
 0xd78   : > { %v5109_v55 = vadd.s32 %v5107_v27, %v5105_v5  ;;  %v5126_v56 = vmul.u32 58254, %v5121_v22  ;;  %vm5278_vm10 = vcmp.ne.s32.totalorder %v5269_v50, 0  ;;  %vm5287_vm11 = vcmp.ne.s32.totalorder %v5269_v50, 17 }
 0xd79   : > { %v5025_v54 = vshrl.u32 %v5024_v52, 4  ;;  %v5127_v8 = vshll.u32 %v5124_v16, 16  ;;  %v5129_v30 = vshll.u32 %v8567_v0, 16  ;;  %v5083_v28 = vshrl.u32 %v5082_v58, 4  ;;  %vm5296_vm15 = vmand %vm5278_vm10, %vm5287_vm11 }
 0xd7a   : > { %v5101_v40 = vshrl.u32 %v8553_v33, 16  ;;  %v5110_v29 = vadd.s32 %v5109_v55, %v5099_v53  ;;  %vm5235_vm1 = vcmp.ne.s32.totalorder %v5056_v37, 0  ;;  %v5262_v11 = vadd.s32 18, %v5056_v37 }
 0xd7b   : > { %v5026_v17 = vmul.u32 18, %v5025_v54  ;;  %vm5131_vm9 = vc.u32 %v5123_v2, %v5127_v8  ;;  %v5133_v10 = vadd.s32 %v5127_v8, %v5123_v2  ;;  %v5150_v54 = vshrl.u32 %v8573_v43, 16 }
 0xd7c   : > { %v5132_v9 = vsel %vm5131_vm9, 1, %v8728_v34  ;;  %v5084_v49 = vmul.u32 18, %v5083_v28  ;;  %v7213_v45 = vsel %vm5296_vm15, 1.0, %v8736_v39  ;;  %v5111_v24 = vadd.s32 %v5110_v29, %v5101_v40 }
 0xd7d   : > { %v5027_v48 = vsub.s32 %v8734_v41, %v5026_v17  ;;  %vm5135_vm12 = vc.u32 %v5133_v10, %v5129_v30  ;;  %v5134_v38 = vadd.s32 %v5132_v9, %v5126_v56  ;;  %v8583_v12 = vmul.u32 14564, %v5150_v54 }
 0xd7e   : > { %v5136_v36 = vsel %vm5135_vm12, 1, %v8728_v34  ;;  %v5152_v17 = vmul.u32 14564, %v5149_v42  ;;  %v5128_v51 = vshrl.u32 %v5124_v16, 16  ;;  %v5156_v26 = vshll.u32 %v8581_v19, 16 }
 0xd7f   : > { %vm5234_vm5 = vcmp.ne.s32.totalorder %v5027_v48, 0  ;;  %vm5243_vm3 = vcmp.lt.s32.totalorder %v5027_v48, 0  ;;  %v5261_v3 = vadd.s32 18, %v5027_v48  ;;  %v5138_v41 = vadd.s32 %v5136_v36, %v5134_v38 }
 0xd80   : > { %vm5252_vm8 = vmand %vm5243_vm3, %vm5234_vm5  ;;  %vm5244_vm5 = vcmp.lt.s32.totalorder %v5056_v37, 0  ;;  %v5158_v44 = vshll.u32 %v8583_v12, 16  ;;  %v5085_v1 = vsub.s32 %v8539_v31, %v5084_v49  ;;  %vm5160_vm7 = vc.u32 %v5152_v17, %v5156_v26 }
 0xd81   : > { %v5270_v52 = vsel %vm5252_vm8, %v5261_v3, %v5027_v48  ;;  %vm5253_vm6 = vmand %vm5244_vm5, %vm5235_vm1  ;;  %v5155_v48 = vmul.u32 58254, %v5150_v54  ;;  %v5178_v23 = vand.u32 65535, %v8588_v18  ;;  %v5112_v35 = vshrl.u32 %v5111_v24, 4 }
 0xd82   : > { %vm5279_vm13 = vcmp.ne.s32.totalorder %v5270_v52, 0  ;;  %vm5288_vm14 = vcmp.ne.s32.totalorder %v5270_v52, 17  ;;  %v5271_v47 = vsel %vm5253_vm6, %v5262_v11, %v5056_v37  ;;  %v5161_v59 = vsel %vm5160_vm7, 1, %v8728_v34  ;;  %v4754_v37 = vld [vmem:[#allocation6 + $0x350] sm:$0xff] }
 0xd83   : > { %vm5297_vm3 = vmand %vm5279_vm13, %vm5288_vm14  ;;  %v5162_v4 = vadd.s32 %v5156_v26, %v5152_v17  ;;  %v5139_v21 = vadd.s32 %v5138_v41, %v5128_v51  ;;  %v5163_v57 = vadd.s32 %v5161_v59, %v5155_v48  ;;  %v5179_v31 = vshrl.u32 %v8588_v18, 16 }
 0xd84   : > { %v7214_v20 = vsel %vm5297_vm3, 1.0, %v8736_v39  ;;  %vm5280_vm8 = vcmp.ne.s32.totalorder %v5271_v47, 0  ;;  %vm5289_vm9 = vcmp.ne.s32.totalorder %v5271_v47, 17  ;;  %v5181_v5 = vmul.u32 14564, %v5178_v23 }
 0xd85   : > { %vm5164_vm10 = vc.u32 %v5162_v4, %v5158_v44  ;;  %v8610_v27 = vmul.u32 58254, %v5178_v23  ;;  %v8612_v2 = vmul.u32 14564, %v5179_v31  ;;  %vm5236_vm11 = vcmp.ne.s32.totalorder %v5085_v1, 0  ;;  %vm8624_vm13 = vmand %vm5280_vm8, %vm5289_vm9 }
 0xd86   : > { %v5165_v14 = vsel %vm5164_vm10, 1, %v8728_v34  ;;  %vm5245_vm12 = vcmp.lt.s32.totalorder %v5085_v1, 0  ;;  %v5113_v16 = vmul.u32 18, %v5112_v35  ;;  %v5157_v8 = vshrl.u32 %v8581_v19, 16 }
 0xd87   : > { %v5167_v30 = vadd.s32 %v5165_v14, %v5163_v57  ;;  %v5185_v52 = vshll.u32 %v8610_v27, 16  ;;  %v5184_v55 = vmul.u32 58254, %v5179_v31  ;;  %v5187_v7 = vshll.u32 %v8612_v2, 16  ;;  %vm5254_vm15 = vmand %vm5245_vm12, %vm5236_vm11 }
 0xd88   : > { %v5159_v40 = vshrl.u32 %v8583_v12, 16  ;;  %v7215_v49 = vsel %vm8624_vm13, 1.0, %v8736_v39  ;;  %v5186_v48 = vshrl.u32 %v8610_v27, 16 }
 0xd89   : > { %vm5189_vm14 = vc.u32 %v5181_v5, %v5185_v52  ;;  %v5191_v10 = vadd.s32 %v5185_v52, %v5181_v5  ;;  %v5168_v29 = vadd.s32 %v5167_v30, %v5157_v8  ;;  %v4756_v8 = vld [vmem:[#allocation6 + $0x370] sm:$0xff] }
 0xd8a   : > { %v5190_v28 = vsel %vm5189_vm14, 1, %v8728_v34 }
 0xd8b   : > { %v5192_v36 = vadd.s32 %v5190_v28, %v5184_v55  ;;  %vm5193_vm1 = vc.u32 %v5191_v10, %v5187_v7  ;;  %v5169_v41 = vadd.s32 %v5168_v29, %v5159_v40 }
 0xd8c   : > { %v5194_v17 = vsel %vm5193_vm1, 1, %v8728_v34 }
 0xd8d   : > { %v5170_v59 = vshrl.u32 %v5169_v41, 4 }
 0xd96   : > { %v8555_v46 = vpop.f32.mrf.mxu2 }
 0xd9e   : > { %v8569_v32 = vpop.f32.mrf.mxu2 }
 0xda6   : > { %v8585_v61 = vpop.f32.mrf.mxu2 }
 0xda8   : > { %v4942_v60 = vpop.f32.mrf.mxu3 }
 0xda9   : > { %v4943_v33 = vadd.f32 %v4942_v60, %v8555_v46  ;;  %v5130_v46 = vshrl.u32 %v8567_v0, 16  ;;  %v8616_v0 = vadd.s32 64, %v8733_v25  ;;  %v5263_v25 = vadd.s32 18, %v5085_v1 }
 0xdab   : > { %v5323_v6 = vmul.f32 %v7213_v45, %v4943_v33  ;;  %v5140_v58 = vadd.s32 %v5139_v21, %v5130_v46  ;;  %v5207_v9 = vand.u32 65535, %v8616_v0  ;;  %v5208_v19 = vshrl.u32 %v8616_v0, 16 }
 0xdac   : > { %v5196_v33 = vadd.s32 %v5194_v17, %v5192_v36 }
 0xdad   : > { %v5332_v22 = vadd.f32 %v5323_v6, %v4753_v63  ;;  %v5141_v54 = vshrl.u32 %v5140_v58, 4  ;;  %v5210_v45 = vmul.u32 14564, %v5207_v9  ;;  %v5211_v24 = vmul.u32 58254, %v5207_v9  ;;  %v4755_v63 = vld [vmem:[#allocation6 + $0x360] sm:$0xff] }
 0xdae   : > { %v8607_v3 = vpop.f32.mrf.mxu2  ;;  %v8642_v12 = vmul.u32 14564, %v5208_v19  ;;  %v5213_v47 = vmul.u32 58254, %v5208_v19  ;;  %v5197_v46 = vadd.s32 %v5196_v33, %v5186_v48 }
 0xdaf   : > { %5341 = vst [vmem:[%s8603_s16] sm:$0xff] %v5332_v22  ;;  %v5142_v51 = vmul.u32 18, %v5141_v54 }
 0xdb0   : > { %v4944_v50 = vpop.f32.mrf.mxu3  ;;  %v5216_v44 = vshll.u32 %v8642_v12, 16  ;;  %v5217_v7 = vshrl.u32 %v8642_v12, 16 }
 0xdb1   : > { %v4945_v53 = vadd.f32 %v4944_v50, %v8569_v32  ;;  %v5114_v32 = vsub.s32 %v8545_v62, %v5113_v16  ;;  %v5272_v62 = vsel %vm5254_vm15, %v5263_v25, %v5085_v1  ;;  %v5143_v35 = vsub.s32 %v8558_v15, %v5142_v51 }
 0xdb2   : > { %vm5281_vm6 = vcmp.ne.s32.totalorder %v5272_v62, 0  ;;  %vm5290_vm7 = vcmp.ne.s32.totalorder %v5272_v62, 17  ;;  %v5171_v15 = vmul.u32 18, %v5170_v59  ;;  %v5215_v50 = vshrl.u32 %v5211_v24, 16 }
 0xdb3   : > { %v5324_v42 = vmul.f32 %v7214_v20, %v4945_v53  ;;  %vm5237_vm5 = vcmp.ne.s32.totalorder %v5114_v32, 0  ;;  %vm5246_vm3 = vcmp.lt.s32.totalorder %v5114_v32, 0  ;;  %v5214_v20 = vshll.u32 %v5211_v24, 16  ;;  %vm5299_vm10 = vmand %vm5281_vm6, %vm5290_vm7 }
 0xdb4   : > { %v5264_v23 = vadd.s32 18, %v5114_v32  ;;  %vm5255_vm9 = vmand %vm5246_vm3, %vm5237_vm5  ;;  %v7216_v27 = vsel %vm5299_vm10, 1.0, %v8736_v39  ;;  %vm5238_vm12 = vcmp.ne.s32.totalorder %v5143_v35, 0  ;;  %vm5247_vm13 = vcmp.lt.s32.totalorder %v5143_v35, 0 }
 0xdb5   : > { %v5333_v38 = vadd.f32 %v5324_v42, %v4754_v37  ;;  %vm5218_vm8 = vc.u32 %v5210_v45, %v5214_v20  ;;  %v5220_v6 = vadd.s32 %v5214_v20, %v5210_v45  ;;  %v5265_v52 = vadd.s32 18, %v5143_v35  ;;  %vm5256_vm1 = vmand %vm5247_vm13, %vm5238_vm12  ;;  %v4758_v45 = vld [vmem:[#allocation6 + $0x390] sm:$0xff]  ;;  %v4759_v20 = vld [vmem:[#allocation6 + $0x3a0] sm:$0xff] }
 0xdb6   : > { %v8635_v11 = vpop.f32.mrf.mxu2  ;;  %v5219_v21 = vsel %vm5218_vm8, 1, %v8728_v34  ;;  %v5273_v14 = vsel %vm5255_vm9, %v5264_v23, %v5114_v32 }
 0xdb7   : > { %5342 = vst [vmem:[%s8603_s16 + $0x8] sm:$0xff] %v5333_v38  ;;  %vm5222_vm11 = vc.u32 %v5220_v6, %v5216_v44  ;;  %v5221_v31 = vadd.s32 %v5219_v21, %v5213_v47  ;;  %vm5282_vm14 = vcmp.ne.s32.totalorder %v5273_v14, 0  ;;  %vm5291_vm15 = vcmp.ne.s32.totalorder %v5273_v14, 17  ;;  %v5487_v14 = vpop.xlane.xlu0 %5486 }
 0xdb8   : > { %v4947_v60 = vpop.f32.mrf.mxu3  ;;  %v5223_v22 = vsel %vm5222_vm11, 1, %v8728_v34  ;;  %v5172_v34 = vsub.s32 %v8573_v43, %v5171_v15  ;;  %vm5300_vm5 = vmand %vm5282_vm14, %vm5291_vm15  ;;  %v4757_v43 = vld [vmem:[#allocation6 + $0x380] sm:$0xff] }
 0xdb9   : > { %v4948_v26 = vadd.f32 %v4947_v60, %v8585_v61  ;;  %v5188_v61 = vshrl.u32 %v8612_v2, 16  ;;  %v5225_v58 = vadd.s32 %v5223_v22, %v5221_v31  ;;  %v7217_v10 = vsel %vm5300_vm5, 1.0, %v8736_v39 }
 0xdba   : > { %vm5239_vm3 = vcmp.ne.s32.totalorder %v5172_v34, 0  ;;  %vm5248_vm6 = vcmp.lt.s32.totalorder %v5172_v34, 0  ;;  %v5266_v54 = vadd.s32 18, %v5172_v34 }
 0xdbb   : > { %v5325_v1 = vmul.f32 %v7215_v49, %v4948_v26  ;;  %v5198_v16 = vadd.s32 %v5197_v46, %v5188_v61  ;;  %v5226_v37 = vadd.s32 %v5225_v58, %v5215_v50  ;;  %vm5257_vm9 = vmand %vm5248_vm6, %vm5239_vm3  ;;  %v5450_v61 = vpop.xlane.xlu2 %5449  ;;  %v4761_v58 = vld [vmem:[#allocation6 + $0x3c0] sm:$0xff] }
 0xdbc   : > { %v5275_v19 = vsel %vm5257_vm9, %v5266_v54, %v5172_v34 }
 0xdbd   : > { %v5334_v4 = vadd.f32 %v5325_v1, %v4755_v63  ;;  %v5199_v55 = vshrl.u32 %v5198_v16, 4  ;;  %v5227_v28 = vadd.s32 %v5226_v37, %v5217_v7  ;;  %vm5284_vm13 = vcmp.ne.s32.totalorder %v5275_v19, 0  ;;  %v5413_v1 = vpop.xlane.xlu1 %5412 }
 0xdbe   : > { %v4921_v57 = vpop.f32.mrf.mxu2  ;;  %vm5293_vm14 = vcmp.ne.s32.totalorder %v5275_v19, 17 }
 0xdbf   : > { %5343 = vst [vmem:[%s8603_s16 + $0x10] sm:$0xff] %v5334_v4  ;;  %v5200_v32 = vmul.u32 18, %v5199_v55  ;;  %v5228_v38 = vshrl.u32 %v5227_v28, 4  ;;  %v4760_v4 = vld [vmem:[#allocation6 + $0x3b0] sm:$0xff] }
 0xdc0   : > { %v4949_v5 = vpop.f32.mrf.mxu3 }
 0xdc1   : > { %v4950_v2 = vadd.f32 %v4949_v5, %v8607_v3  ;;  %v5274_v3 = vsel %vm5256_vm1, %v5265_v52, %v5143_v35  ;;  %v5201_v29 = vsub.s32 %v8588_v18, %v5200_v32  ;;  %v5229_v17 = vmul.u32 18, %v5228_v38  ;;  %vm5302_vm1 = vmand %vm5284_vm13, %vm5293_vm14 }
 0xdc2   : > { %vm5283_vm7 = vcmp.ne.s32.totalorder %v5274_v3, 0  ;;  %vm5292_vm8 = vcmp.ne.s32.totalorder %v5274_v3, 17  ;;  %v7219_v26 = vsel %vm5302_vm1, 1.0, %v8736_v39  ;;  %vm5531_vm13 = vcmask 523648  }
 0xdc3   : > { %v5326_v30 = vmul.f32 %v7216_v27, %v4950_v2  ;;  %vm5301_vm10 = vmand %vm5283_vm7, %vm5292_vm8  ;;  %vm5240_vm11 = vcmp.ne.s32.totalorder %v5201_v29, 0  ;;  %vm5249_vm12 = vcmp.lt.s32.totalorder %v5201_v29, 0  ;;  %v5267_v12 = vadd.s32 18, %v5201_v29 }
 0xdc4   : > { %vm5258_vm15 = vmand %vm5249_vm12, %vm5240_vm11  ;;  %v5230_v18 = vsub.s32 %v8616_v0, %v5229_v17 }
 0xdc5   : > { %v5335_v53 = vadd.f32 %v5326_v30, %v4756_v8  ;;  %v5276_v41 = vsel %vm5258_vm15, %v5267_v12, %v5201_v29  ;;  %v5453_v15 = vpop.xlane.xlu1 %5452  ;;  %v5521_v30 = vpop.xlane.xlu2 %5520 }
 0xdc6   : > { %v4924_v56 = vpop.f32.mrf.mxu2  ;;  %vm5241_vm5 = vcmp.ne.s32.totalorder %v5230_v18, 0  ;;  %vm5250_vm3 = vcmp.lt.s32.totalorder %v5230_v18, 0  ;;  %vm5285_vm6 = vcmp.ne.s32.totalorder %v5276_v41, 0  ;;  %vm5294_vm7 = vcmp.ne.s32.totalorder %v5276_v41, 17 }
 0xdc7   : > { %5344 = vst [vmem:[%s8603_s16 + $0x18] sm:$0xff] %v5335_v53  ;;  %v5268_v63 = vadd.s32 18, %v5230_v18  ;;  %vm5259_vm8 = vmand %vm5250_vm3, %vm5241_vm5  ;;  %v5528_v34 = vadd.f32 %v5521_v30, %v8511_v13 }
 0xdc8   : > { %v4952_v25 = vpop.f32.mrf.mxu3  ;;  %vm5303_vm9 = vmand %vm5285_vm6, %vm5294_vm7 }
 0xdc9   : > { %v4953_v42 = vadd.f32 %v4952_v25, %v8635_v11  ;;  %v7218_v11 = vsel %vm5301_vm10, 1.0, %v8736_v39  ;;  %v5277_v23 = vsel %vm5259_vm8, %v5268_v63, %v5230_v18  ;;  %v7220_v35 = vsel %vm5303_vm9, 1.0, %v8736_v39  ;;  %v5416_v25 = vpop.xlane.xlu0 %5415 }
 0xdca   : > { %vm5286_vm10 = vcmp.ne.s32.totalorder %v5277_v23, 0  ;;  %vm5295_vm11 = vcmp.ne.s32.totalorder %v5277_v23, 17  ;;  %v5532_v37 = vsel %vm5531_vm13, %v5528_v34, inf }
 0xdcb   : > { %v5327_v9 = vmul.f32 %v7217_v10, %v4953_v42  ;;  %vm5304_vm12 = vmand %vm5286_vm10, %vm5295_vm11 }
 0xdcc   : > { %v7221_v27 = vsel %vm5304_vm12, 1.0, %v8736_v39 }
 0xdcd   : > { %v5336_v40 = vadd.f32 %v5327_v9, %v4757_v43  ;;  %v5490_v10 = vpop.xlane.xlu1 %5489 }
 0xdce   : > { %v4926_v36 = vpop.f32.mrf.mxu2 }
 0xdcf   : > { %5345 = vst [vmem:[%s8603_s16 + $0x20] sm:$0xff] %v5336_v40 }
 0xdd0   : > { %v4954_v49 = vpop.f32.mrf.mxu3 }
 0xdd1   : > { %v4955_v62 = vadd.f32 %v4954_v49, %v4921_v57  ;;  %v5524_v43 = vpop.xlane.xlu0 %5523 }
 0xdd3   : > { %v5328_v24 = vmul.f32 %v7218_v11, %v4955_v62 }
 0xdd5   : > { %v5337_v60 = vadd.f32 %v5328_v24, %v4758_v45  ;;  %v5527_v9 = vpop.xlane.xlu1 %5526 }
 0xdd6   : > { %v4929_v51 = vpop.f32.mrf.mxu2 }
 0xdd7   : > { %5346 = vst [vmem:[%s8603_s16 + $0x28] sm:$0xff] %v5337_v60 }
 0xdd8   : > { %v4957_v48 = vpop.f32.mrf.mxu3 }
 0xdd9   : > { %v4958_v33 = vadd.f32 %v4957_v48, %v4924_v56 }
 0xddb   : > { %v5329_v44 = vmul.f32 %v7219_v26, %v4958_v33 }
 0xddd   : > { %v5338_v47 = vadd.f32 %v5329_v44, %v4759_v20  ;;  %v5460_v11 = vpop.xlane.xlu1 %5459 }
 0xdde   : > { %v4931_v0 = vpop.f32.mrf.mxu2  ;;  %v5467_v12 = vmax.f32 %v5460_v11, 0.0 }
 0xddf   : > { %5347 = vst [vmem:[%s8603_s16 + $0x30] sm:$0xff] %v5338_v47 }
 0xde0   : > { %v4959_v6 = vpop.f32.mrf.mxu3 }
 0xde1   : > { %v4960_v59 = vadd.f32 %v4959_v6, %v4926_v36  ;;  %v5423_v36 = vpop.xlane.xlu2 %5422 }
 0xde2   : > { %v5430_v60 = vmax.f32 %v5423_v36, 0.0 }
 0xde3   : > { %v5330_v46 = vmul.f32 %v7220_v35, %v4960_v59 }
 0xde4   : > { %v5470_v44 = vadd.f32 %v5467_v12, %v5430_v60 }
 0xde5   : > { %v5339_v21 = vadd.f32 %v5330_v46, %v4760_v4 }
 0xde6   : > { %v5386_v57 = vpop.f32.mrf.mxu2 }
 0xde7   : > { %5348 = vst [vmem:[%s8603_s16 + $0x38] sm:$0xff] %v5339_v21  ;;  %v5455_v31 = vadd.f32 %v5450_v61, %v5386_v57  ;;  %v5418_v22 = vadd.f32 %v5413_v1, %v5386_v57  ;;  %v5492_v53 = vadd.f32 %v5487_v14, %v5386_v57  ;;  %v5529_v54 = vadd.f32 %v5524_v43, %v5386_v57 }
 0xde8   : > { %v4962_v5 = vpop.f32.mrf.mxu3 }
 0xde9   : > { %v4963_v2 = vadd.f32 %v4962_v5, %v4929_v51  ;;  %v5461_v16 = vsel %vm5457_vm0, %v5455_v31, inf  ;;  %v5424_v50 = vsel %vm5420_vm2, %v5418_v22, inf  ;;  %v5498_v56 = vsel %vm5494_vm4, %v5492_v53, inf  ;;  %v5497_v19 = vpop.xlane.xlu2 %5496 }
 0xdea   : > { %5462 = vmin.xlane.f32.xlu2 %v5461_v16  ;;  %5425 = vmin.xlane.f32.xlu0 %v5424_v50  ;;  %v5535_v29 = vsel %vm5531_vm13, %v5529_v54, inf  ;;  %v5504_v48 = vmax.f32 %v5497_v19, 0.0 }
 0xdeb   : > { %v5331_v8 = vmul.f32 %v7221_v27, %v4963_v2 }
 0xdec   : > { %v5507_v1 = vadd.f32 %v5504_v48, %v5470_v44 }
 0xded   : > { %v5340_v52 = vadd.f32 %v5331_v8, %v4761_v58 }
 0xdee   : > { %v5389_v55 = vpop.f32.mrf.mxu2 }
 0xdef   : > { %5349 = vst [vmem:[%s8603_s16 + $0x40] sm:$0xff] %v5340_v52  ;;  %v5456_v7 = vadd.f32 %v5453_v15, %v5389_v55  ;;  %v5419_v42 = vadd.f32 %v5416_v25, %v5389_v55  ;;  %v5493_v32 = vadd.f32 %v5490_v10, %v5389_v55  ;;  %v5530_v40 = vadd.f32 %v5527_v9, %v5389_v55 }
 0xdf0   : > { %v4964_v39 = vpop.f32.mrf.mxu3 }
 0xdf1   : > { %v5464_v3 = vsel %vm5457_vm0, %v5456_v7, inf  ;;  %v5427_v13 = vsel %vm5420_vm2, %v5419_v42, inf  ;;  %v5501_v28 = vsel %vm5494_vm4, %v5493_v32, inf  ;;  %v5538_v38 = vsel %vm5531_vm13, %v5530_v40, inf }
 0xdf2   : > { %5533 = vmin.xlane.f32.xlu2 %v5532_v37  ;;  %5499 = vmin.xlane.f32.xlu0 %v5498_v56  ;;  %vm5547_vm0 = vcmask 7168  }
 0xdf3   : > { %5465 = vmin.xlane.f32.xlu1 %v5464_v3 }
 0xdfa   : > { %5428 = vmin.xlane.f32.xlu0 %v5427_v13 }
 0xdfb   : > { %5502 = vmin.xlane.f32.xlu1 %v5501_v28 }
 0xe02   : > { %5536 = vmin.xlane.f32.xlu0 %v5535_v29 }
 0xe03   : > { %5539 = vmin.xlane.f32.xlu1 %v5538_v38 }
 0xe5d   : > { %v5426_v49 = vpop.xlane.xlu0 %5425  ;;  %v5463_v62 = vpop.xlane.xlu2 %5462 }
 0xe5e   : > { %v5468_v26 = vmax.f32 %v5463_v62, 0.0  ;;  %v5431_v33 = vmax.f32 %v5426_v49, 0.0 }
 0xe60   : > { %v5471_v23 = vadd.f32 %v5468_v26, %v5431_v33 }
 0xe65   : > { %v5500_v17 = vpop.xlane.xlu0 %5499  ;;  %v5534_v51 = vpop.xlane.xlu2 %5533 }
 0xe66   : > { %v5466_v45 = vpop.xlane.xlu1 %5465  ;;  %v5541_v63 = vmax.f32 %v5534_v51, 0.0  ;;  %v5505_v47 = vmax.f32 %v5500_v17, 0.0 }
 0xe67   : > { %v5469_v20 = vmax.f32 %v5466_v45, 0.0 }
 0xe68   : > { %v5544_v59 = vadd.f32 %v5541_v63, %v5507_v1  ;;  %v5508_v61 = vadd.f32 %v5505_v47, %v5471_v23 }
 0xe6a   : > { %v5548_v5 = vsel %vm5547_vm0, %v5544_v59, 0.0 }
 0xe6d   : > { %v5429_v24 = vpop.xlane.xlu0 %5428 }
 0xe6e   : > { %v5503_v18 = vpop.xlane.xlu1 %5502  ;;  %v5432_v41 = vmax.f32 %v5429_v24, 0.0 }
 0xe6f   : > { %v5506_v6 = vmax.f32 %v5503_v18, 0.0 }
 0xe70   : > { %v5472_v0 = vadd.f32 %v5469_v20, %v5432_v41 }
 0xe72   : > { %v5509_v21 = vadd.f32 %v5506_v6, %v5472_v0 }
 0xe75   : > { %v5537_v35 = vpop.xlane.xlu0 %5536 }
 0xe76   : > { %v5540_v4 = vpop.xlane.xlu1 %5539  ;;  %v5542_v46 = vmax.f32 %v5537_v35, 0.0 }
 0xe77   : > { %v5543_v57 = vmax.f32 %v5540_v4, 0.0 }
 0xe78   : > { %v5545_v31 = vadd.f32 %v5542_v46, %v5508_v61 }
 0xe79   : > { %v5546_v22 = vadd.f32 %v5543_v57, %v5509_v21 }
 0xe7a   : > { %v5549_v14 = vsel %vm5547_vm0, %v5545_v31, 0.0 }
 0xe7b   : > { %v5550_v27 = vadd.f32 %v5549_v14, %v5548_v5  ;;  %v5551_v15 = vsel %vm5547_vm0, %v5546_v22, 0.0 }
 0xe7d   : > { %v5552_v2 = vadd.f32 %v5551_v15, %v5550_v27 }
 0xe7f   : > { %5553 = vadd.xlane.f32.xlu2 %v5552_v2 }
 0xef2   : > { %v5554_v16 = vpop.xlane.xlu2 %5553 }
 0xef3   : > { %v5555_v50 = vrot.slane %v5554_v16, 4 }
 0xef5   : > { %v5556_v58 = vadd.f32 %v5555_v50, %v5554_v16 }
 0xef7   : > { %v5557_v8 = vrot.slane %v5556_v58, 2 }
 0xef9   : > { %v5558_v30 = vadd.f32 %v5557_v8, %v5556_v58 }
 0xefb   : > { %v5559_v52 = vrot.slane %v5558_v30, 1 }
 0xefd   : > { %v5560_v34 = vadd.f32 %v5559_v52, %v5558_v30 }
 0xeff   : > { %7620 = vpush %v5560_v34 }
 0xf30   : > { %s7621_s18 = spop %7620 }
 0xf31   : > { %s5562_s23 = smul.f32 0.00024414063, %s7621_s18 }
 0xf33   : > { %v5563_v53 = vstv %s5562_s23 }
 0xf34   : > { %5565 = vst [vmem:[%s332_s22] sm:$0xff] %v5563_v53 }
 0xf35 PF: > { %s20_s21 = sadd.s32 1, %s7821_s21  }
 0xf36   : > { %p17_p8 = scmp.ge.s32.totalorder %s20_s21, 4  }
 0xf38   :  { %19 = sbr.rel (!%p17_p8) target bundleno = 3 (0x3), region = 99 }
 0xf3d   :  { %5602 = vsyncpa [#allocation3], 1 }
 0xf3e   :  { %5604 = vsyncpa [#allocation3 + $0x1], 1 }
 0xf3f   :  { %5605 = vsyncpa [#allocation5], 1 }
 0xf40   :  { %5606 = vsyncpa [#allocation8], 1 }

</bundles_post_ra>
